<compile_context>
chip_gen: v5e
topology: v5e:2x2
jax: 0.10.0
libtpu: 0.0.40
codegen_flags: <defaults>
</compile_context>

<pallas_src>
import jax
import jax.numpy as jnp
from jax.experimental import pallas as pl
from jax.experimental.pallas import tpu as pltpu

_MIB = 1024 * 1024


# --------------------------------------------------------------------------- #
# Tiling helpers
# --------------------------------------------------------------------------- #
def _pick_tile(n: int, target: int, step: int):
    """Largest divisor of `n` that is a multiple of `step` and <= target (or None)."""
    best = None
    d = step
    limit = min(n, target)
    while d <= limit:
        if n % d == 0:
            best = d
        d += step
    return best


# --------------------------------------------------------------------------- #
# Kernel 1: fused fc + log_softmax  (Conformer.forward tail when decoder is None)
# --------------------------------------------------------------------------- #
def _fc_log_softmax_kernel(x_ref, w_ref, b_ref, out_ref):
    """out = log_softmax(x @ w + b) over the class axis.

    x_ref  : (1, tS, E)  encoder-output tile.
    w_ref  : (E, C)      bf16 fc weight (resident across the grid).
    b_ref  : (1, C)      f32 fc bias.
    out_ref: (1, tS, C)  log-probabilities (f32 or bf16).
    """
    x = x_ref[0].astype(jnp.bfloat16)                                # (tS, E) bf16 -> MXU
    logits = jnp.dot(x, w_ref[...], preferred_element_type=jnp.float32)
    logits = logits + b_ref[...]                                     # (tS, C) f32
    m = jnp.max(logits, axis=-1, keepdims=True)
    z = logits - m
    lse = jnp.log(jnp.sum(jnp.exp(z), axis=-1, keepdims=True))
    out_ref[0] = (z - lse).astype(out_ref.dtype)


def pallas_forward_head(encoder_outputs, fc_weight, fc_bias, *, tile_s=None,
                        out_dtype=jnp.float32):
    """Conformer.forward with decoder=None: log_softmax(fc(encoder_outputs)).

    encoder_outputs: (B, S, E) float32 / bfloat16
    fc_weight:       (E, C)    (already transposed vs. torch Linear.weight)
    fc_bias:         (C,)
    out_dtype:       float32 (torch-like) or bfloat16 (halves the dominant HBM write).
    Returns (B, S, C) log-probabilities.
    """
    B, S, E = encoder_outputs.shape
    E2, C = fc_weight.shape
    assert E2 == E, (E2, E)

    w_bf16 = fc_weight.astype(jnp.bfloat16)
    bias2d = fc_bias.astype(jnp.float32).reshape(1, C)
    in_item = jnp.dtype(encoder_outputs.dtype).itemsize
    out_item = jnp.dtype(out_dtype).itemsize

    # VMEM budget: resident bf16 weight (counted x2 in case single-buffering is
    # unavailable) + bias + double-buffered input & output tiles.
    budget = 24 * _MIB
    fixed = 2 * E * C * 2 + 2 * C * 4
    per_row = 2 * E * in_item + 2 * C * out_item
    if fixed + 8 * per_row > budget:
        # TODO(synk): extremely large class counts would need a class-tiled two-pass
        # streaming log-softmax head; use XLA for that corner case.
        logits = jnp.dot(encoder_outputs.astype(jnp.bfloat16), w_bf16,
                         preferred_element_type=jnp.float32) + fc_bias
        return jax.nn.log_softmax(logits, axis=-1).astype(out_dtype)

    if tile_s is not None:
        t_s = tile_s
    else:
        max_ts = max(8, (budget - fixed) // per_row)
        target = min(S, 1024, max_ts)
        if B == 1 and S >= 16:
            # Keep >= 2 parallel grid blocks so both v7x TensorCores get work.
            target = min(target, max(8, S // 2))
        t_s = _pick_tile(S, target, 8) or S
    if S % t_s != 0:
        t_s = S

    est = fixed + t_s * per_row
    vmem_limit = None
    if est > 28 * _MIB:
        vmem_limit = int(est * 1.3) + 4 * _MIB

    def _call(single_buffer_params):
        if single_buffer_params:
            # Weight/bias block index is constant across the grid -> no need to
            # double-buffer; frees E*C*2 bytes of VMEM for bigger S tiles.
            w_spec = pl.BlockSpec((E, C), lambda b, s: (0, 0),
                                  pipeline_mode=pl.Buffered(1))
            b_spec = pl.BlockSpec((1, C), lambda b, s: (0, 0),
                                  pipeline_mode=pl.Buffered(1))
        else:
            w_spec = pl.BlockSpec((E, C), lambda b, s: (0, 0))
            b_spec = pl.BlockSpec((1, C), lambda b, s: (0, 0))
        return pl.pallas_call(
            _fc_log_softmax_kernel,
            out_shape=jax.ShapeDtypeStruct((B, S, C), out_dtype),
            grid=(B, S // t_s),
            in_specs=[pl.BlockSpec((1, t_s, E), lambda b, s: (b, s, 0)),
                      w_spec, b_spec],
            out_specs=pl.BlockSpec((1, t_s, C), lambda b, s: (b, s, 0)),
            compiler_params=pltpu.CompilerParams(
                dimension_semantics=("parallel", "parallel"),
                vmem_limit_bytes=vmem_limit),
        )(encoder_outputs, w_bf16, bias2d)

    try:
        return _call(True)
    except Exception:  # single-buffered pipeline_mode unsupported -> default buffering
        return _call(False)


# --------------------------------------------------------------------------- #
# Kernel 2: fused fc + argmax  (Conformer.recognize when decoder is None)
# --------------------------------------------------------------------------- #
def _fc_argmax_kernel(x_ref, w_ref, b_ref, out_ref, max_sc, idx_sc):
    """Running argmax over class chunks of logits = x @ w + b.

    argmax(log_softmax(z)) == argmax(z), so the recognize path never needs log-probs.

    x_ref  : (1, tS, E)  encoder-output tile (resident across class chunks).
    w_ref  : (E, tC)     bf16 weight chunk.
    b_ref  : (1, tC)     f32 bias chunk.
    out_ref: (1, 1, tS)  lane-dense int32 argmax indices (written at last chunk).
    max_sc : (tS, 1)     running max   (f32 VMEM scratch).
    idx_sc : (tS, 1)     running index (i32 VMEM scratch).
    """
    k = pl.program_id(2)
    t_c = w_ref.shape[-1]

    x = x_ref[0].astype(jnp.bfloat16)                                # (tS, E)
    logits = jnp.dot(x, w_ref[...], preferred_element_type=jnp.float32)
    logits = logits + b_ref[...]                                     # (tS, tC)
    mx = jnp.max(logits, axis=-1, keepdims=True)                     # (tS, 1)
    lane = jax.lax.broadcasted_iota(jnp.int32, logits.shape, dimension=1)
    masked = jnp.where(logits >= mx, lane, jnp.int32(t_c))           # first-occurrence
    idx = jnp.min(masked, axis=-1, keepdims=True) + k * t_c          # (tS, 1) global

    @pl.when(k == 0)
    def _init():
        max_sc[...] = mx
        idx_sc[...] = idx

    @pl.when(k > 0)
    def _merge():
        # Strict ">" keeps the earlier chunk on ties -> global first-occurrence.
        upd = mx > max_sc[...]
        max_sc[...] = jnp.where(upd, mx, max_sc[...])
        idx_sc[...] = jnp.where(upd, idx, idx_sc[...])

    @pl.when(k == pl.num_programs(2) - 1)
    def _finalize():
        out_ref[...] = idx_sc[...].reshape(out_ref.shape)


def pallas_recognize(encoder_outputs, fc_weight, fc_bias, *, tile_s=None, tile_c=None):
    """Conformer.recognize with decoder=None, given encoder outputs.

    Fused fc + argmax: never materializes the (B, S, C) log-prob tensor in HBM.

    # TODO(synk): ConformerEncoder itself is not implemented (not in the provided spec);
    # this covers the fc + log_softmax + greedy-argmax tail of recognize().
    """
    B, S, E = encoder_outputs.shape
    E2, C = fc_weight.shape
    assert E2 == E, (E2, E)

    w_bf16 = fc_weight.astype(jnp.bfloat16)
    bias2d = fc_bias.astype(jnp.float32).reshape(1, C)
    in_item = jnp.dtype(encoder_outputs.dtype).itemsize

    def _xla_fallback():
        logits = jnp.dot(encoder_outputs.astype(jnp.bfloat16), w_bf16,
                         preferred_element_type=jnp.float32) + fc_bias
        return jnp.argmax(logits, axis=-1).astype(jnp.int32)

    if C < 128:
        return _xla_fallback()

    # Moderate class chunks (512) keep the cross-lane reduce / carry-merge cheap.
    t_c = tile_c if tile_c is not None else (
        _pick_tile(C, 512, 128) or _pick_tile(C, 2048, 128) or C)

    chunk_bytes = 2 * (E * t_c * 2 + t_c * 4)          # double-buffered weight + bias chunks
    per_row = 2 * E * in_item + 2 * 4 + 8              # x tile (x2) + int32 out (x2) + carries
    budget = 16 * _MIB

    if tile_s is not None:
        t_s = tile_s
    else:
        avail = budget - chunk_bytes
        if avail < 128 * per_row:
            return _xla_fallback()
        target = min(S, 1024, avail // per_row)
        if B == 1 and S >= 256:
            target = min(target, S // 2)               # >=2 parallel blocks for v7x's 2 TCs
        t_s = _pick_tile(S, target, 128) or S

    ok = (
        S % t_s == 0 and C % t_c == 0
        and (t_s % 128 == 0 or t_s == S)
        and (t_c % 128 == 0 or t_c == C)
        and chunk_bytes + t_s * per_row <= 24 * _MIB
    )
    if not ok:
        return _xla_fallback()

    grid = (B, S // t_s, C // t_c)                     # class (reduction) axis innermost
    out = pl.pallas_call(
        _fc_argmax_kernel,
        out_shape=jax.ShapeDtypeStruct((B, 1, S), jnp.int32),
        grid=grid,
        in_specs=[
            pl.BlockSpec((1, t_s, E), lambda b, s, k: (b, s, 0)),
            pl.BlockSpec((E, t_c), lambda b, s, k: (0, k)),
            pl.BlockSpec((1, t_c), lambda b, s, k: (0, k)),
        ],
        out_specs=pl.BlockSpec((1, 1, t_s), lambda b, s, k: (b, 0, s)),
        scratch_shapes=[
            pltpu.VMEM((t_s, 1), jnp.float32),          # running max
            pltpu.VMEM((t_s, 1), jnp.int32),            # running argmax
        ],
        compiler_params=pltpu.CompilerParams(
            dimension_semantics=("parallel", "parallel", "arbitrary")),
    )(encoder_outputs, w_bf16, bias2d)
    # (B,1,S)->(B,S) reshape is a bitcast (no extra XLA copy pass).
    return out.reshape(B, S)


# --------------------------------------------------------------------------- #
# Kernel 3: tiled argmax over classes  (Conformer.decode when decoder is None)
# --------------------------------------------------------------------------- #
def _decode_kernel(lp_ref, out_ref, max_sc, idx_sc):
    """Argmax over the class (last) axis, accumulated across D-chunks.

    lp_ref : (1, tS, tD) log-prob chunk (native dtype: f32 or bf16).
    out_ref: (1, 1, tS)  lane-dense int32 argmax indices (written at last chunk).
    max_sc : (1, tS, 1)  running max   (f32 VMEM scratch).
    idx_sc : (1, tS, 1)  running index (i32 VMEM scratch).
    """
    k = pl.program_id(2)
    t_d = lp_ref.shape[-1]

    lp = lp_ref[...]                                               # native dtype chunk math
    mx = jnp.max(lp, axis=-1, keepdims=True)                       # (1, tS, 1)
    lane = jax.lax.broadcasted_iota(jnp.int32, lp.shape, dimension=2)
    masked = jnp.where(lp >= mx, lane, jnp.int32(t_d))             # first-occurrence
    idx = jnp.min(masked, axis=-1, keepdims=True) + k * t_d        # (1, tS, 1) global
    mx32 = mx.astype(jnp.float32)                                  # exact for bf16 -> f32

    @pl.when(k == 0)
    def _init():
        max_sc[...] = mx32
        idx_sc[...] = idx

    @pl.when(k > 0)
    def _merge():
        # Strict ">" keeps the earlier chunk on ties -> global first-occurrence.
        upd = mx32 > max_sc[...]
        max_sc[...] = jnp.where(upd, mx32, max_sc[...])
        idx_sc[...] = jnp.where(upd, idx, idx_sc[...])

    @pl.when(k == pl.num_programs(2) - 1)
    def _finalize():
        # One small (tS,1)->(1,tS) relayout per output tile; stores stay lane-dense.
        out_ref[...] = idx_sc[...].reshape(out_ref.shape)


def pallas_decode(predicted_log_probs, *, tile_s=None, tile_d=None):
    """Conformer.decode (decoder is None): argmax over the last (class) axis.

    Args:
      predicted_log_probs: (B, S, D) float32 or bfloat16 log-probabilities.
      tile_s / tile_d: optional overrides; each must divide its axis and be a
        multiple of 128 (or equal to the full extent).
    Returns:
      (B, S) int32 predicted token indices (first occurrence on ties).
    """
    B, S, D = predicted_log_probs.shape
    itemsize = jnp.dtype(predicted_log_probs.dtype).itemsize

    def _xla_fallback():
        return jnp.argmax(predicted_log_probs, axis=-1).astype(jnp.int32)

    # Tiny / awkward shapes: XLA's fused argmax beats fixed per-grid-step overhead.
    if D < 128 or B * S * D * itemsize < 32 * 1024:
        return _xla_fallback()

    # Moderate class chunks + large sequence tiles (amortizes carry/merge/finalize work).
    t_d = tile_d if tile_d is not None else (
        _pick_tile(D, 512, 128) or _pick_tile(D, 2048, 128) or D)

    if tile_s is not None:
        t_s = tile_s
    else:
        # Keep the double-buffered input tile <= ~8 MiB (v5e's default scoped VMEM is
        # 16 MiB; leaves room for output buffers, scratch and Mosaic internals).
        max_ts = max(128, (4 * _MIB) // (t_d * itemsize))
        target = min(1024, max_ts)
        if B == 1 and S >= 256:
            target = min(target, S // 2)               # >=2 parallel blocks for v7x's 2 TCs
        t_s = _pick_tile(S, target, 128) or S

    ok = (
        S % t_s == 0 and D % t_d == 0
        and (t_s % 128 == 0 or t_s == S)
        and (t_d % 128 == 0 or t_d == D)
        and 2 * t_s * t_d * itemsize <= 10 * _MIB      # v5e-safe double-buffer cap
    )
    if not ok:
        return _xla_fallback()

    grid = (B, S // t_s, D // t_d)                     # reduction (class) axis innermost
    out = pl.pallas_call(
        _decode_kernel,
        out_shape=jax.ShapeDtypeStruct((B, 1, S), jnp.int32),
        grid=grid,
        in_specs=[pl.BlockSpec((1, t_s, t_d), lambda b, s, k: (b, s, k))],
        out_specs=pl.BlockSpec((1, 1, t_s), lambda b, s, k: (b, 0, s)),
        scratch_shapes=[
            pltpu.VMEM((1, t_s, 1), jnp.float32),       # running max
            pltpu.VMEM((1, t_s, 1), jnp.int32),         # running argmax
        ],
        compiler_params=pltpu.CompilerParams(
            dimension_semantics=("parallel", "parallel", "arbitrary")),
    )(predicted_log_probs)
    # (B,1,S)->(B,S) reshape is a bitcast (no extra XLA copy pass).
    return out.reshape(B, S)


if __name__ == "__main__":
    key = jax.random.PRNGKey(0)
    k1, k2, k3 = jax.random.split(key, 3)

    # Small-but-representative shapes: batch=2, seq=256, encoder_dim=32, classes=512.
    B, S, E, C = 2, 256, 32, 512
    enc_out = jax.random.normal(k1, (B, S, E), dtype=jnp.float32)
    fc_w = jax.random.normal(k2, (E, C), dtype=jnp.float32) * 0.1
    fc_b = jax.random.normal(k3, (C,), dtype=jnp.float32) * 0.1

    # Reference logits matching the kernels' bf16-input / f32-accumulate MXU dot.
    logits_ref = jnp.dot(enc_out.astype(jnp.bfloat16), fc_w.astype(jnp.bfloat16),
                         preferred_element_type=jnp.float32) + fc_b[None, None, :]
    lp_ref = jax.nn.log_softmax(logits_ref, axis=-1)
    ref_idx = jnp.argmax(logits_ref, axis=-1).astype(jnp.int32)

    # --- forward (decoder=None): log_softmax(fc(encoder_outputs)), f32 output ---
    log_probs = pallas_forward_head(enc_out, fc_w, fc_b)
    jax.block_until_ready(log_probs)
    assert log_probs.shape == (B, S, C), log_probs.shape
    assert bool(jnp.allclose(log_probs, lp_ref, atol=2e-2, rtol=2e-2)), "fc+log_softmax mismatch"

    # --- forward head with bf16 log-prob output (halves the dominant HBM write) ---
    log_probs_bf16 = pallas_forward_head(enc_out, fc_w, fc_b, out_dtype=jnp.bfloat16)
    jax.block_until_ready(log_probs_bf16)
    assert log_probs_bf16.dtype == jnp.bfloat16
    assert bool(jnp.allclose(log_probs_bf16.astype(jnp.float32), lp_ref,
                             atol=8e-2, rtol=8e-2)), "bf16 head mismatch"

    # --- decode: argmax over classes (reference taken on the SAME log-probs) ---
    idx_from_lp = jnp.argmax(log_probs, axis=-1).astype(jnp.int32)

    # Forced small tiles -> multi-block S and multi-chunk D (exercises the running carry).
    preds_tiled = pallas_decode(log_probs, tile_s=128, tile_d=128)
    jax.block_until_ready(preds_tiled)
    assert preds_tiled.shape == (B, S), preds_tiled.shape
    assert preds_tiled.dtype == jnp.int32, preds_tiled.dtype
    assert bool(jnp.all(preds_tiled == idx_from_lp)), "tiled decode mismatch"

    # Auto-picked tiles.
    preds_auto = pallas_decode(log_probs)
    jax.block_until_ready(preds_auto)
    assert bool(jnp.all(preds_auto == idx_from_lp)), "auto-tiled decode mismatch"

    # bf16 HBM-read path (native-dtype chunk math in the kernel).
    lp_b = log_probs.astype(jnp.bfloat16)
    preds_b = pallas_decode(lp_b, tile_s=128, tile_d=128)
    jax.block_until_ready(preds_b)
    ref_b = jnp.argmax(lp_b.astype(jnp.float32), axis=-1).astype(jnp.int32)
    assert bool(jnp.all(preds_b == ref_b)), "bf16 decode mismatch"

    # --- recognize: fused fc + argmax (no log-prob materialization) ---
    rec = pallas_recognize(enc_out, fc_w, fc_b)
    jax.block_until_ready(rec)
    assert rec.shape == (B, S) and rec.dtype == jnp.int32
    agree = float(jnp.mean((rec == ref_idx).astype(jnp.float32)))
    assert agree > 0.999, f"fused recognize mismatch rate {1.0 - agree}"

    # Forced chunking to exercise the class-chunk carry path.
    rec_chunked = pallas_recognize(enc_out, fc_w, fc_b, tile_s=128, tile_c=128)
    jax.block_until_ready(rec_chunked)
    agree_c = float(jnp.mean((rec_chunked == ref_idx).astype(jnp.float32)))
    assert agree_c > 0.999, f"chunked fused recognize mismatch rate {1.0 - agree_c}"

    print("KERNEL_OK")
</pallas_src>

<mosaic_0001>
module attributes {stable_mosaic.version = 11 : i64} {
  func.func @_fc_log_softmax_kernel(%arg0: i32, %arg1: i32, %arg2: memref<1x256x32xf32, #tpu.memory_space<vmem>>, %arg3: memref<32x512xbf16, #tpu.memory_space<vmem>>, %arg4: memref<1x512xf32, #tpu.memory_space<vmem>>, %arg5: memref<1x256x512xf32, #tpu.memory_space<vmem>>) attributes {dimension_semantics = [#tpu.dimension_semantics<parallel>, #tpu.dimension_semantics<parallel>], iteration_bounds = array<i64: 2, 1>, scalar_prefetch = 0 : i64, scratch_operands = 0 : i64, tpu.core_type = #tpu.core_type<tc>, window_params = [{transform_indices = @transform_0, window_bounds = array<i64: 1, 256, 32>}, {pipeline_mode = #tpu.pipeline_mode<synchronous>, transform_indices = @transform_1, window_bounds = array<i64: 32, 512>}, {pipeline_mode = #tpu.pipeline_mode<synchronous>, transform_indices = @transform_2, window_bounds = array<i64: 1, 512>}, {transform_indices = @transform_3, window_bounds = array<i64: 1, 256, 512>}]} {
    %c0 = arith.constant 0 : index
    %c0_0 = arith.constant 0 : index
    %c0_1 = arith.constant 0 : index
    %0 = vector.load %arg2[%c0, %c0_0, %c0_1] : memref<1x256x32xf32, #tpu.memory_space<vmem>>, vector<1x256x32xf32>
    %1 = vector.shape_cast %0 : vector<1x256x32xf32> to vector<256x32xf32>
    %2 = arith.truncf %1 : vector<256x32xf32> to vector<256x32xbf16>
    %c0_2 = arith.constant 0 : index
    %c0_3 = arith.constant 0 : index
    %3 = vector.load %arg3[%c0_2, %c0_3] : memref<32x512xbf16, #tpu.memory_space<vmem>>, vector<32x512xbf16>
    %cst = arith.constant dense<0.000000e+00> : vector<256x512xf32>
    %4 = tpu.matmul %2, %3, %cst {dimension_numbers = #tpu.dot_dimension_numbers<[1], [0], [0], [1], [0, 0, 1, 1], [], []>} : vector<256x32xbf16>, vector<32x512xbf16>, vector<256x512xf32> -> vector<256x512xf32>
    %c0_4 = arith.constant 0 : index
    %c0_5 = arith.constant 0 : index
    %5 = vector.load %arg4[%c0_4, %c0_5] : memref<1x512xf32, #tpu.memory_space<vmem>>, vector<1x512xf32>
    %6 = vector.broadcast %5 : vector<1x512xf32> to vector<256x512xf32>
    %7 = arith.addf %4, %6 : vector<256x512xf32>
    %cst_6 = arith.constant dense<0xFF800000> : vector<256xf32>
    %8 = vector.multi_reduction <maximumf>, %7, %cst_6 [1] : vector<256x512xf32> to vector<256xf32>
    %9 = vector.shape_cast %8 : vector<256xf32> to vector<256x1xf32>
    %10 = vector.broadcast %9 : vector<256x1xf32> to vector<256x512xf32>
    %11 = arith.subf %7, %10 : vector<256x512xf32>
    %12 = math.exp %11 : vector<256x512xf32>
    %cst_7 = arith.constant dense<0.000000e+00> : vector<256xf32>
    %13 = vector.multi_reduction <add>, %12, %cst_7 [1] : vector<256x512xf32> to vector<256xf32>
    %14 = vector.shape_cast %13 : vector<256xf32> to vector<256x1xf32>
    %15 = math.log %14 : vector<256x1xf32>
    %16 = vector.broadcast %15 : vector<256x1xf32> to vector<256x512xf32>
    %17 = arith.subf %11, %16 : vector<256x512xf32>
    %c0_8 = arith.constant 0 : index
    %c0_9 = arith.constant 0 : index
    %c0_10 = arith.constant 0 : index
    %18 = vector.load %arg5[%c0_8, %c0_9, %c0_10] : memref<1x256x512xf32, #tpu.memory_space<vmem>>, vector<1x256x512xf32>
    %19 = vector.shape_cast %18 : vector<1x256x512xf32> to vector<256x512xf32>
    %20 = vector.shape_cast %17 : vector<256x512xf32> to vector<1x256x512xf32>
    tpu.vector_store %arg5[%c0_8, %c0_9, %c0_10], %20 {strides = array<i32>} : memref<1x256x512xf32, #tpu.memory_space<vmem>>, vector<1x256x512xf32>,
    return
  }
  func.func @transform_0(%arg0: i32, %arg1: i32) -> (i32, i32, i32) {
    %c0_i32 = arith.constant 0 : i32
    %c0_i32_0 = arith.constant 0 : i32
    return %arg0, %arg1, %c0_i32 : i32, i32, i32
  }
  func.func @transform_1(%arg0: i32, %arg1: i32) -> (i32, i32) {
    %c0_i32 = arith.constant 0 : i32
    %c0_i32_0 = arith.constant 0 : i32
    %c0_i32_1 = arith.constant 0 : i32
    return %c0_i32, %c0_i32_0 : i32, i32
  }
  func.func @transform_2(%arg0: i32, %arg1: i32) -> (i32, i32) {
    %c0_i32 = arith.constant 0 : i32
    %c0_i32_0 = arith.constant 0 : i32
    %c0_i32_1 = arith.constant 0 : i32
    return %c0_i32, %c0_i32_0 : i32, i32
  }
  func.func @transform_3(%arg0: i32, %arg1: i32) -> (i32, i32, i32) {
    %c0_i32 = arith.constant 0 : i32
    %c0_i32_0 = arith.constant 0 : i32
    return %arg0, %arg1, %c0_i32 : i32, i32, i32
  }
}

module attributes {stable_mosaic.version = 11 : i64} {
  func.func @_fc_log_softmax_kernel(%arg0: i32, %arg1: i32, %arg2: memref<1x256x32xf32, #tpu.memory_space<vmem>>, %arg3: memref<32x512xbf16, #tpu.memory_space<vmem>>, %arg4: memref<1x512xf32, #tpu.memory_space<vmem>>, %arg5: memref<1x256x512xf32, #tpu.memory_space<vmem>>) attributes {dimension_semantics = [#tpu.dimension_semantics<parallel>, #tpu.dimension_semantics<parallel>], iteration_bounds = array<i64: 2, 1>, scalar_prefetch = 0 : i64, scratch_operands = 0 : i64, tpu.core_type = #tpu.core_type<tc>, window_params = [{transform_indices = @transform_0, window_bounds = array<i64: 1, 256, 32>}, {pipeline_mode = #tpu.pipeline_mode<synchronous>, transform_indices = @transform_1, window_bounds = array<i64: 32, 512>}, {pipeline_mode = #tpu.pipeline_mode<synchronous>, transform_indices = @transform_2, window_bounds = array<i64: 1, 512>}, {transform_indices = @transform_3, window_bounds = array<i64: 1, 256, 512>}]} {
    %c0 = arith.constant 0 : index
    %c0_0 = arith.constant 0 : index
    %c0_1 = arith.constant 0 : index
    %0 = vector.load %arg2[%c0, %c0_0, %c0_1] : memref<1x256x32xf32, #tpu.memory_space<vmem>>, vector<1x256x32xf32>
    %1 = vector.shape_cast %0 : vector<1x256x32xf32> to vector<256x32xf32>
    %2 = arith.truncf %1 : vector<256x32xf32> to vector<256x32xbf16>
    %c0_2 = arith.constant 0 : index
    %c0_3 = arith.constant 0 : index
    %3 = vector.load %arg3[%c0_2, %c0_3] : memref<32x512xbf16, #tpu.memory_space<vmem>>, vector<32x512xbf16>
    %cst = arith.constant dense<0.000000e+00> : vector<256x512xf32>
    %4 = tpu.matmul %2, %3, %cst {dimension_numbers = #tpu.dot_dimension_numbers<[1], [0], [0], [1], [0, 0, 1, 1], [], []>} : vector<256x32xbf16>, vector<32x512xbf16>, vector<256x512xf32> -> vector<256x512xf32>
    %c0_4 = arith.constant 0 : index
    %c0_5 = arith.constant 0 : index
    %5 = vector.load %arg4[%c0_4, %c0_5] : memref<1x512xf32, #tpu.memory_space<vmem>>, vector<1x512xf32>
    %6 = vector.broadcast %5 : vector<1x512xf32> to vector<256x512xf32>
    %7 = arith.addf %4, %6 : vector<256x512xf32>
    %cst_6 = arith.constant dense<0xFF800000> : vector<256xf32>
    %8 = vector.multi_reduction <maximumf>, %7, %cst_6 [1] : vector<256x512xf32> to vector<256xf32>
    %9 = vector.shape_cast %8 : vector<256xf32> to vector<256x1xf32>
    %10 = vector.broadcast %9 : vector<256x1xf32> to vector<256x512xf32>
    %11 = arith.subf %7, %10 : vector<256x512xf32>
    %12 = math.exp %11 : vector<256x512xf32>
    %cst_7 = arith.constant dense<0.000000e+00> : vector<256xf32>
    %13 = vector.multi_reduction <add>, %12, %cst_7 [1] : vector<256x512xf32> to vector<256xf32>
    %14 = vector.shape_cast %13 : vector<256xf32> to vector<256x1xf32>
    %15 = math.log %14 : vector<256x1xf32>
    %16 = vector.broadcast %15 : vector<256x1xf32> to vector<256x512xf32>
    %17 = arith.subf %11, %16 : vector<256x512xf32>
    %c0_8 = arith.constant 0 : index
    %c0_9 = arith.constant 0 : index
    %c0_10 = arith.constant 0 : index
    %18 = vector.load %arg5[%c0_8, %c0_9, %c0_10] : memref<1x256x512xf32, #tpu.memory_space<vmem>>, vector<1x256x512xf32>
    %19 = vector.shape_cast %18 : vector<1x256x512xf32> to vector<256x512xf32>
    %20 = vector.shape_cast %17 : vector<256x512xf32> to vector<1x256x512xf32>
    tpu.vector_store %arg5[%c0_8, %c0_9, %c0_10], %20 {strides = array<i32>} : memref<1x256x512xf32, #tpu.memory_space<vmem>>, vector<1x256x512xf32>,
    return
  }
  func.func @transform_0(%arg0: i32, %arg1: i32) -> (i32, i32, i32) {
    %c0_i32 = arith.constant 0 : i32
    %c0_i32_0 = arith.constant 0 : i32
    return %arg0, %arg1, %c0_i32 : i32, i32, i32
  }
  func.func @transform_1(%arg0: i32, %arg1: i32) -> (i32, i32) {
    %c0_i32 = arith.constant 0 : i32
    %c0_i32_0 = arith.constant 0 : i32
    %c0_i32_1 = arith.constant 0 : i32
    return %c0_i32, %c0_i32_0 : i32, i32
  }
  func.func @transform_2(%arg0: i32, %arg1: i32) -> (i32, i32) {
    %c0_i32 = arith.constant 0 : i32
    %c0_i32_0 = arith.constant 0 : i32
    %c0_i32_1 = arith.constant 0 : i32
    return %c0_i32, %c0_i32_0 : i32, i32
  }
  func.func @transform_3(%arg0: i32, %arg1: i32) -> (i32, i32, i32) {
    %c0_i32 = arith.constant 0 : i32
    %c0_i32_0 = arith.constant 0 : i32
    return %arg0, %arg1, %c0_i32 : i32, i32, i32
  }
}

</mosaic_0001>

<bundles_post_ra>
// kernel: tpu_custom_call.1
= control target key start
LH: loop header
LB: loop body
LE: loop exit
PB: predicated region body
PF: predicated region fallthrough
CT: control target
= control target key end

     0   :  { %8 = vsyncpa [#allocation3], 0  ;;  %s4009_s0 = inlined_call_operand.vmem [shape: f32[2,256,32], index: 0, kind: input, shape index: {}]   ;;  %s4010_s1 = inlined_call_operand.vmem [shape: bf16[32,512], index: 1, kind: input, shape index: {}]   ;;  %s4011_s2 = inlined_call_operand.vmem [shape: f32[1,512], index: 2, kind: input, shape index: {}]   ;;  %s4012_s3 = inlined_call_operand.hbm [shape: f32[2,256,512], index: 3, kind: output, shape index: {}]  }
   0x1   :  { %10 = vsyncpa [#allocation3 + $0x1], 0  ;;  %s2432_s12 = smov 0   ;;  %s2434_s13 = smov 0  }
   0x2   :  { %s2436_s14 = smov 0   ;;  %s2438_s15 = smov 0  }
   0x3   :  { %s2440_s16 = smov 0   ;;  %s2442_s17 = smov 0  }
   0x4 LB: > { %s1834_s18 = sadd.s32 4294967295, %s2408_s17   ;;  %s1835_s19 = sadd.s32 4294967294, %s2408_s17   ;;  %s2408_s17 = sphi %s2442_s17, %s16_s17   ;;  %s2404_s16 = sphi %s2440_s16, %s4436_s16   ;;  %s2400_s15 = sphi %s2438_s15, %s4435_s15   ;;  %s2396_s14 = sphi %s2436_s14, %s4434_s14   ;;  %s2392_s13 = sphi %s2434_s13, %s4433_s13   ;;  %s2388_s12 = sphi %s2432_s12, %s4432_s12  }
   0x5   : > { %s28_s20 = sadd.s32 1, %s2404_s16  ;;  %s107_s21 = sadd.s32 1, %s2396_s14 }
   0x6   : > { %p30_p0 = scmp.ge.s32.totalorder %s28_s20, 2  ;;  %p117_p1 = scmp.ne.s32.totalorder %s2396_s14, %s2392_s13 }
   0x7   : > { %p118_p2 = scmp.eq.s32.totalorder %s1834_s18, 1  ;;  %p123_p3 = scmp.ne.s32.totalorder %s2392_s13, %s2388_s12 }
   0x8   : > { %s4438_s20 = smov (%p30_p0, %s28_s20), 0  ;;  %p124_p5 = scmp.eq.s32.totalorder %s1835_s19, 1 }
   0x9   : > { %p2472_p4 = por %p118_p2, %p117_p1  ;;  %s102_s23 = ssub.s32 %s2404_s16, %s4438_s20 }
   0xa   : > { %p1838_p6 = scmp.ge.s32.totalorder %s2408_s17, 1  ;;  %p105_p7 = scmp.eq.s32.totalorder %s102_s23, 0 }
   0xb   : > { %p2479_p8 = por %p124_p5, %p123_p3  ;;  %p161_p9 = scmp.lt.s32.totalorder %s2408_s17, 3 }
   0xc   : > { %s2485_s25 = scalar_select %p105_p7, %s2396_s14, %s107_s21  }
   0xd   : > { %p162_p10 = pnand %p1838_p6, %p161_p9 }
   0xf   : > { %165 = sbr.rel (%p162_p10) target bundleno = 691 (0x2b3), region = 32 }
  0x14   : > { %v1860_v0 = vld [vmem:[%s4010_s1 + $0x20] sm:$0xf]  ;;  %v1950_v1 = vld [vmem:[%s4010_s1 + $0x2c] sm:$0xf0]  ;;  %v1948_v2 = vld [vmem:[%s4010_s1 + $0x24] sm:$0xf] }
  0x15   : > { %v1861_v3 = vor.u32 %v1950_v1, %v1860_v0  ;;  %v1862_v4 = vld [vmem:[%s4010_s1 + $0x30] sm:$0xf0]  ;;  %v1868_v5 = vld [vmem:[%s4010_s1 + $0x28] sm:$0xf]  ;;  %v1951_v6 = vld [vmem:[%s4010_s1 + $0x34] sm:$0xf0] }
  0x16   : > { %v1865_v7 = vor.u32 %v1948_v2, %v1862_v4  ;;  %v1869_v8 = vor.u32 %v1951_v6, %v1868_v5  ;;  %v1949_v9 = vld [vmem:[%s4010_s1 + $0x2c] sm:$0xf]  ;;  %v1870_v10 = vld [vmem:[%s4010_s1 + $0x38] sm:$0xf0]  ;;  %v1844_v11 = vld [vmem:[%s4010_s1] sm:$0xf] }
  0x17   : > { %362 = vmatpush.bf16.msra.mxu0 %v1861_v3  ;;  %v1873_v12 = vor.u32 %v1949_v9, %v1870_v10  ;;  %v1946_v13 = vld [vmem:[%s4010_s1 + $0xc] sm:$0xf0]  ;;  %v1944_v14 = vld [vmem:[%s4010_s1 + $0x4] sm:$0xf]  ;;  %v1846_v15 = vld [vmem:[%s4010_s1 + $0x10] sm:$0xf0] }
  0x18   : > { %451 = vmatpush.bf16.msra.mxu1 %v1865_v7  ;;  %540 = vmatpush.bf16.msra.mxu2 %v1869_v8  ;;  %v1845_v16 = vor.u32 %v1946_v13, %v1844_v11  ;;  %v1849_v17 = vor.u32 %v1944_v14, %v1846_v15  ;;  %v1852_v18 = vld [vmem:[%s4010_s1 + $0x8] sm:$0xf]  ;;  %v1947_v19 = vld [vmem:[%s4010_s1 + $0x14] sm:$0xf0]  ;;  %v1945_v20 = vld [vmem:[%s4010_s1 + $0xc] sm:$0xf] }
  0x19   : > { %629 = vmatpush.bf16.msra.mxu3 %v1873_v12  ;;  %v1853_v21 = vor.u32 %v1947_v19, %v1852_v18  ;;  %v1854_v22 = vld [vmem:[%s4010_s1 + $0x18] sm:$0xf0]  ;;  %p190_p11 = scmp.lt.s32.totalorder %s2400_s15, 1  ;;  %vm307_vm0 = vcmask 261120   ;;  %v257_v48 = vld [vmem:[%s4011_s2] sm:$0xf] }
  0x1a   : > { %v1857_v23 = vor.u32 %v1945_v20, %v1854_v22  ;;  %v2595_v51 = vperm.slane %v257_v48, 0  ;;  %v2597_v52 = vperm.slane %v257_v48, 1  ;;  %v2609_v58 = vperm.slane %v257_v48, 2  ;;  %s186_s4 = sand.u32 1, %s2392_s13   ;;  %s1952_s7 = sshll.u32 %s2400_s15, 10 }
  0x1b   : > { %363 = vmatpush.bf16.msra.mxu0 %v1845_v16  ;;  %s191_s21 = scalar_select %p190_p11, %s2400_s15, 1  ;;  %v2611_v59 = vperm.slane %v257_v48, 3 }
  0x1c   : > { %452 = vmatpush.bf16.msra.mxu1 %v1849_v17  ;;  %541 = vmatpush.bf16.msra.mxu2 %v1853_v21  ;;  %s1839_s5 = sshll.u32 %s186_s4, 10  ;;  %s1751_s10 = scalar_lea.hbm %s4012_s3, %s1952_s7 }
  0x1d   : > { %630 = vmatpush.bf16.msra.mxu3 %v1857_v23  ;;  %s1943_s23 = sshll.u32 %s191_s21, 8  ;;  %s3490_s6 = scalar_lea.vmem [#allocation2], %s1839_s5 }
  0x1e   : > { %s2540_s28 = scalar_lea.vmem %s4009_s0, %s1943_s23  ;;  %s1752_s11 = sshll.u32 %s3490_s6, 4  ;;  %s1753_s11 = int_to_ptr.vmem [resolvable:$true] %s1752_s11 }
  0x1f   : > { %v201_v24 = vld [vmem:[%s2540_s28] sm:$0xff]  ;;  %v202_v25 = vld [vmem:[%s2540_s28 + $0x8] sm:$0xff]  ;;  %v203_v27 = vld [vmem:[%s2540_s28 + $0x10] sm:$0xff]  ;;  %s1754_s18 = sshll.u32 %s1751_s10, 4  ;;  %s1737_s15 = scalar_lea.sflag [#allocation3], %s186_s4  ;;  %s1755_s18 = int_to_ptr.hbm [resolvable:$true] %s1754_s18 }
  0x20   : > { %v233_v26 = vpack.c.bf16 %v202_v25, %v201_v24  ;;  %v204_v28 = vld [vmem:[%s2540_s28 + $0x18] sm:$0xff]  ;;  %v205_v30 = vld [vmem:[%s2540_s28 + $0x20] sm:$0xff]  ;;  %v206_v31 = vld [vmem:[%s2540_s28 + $0x28] sm:$0xff]  ;;  %s2344_s19 = sshra.s32 %s1755_s18, 4  ;;  %s2350_s27 = scalar_lea.hbm %s4012_s3, 2048  ;;  %s2345_s19 = int_to_ptr.hbm [resolvable:$true] %s2344_s19 }
  0x21   : > { %v234_v29 = vpack.c.bf16 %v204_v28, %v203_v27  ;;  %v235_v32 = vpack.c.bf16 %v206_v31, %v205_v30  ;;  %v207_v33 = vld [vmem:[%s2540_s28 + $0x30] sm:$0xff]  ;;  %v208_v34 = vld [vmem:[%s2540_s28 + $0x38] sm:$0xff]  ;;  %v209_v36 = vld [vmem:[%s2540_s28 + $0x40] sm:$0xff]  ;;  %s2346_s21 = scalar_lea.hbm %s2345_s19, 1024  ;;  %p2351_p1 = scmp.lt.s32.totalorder %s2345_s19, %s4012_s3 }
  0x22   : > { %1874 = vmatmul.msk.bf16.vlgmr.msra.gmra.mxu0 %vm307_vm0, %v233_v26  ;;  %1890 = vmatmul.msk.bf16.vlgmr.msra.gmra.mxu1 %vm307_vm0, %v233_v26  ;;  %v236_v35 = vpack.c.bf16 %v208_v34, %v207_v33  ;;  %v210_v37 = vld [vmem:[%s2540_s28 + $0x48] sm:$0xff]  ;;  %v211_v39 = vld [vmem:[%s2540_s28 + $0x50] sm:$0xff]  ;;  %v212_v40 = vld [vmem:[%s2540_s28 + $0x58] sm:$0xff]  ;;  %p2347_p12 = scmp.ne.s32.totalorder %s2345_s19, %s2346_s21  ;;  %p2352_p2 = scmp.lt.s32.totalorder %s2350_s27, %s2346_s21 }
  0x23   : > { %1906 = vmatmul.msk.bf16.vlgmr.msra.gmra.mxu2 %vm307_vm0, %v233_v26  ;;  %1922 = vmatmul.msk.bf16.vlgmr.msra.gmra.mxu3 %vm307_vm0, %v233_v26  ;;  %v237_v38 = vpack.c.bf16 %v210_v37, %v209_v36  ;;  %v238_v41 = vpack.c.bf16 %v212_v40, %v211_v39  ;;  %v213_v42 = vld [vmem:[%s2540_s28 + $0x60] sm:$0xff]  ;;  %v214_v43 = vld [vmem:[%s2540_s28 + $0x68] sm:$0xff]  ;;  %v215_v45 = vld [vmem:[%s2540_s28 + $0x70] sm:$0xff] }
  0x24   : > { %v239_v44 = vpack.c.bf16 %v214_v43, %v213_v42  ;;  %v216_v46 = vld [vmem:[%s2540_s28 + $0x78] sm:$0xff]  ;;  %v217_v49 = vld [vmem:[%s2540_s28 + $0x80] sm:$0xff]  ;;  %v218_v50 = vld [vmem:[%s2540_s28 + $0x88] sm:$0xff]  ;;  %p2348_p13 = pnand %p2347_p12, %p2472_p4  ;;  %p2353_p3 = por %p2352_p2, %p2351_p1 }
  0x25   : > { %v240_v47 = vpack.c.bf16 %v216_v46, %v215_v45  ;;  %v241_v53 = vpack.c.bf16 %v218_v50, %v217_v49  ;;  %v219_v7 = vld [vmem:[%s2540_s28 + $0x90] sm:$0xff]  ;;  %v220_v8 = vld [vmem:[%s2540_s28 + $0x98] sm:$0xff]  ;;  %v222_v33 = vld [vmem:[%s2540_s28 + $0xa8] sm:$0xff] }
  0x26   : > { %v242_v11 = vpack.c.bf16 %v220_v8, %v219_v7  ;;  %p2349_p0 = pneg %p2348_p13 }
  0x28   : > { %p2354_p5 = pnand %p2353_p3, %p2349_p0 }
  0x32   : > { %1875 = vmatmul.msk.bf16.gmra.mxu0 %vm307_vm0, %v234_v29  ;;  %1891 = vmatmul.msk.bf16.gmra.mxu1 %vm307_vm0, %v234_v29 }
  0x33   : > { %1907 = vmatmul.msk.bf16.gmra.mxu2 %vm307_vm0, %v234_v29  ;;  %1923 = vmatmul.msk.bf16.gmra.mxu3 %vm307_vm0, %v234_v29 }
  0x42   : > { %1876 = vmatmul.msk.bf16.gmra.mxu0 %vm307_vm0, %v235_v32  ;;  %1892 = vmatmul.msk.bf16.gmra.mxu1 %vm307_vm0, %v235_v32 }
  0x43   : > { %1908 = vmatmul.msk.bf16.gmra.mxu2 %vm307_vm0, %v235_v32  ;;  %1924 = vmatmul.msk.bf16.gmra.mxu3 %vm307_vm0, %v235_v32  ;;  %v221_v32 = vld [vmem:[%s2540_s28 + $0xa0] sm:$0xff] }
  0x44   : > { %v243_v36 = vpack.c.bf16 %v222_v33, %v221_v32 }
  0x52   : > { %1877 = vmatmul.msk.bf16.gmra.mxu0 %vm307_vm0, %v236_v35  ;;  %1893 = vmatmul.msk.bf16.gmra.mxu1 %vm307_vm0, %v236_v35 }
  0x53   : > { %1909 = vmatmul.msk.bf16.gmra.mxu2 %vm307_vm0, %v236_v35  ;;  %1925 = vmatmul.msk.bf16.gmra.mxu3 %vm307_vm0, %v236_v35 }
  0x62   : > { %1878 = vmatmul.msk.bf16.gmra.mxu0 %vm307_vm0, %v237_v38  ;;  %1894 = vmatmul.msk.bf16.gmra.mxu1 %vm307_vm0, %v237_v38 }
  0x63   : > { %1910 = vmatmul.msk.bf16.gmra.mxu2 %vm307_vm0, %v237_v38  ;;  %1926 = vmatmul.msk.bf16.gmra.mxu3 %vm307_vm0, %v237_v38 }
  0x72   : > { %1879 = vmatmul.msk.bf16.gmra.mxu0 %vm307_vm0, %v238_v41  ;;  %1895 = vmatmul.msk.bf16.gmra.mxu1 %vm307_vm0, %v238_v41 }
  0x73   : > { %1911 = vmatmul.msk.bf16.gmra.mxu2 %vm307_vm0, %v238_v41  ;;  %1927 = vmatmul.msk.bf16.gmra.mxu3 %vm307_vm0, %v238_v41 }
  0x82   : > { %1880 = vmatmul.msk.bf16.gmra.mxu0 %vm307_vm0, %v239_v44  ;;  %1896 = vmatmul.msk.bf16.gmra.mxu1 %vm307_vm0, %v239_v44 }
  0x83   : > { %1912 = vmatmul.msk.bf16.gmra.mxu2 %vm307_vm0, %v239_v44  ;;  %1928 = vmatmul.msk.bf16.gmra.mxu3 %vm307_vm0, %v239_v44 }
  0x92   : > { %1881 = vmatmul.msk.bf16.gmra.mxu0 %vm307_vm0, %v240_v47  ;;  %1897 = vmatmul.msk.bf16.gmra.mxu1 %vm307_vm0, %v240_v47 }
  0x93   : > { %1913 = vmatmul.msk.bf16.gmra.mxu2 %vm307_vm0, %v240_v47  ;;  %1929 = vmatmul.msk.bf16.gmra.mxu3 %vm307_vm0, %v240_v47 }
  0x9f   : > { %v365_v54 = vpop.f32.mrf.mxu0  ;;  %v454_v55 = vpop.f32.mrf.mxu1 }
  0xa0   : > { %v2600_v56 = vadd.f32 %v365_v54, %v2595_v51  ;;  %v2603_v57 = vadd.f32 %v454_v55, %v2597_v52 }
  0xa2   : > { %1882 = vmatmul.msk.bf16.gmra.mxu0 %vm307_vm0, %v241_v53  ;;  %1898 = vmatmul.msk.bf16.gmra.mxu1 %vm307_vm0, %v241_v53  ;;  %v712_v60 = vmax.f32 %v2600_v56, %v2603_v57 }
  0xa3   : > { %1914 = vmatmul.msk.bf16.gmra.mxu2 %vm307_vm0, %v241_v53  ;;  %1930 = vmatmul.msk.bf16.gmra.mxu3 %vm307_vm0, %v241_v53 }
  0xa6   : > { %v543_v61 = vpop.f32.mrf.mxu2  ;;  %v632_v62 = vpop.f32.mrf.mxu3 }
  0xa7   : > { %v2616_v63 = vadd.f32 %v543_v61, %v2609_v58  ;;  %v2619_v0 = vadd.f32 %v632_v62, %v2611_v59  ;;  %v367_v1 = vpop.f32.mrf.mxu0  ;;  %v456_v2 = vpop.f32.mrf.mxu1 }
  0xa8   : > { %v2623_v4 = vadd.f32 %v367_v1, %v2595_v51  ;;  %v2626_v5 = vadd.f32 %v456_v2, %v2597_v52  ;;  %v223_v1 = vld [vmem:[%s2540_s28 + $0xb0] sm:$0xff]  ;;  %v224_v2 = vld [vmem:[%s2540_s28 + $0xb8] sm:$0xff] }
  0xa9   : > { %v713_v3 = vmax.f32 %v712_v60, %v2616_v63  ;;  %v244_v7 = vpack.c.bf16 %v224_v2, %v223_v1 }
  0xaa   : > { %v717_v12 = vmax.f32 %v2623_v4, %v2626_v5 }
  0xab   : > { %v714_v6 = vmax.f32 %v713_v3, %v2619_v0 }
  0xad   : > { %715 = vmax.xlane.f32.xlu0 %v714_v6 }
  0xae   : > { %v545_v9 = vpop.f32.mrf.mxu2  ;;  %v634_v10 = vpop.f32.mrf.mxu3 }
  0xaf   : > { %v2634_v13 = vadd.f32 %v545_v9, %v2609_v58  ;;  %v370_v14 = vpop.f32.mrf.mxu0  ;;  %v459_v15 = vpop.f32.mrf.mxu1  ;;  %v2637_v16 = vadd.f32 %v634_v10, %v2611_v59 }
  0xb0   : > { %v2640_v17 = vadd.f32 %v370_v14, %v2595_v51  ;;  %v2643_v18 = vadd.f32 %v459_v15, %v2597_v52 }
  0xb1   : > { %v718_v19 = vmax.f32 %v717_v12, %v2634_v13 }
  0xb2   : > { %1883 = vmatmul.msk.bf16.gmra.mxu0 %vm307_vm0, %v242_v11  ;;  %1899 = vmatmul.msk.bf16.gmra.mxu1 %vm307_vm0, %v242_v11  ;;  %v722_v21 = vmax.f32 %v2640_v17, %v2643_v18 }
  0xb3   : > { %1915 = vmatmul.msk.bf16.gmra.mxu2 %vm307_vm0, %v242_v11  ;;  %1931 = vmatmul.msk.bf16.gmra.mxu3 %vm307_vm0, %v242_v11  ;;  %v719_v20 = vmax.f32 %v718_v19, %v2637_v16 }
  0xb5   : > { %720 = vmax.xlane.f32.xlu0 %v719_v20 }
  0xb6   : > { %v548_v22 = vpop.f32.mrf.mxu2  ;;  %v637_v23 = vpop.f32.mrf.mxu3 }
  0xb7   : > { %v2654_v24 = vadd.f32 %v548_v22, %v2609_v58  ;;  %v2657_v25 = vadd.f32 %v637_v23, %v2611_v59  ;;  %v372_v26 = vpop.f32.mrf.mxu0  ;;  %v461_v27 = vpop.f32.mrf.mxu1 }
  0xb8   : > { %v2661_v29 = vadd.f32 %v372_v26, %v2595_v51  ;;  %v2664_v30 = vadd.f32 %v461_v27, %v2597_v52 }
  0xb9   : > { %v723_v28 = vmax.f32 %v722_v21, %v2654_v24 }
  0xba   : > { %v727_v37 = vmax.f32 %v2661_v29, %v2664_v30 }
  0xbb   : > { %v724_v31 = vmax.f32 %v723_v28, %v2657_v25 }
  0xbd   : > { %725 = vmax.xlane.f32.xlu1 %v724_v31 }
  0xbe   : > { %v550_v34 = vpop.f32.mrf.mxu2  ;;  %v639_v35 = vpop.f32.mrf.mxu3 }
  0xbf   : > { %v2672_v38 = vadd.f32 %v550_v34, %v2609_v58  ;;  %v375_v39 = vpop.f32.mrf.mxu0  ;;  %v464_v40 = vpop.f32.mrf.mxu1  ;;  %v2675_v41 = vadd.f32 %v639_v35, %v2611_v59 }
  0xc0   : > { %v2678_v42 = vadd.f32 %v375_v39, %v2595_v51  ;;  %v2681_v43 = vadd.f32 %v464_v40, %v2597_v52 }
  0xc1   : > { %v728_v44 = vmax.f32 %v727_v37, %v2672_v38  ;;  %v226_v37 = vld [vmem:[%s2540_s28 + $0xc8] sm:$0xff] }
  0xc2   : > { %1884 = vmatmul.msk.bf16.gmra.mxu0 %vm307_vm0, %v243_v36  ;;  %1900 = vmatmul.msk.bf16.gmra.mxu1 %vm307_vm0, %v243_v36  ;;  %v732_v46 = vmax.f32 %v2678_v42, %v2681_v43 }
  0xc3   : > { %1916 = vmatmul.msk.bf16.gmra.mxu2 %vm307_vm0, %v243_v36  ;;  %1932 = vmatmul.msk.bf16.gmra.mxu3 %vm307_vm0, %v243_v36  ;;  %v729_v45 = vmax.f32 %v728_v44, %v2675_v41  ;;  %v225_v36 = vld [vmem:[%s2540_s28 + $0xc0] sm:$0xff] }
  0xc4   : > { %v245_v44 = vpack.c.bf16 %v226_v37, %v225_v36 }
  0xc5   : > { %730 = vmax.xlane.f32.xlu1 %v729_v45 }
  0xc6   : > { %v553_v47 = vpop.f32.mrf.mxu2  ;;  %v642_v48 = vpop.f32.mrf.mxu3 }
  0xc7   : > { %v2692_v49 = vadd.f32 %v553_v47, %v2609_v58  ;;  %v2695_v50 = vadd.f32 %v642_v48, %v2611_v59  ;;  %v377_v53 = vpop.f32.mrf.mxu0  ;;  %v466_v54 = vpop.f32.mrf.mxu1 }
  0xc8   : > { %v2699_v60 = vadd.f32 %v377_v53, %v2595_v51  ;;  %v2702_v61 = vadd.f32 %v466_v54, %v2597_v52 }
  0xc9   : > { %v733_v55 = vmax.f32 %v732_v46, %v2692_v49 }
  0xca   : > { %v737_v8 = vmax.f32 %v2699_v60, %v2702_v61 }
  0xcb   : > { %v734_v62 = vmax.f32 %v733_v55, %v2695_v50 }
  0xcd   : > { %735 = vmax.xlane.f32.xlu2 %v734_v62 }
  0xce   : > { %v555_v3 = vpop.f32.mrf.mxu2  ;;  %v644_v6 = vpop.f32.mrf.mxu3 }
  0xcf   : > { %v2710_v9 = vadd.f32 %v555_v3, %v2609_v58  ;;  %v380_v10 = vpop.f32.mrf.mxu0  ;;  %v469_v11 = vpop.f32.mrf.mxu1  ;;  %v2713_v12 = vadd.f32 %v644_v6, %v2611_v59 }
  0xd0   : > { %v2716_v14 = vadd.f32 %v380_v10, %v2595_v51  ;;  %v2719_v15 = vadd.f32 %v469_v11, %v2597_v52 }
  0xd1   : > { %v738_v19 = vmax.f32 %v737_v8, %v2710_v9 }
  0xd2   : > { %1885 = vmatmul.msk.bf16.gmra.mxu0 %vm307_vm0, %v244_v7  ;;  %1901 = vmatmul.msk.bf16.gmra.mxu1 %vm307_vm0, %v244_v7  ;;  %v742_v21 = vmax.f32 %v2716_v14, %v2719_v15 }
  0xd3   : > { %1917 = vmatmul.msk.bf16.gmra.mxu2 %vm307_vm0, %v244_v7  ;;  %1933 = vmatmul.msk.bf16.gmra.mxu3 %vm307_vm0, %v244_v7  ;;  %v739_v20 = vmax.f32 %v738_v19, %v2713_v12 }
  0xd5   : > { %740 = vmax.xlane.f32.xlu2 %v739_v20 }
  0xd6   : > { %v558_v22 = vpop.f32.mrf.mxu2  ;;  %v647_v23 = vpop.f32.mrf.mxu3 }
  0xd7   : > { %v2730_v26 = vadd.f32 %v558_v22, %v2609_v58  ;;  %v2733_v27 = vadd.f32 %v647_v23, %v2611_v59  ;;  %v382_v28 = vpop.f32.mrf.mxu0  ;;  %v471_v31 = vpop.f32.mrf.mxu1  ;;  %v227_v23 = vld [vmem:[%s2540_s28 + $0xd0] sm:$0xff] }
  0xd8   : > { %v2737_v33 = vadd.f32 %v382_v28, %v2595_v51  ;;  %v2740_v34 = vadd.f32 %v471_v31, %v2597_v52  ;;  %v228_v28 = vld [vmem:[%s2540_s28 + $0xd8] sm:$0xff] }
  0xd9   : > { %v743_v32 = vmax.f32 %v742_v21, %v2730_v26 }
  0xda   : > { %v747_v45 = vmax.f32 %v2737_v33, %v2740_v34 }
  0xdb   : > { %v744_v35 = vmax.f32 %v743_v32, %v2733_v27 }
  0xdd   : > { %745 = vmax.xlane.f32.xlu0 %v744_v35  ;;  %v246_v35 = vpack.c.bf16 %v228_v28, %v227_v23 }
  0xde   : > { %v560_v39 = vpop.f32.mrf.mxu2  ;;  %v649_v40 = vpop.f32.mrf.mxu3 }
  0xdf   : > { %v2748_v46 = vadd.f32 %v560_v39, %v2609_v58  ;;  %v385_v47 = vpop.f32.mrf.mxu0  ;;  %v474_v48 = vpop.f32.mrf.mxu1  ;;  %v2751_v53 = vadd.f32 %v649_v40, %v2611_v59 }
  0xe0   : > { %v2754_v54 = vadd.f32 %v385_v47, %v2595_v51  ;;  %v2757_v55 = vadd.f32 %v474_v48, %v2597_v52 }
  0xe1   : > { %v748_v62 = vmax.f32 %v747_v45, %v2748_v46 }
  0xe2   : > { %1886 = vmatmul.msk.bf16.gmra.mxu0 %vm307_vm0, %v245_v44  ;;  %1902 = vmatmul.msk.bf16.gmra.mxu1 %vm307_vm0, %v245_v44  ;;  %v752_v2 = vmax.f32 %v2754_v54, %v2757_v55 }
  0xe3   : > { %1918 = vmatmul.msk.bf16.gmra.mxu2 %vm307_vm0, %v245_v44  ;;  %1934 = vmatmul.msk.bf16.gmra.mxu3 %vm307_vm0, %v245_v44  ;;  %v749_v1 = vmax.f32 %v748_v62, %v2751_v53 }
  0xe5   : > { %750 = vmax.xlane.f32.xlu1 %v749_v1 }
  0xe6   : > { %v563_v3 = vpop.f32.mrf.mxu2  ;;  %v652_v6 = vpop.f32.mrf.mxu3 }
  0xe7   : > { %v2768_v7 = vadd.f32 %v563_v3, %v2609_v58  ;;  %v2771_v8 = vadd.f32 %v652_v6, %v2611_v59  ;;  %v387_v10 = vpop.f32.mrf.mxu0  ;;  %v476_v11 = vpop.f32.mrf.mxu1 }
  0xe8   : > { %v2775_v20 = vadd.f32 %v387_v10, %v2595_v51  ;;  %v2778_v21 = vadd.f32 %v476_v11, %v2597_v52 }
  0xe9   : > { %v753_v19 = vmax.f32 %v752_v2, %v2768_v7 }
  0xea   : > { %v757_v36 = vmax.f32 %v2775_v20, %v2778_v21 }
  0xeb   : > { %v754_v22 = vmax.f32 %v753_v19, %v2771_v8 }
  0xed   : > { %755 = vmax.xlane.f32.xlu2 %v754_v22 }
  0xee   : > { %v565_v31 = vpop.f32.mrf.mxu2  ;;  %v654_v32 = vpop.f32.mrf.mxu3 }
  0xef   : > { %v2786_v37 = vadd.f32 %v565_v31, %v2609_v58  ;;  %v390_v39 = vpop.f32.mrf.mxu0  ;;  %v479_v40 = vpop.f32.mrf.mxu1  ;;  %v2790_v45 = vadd.f32 %v654_v32, %v2611_v59  ;;  %v229_v32 = vld [vmem:[%s2540_s28 + $0xe0] sm:$0xff] }
  0xf0   : > { %v2793_v47 = vadd.f32 %v390_v39, %v2595_v51  ;;  %v2796_v48 = vadd.f32 %v479_v40, %v2597_v52 }
  0xf1   : > { %v758_v44 = vmax.f32 %v757_v36, %v2786_v37 }
  0xf2   : > { %1887 = vmatmul.msk.bf16.gmra.mxu0 %vm307_vm0, %v246_v35  ;;  %1903 = vmatmul.msk.bf16.gmra.mxu1 %vm307_vm0, %v246_v35  ;;  %v762_v1 = vmax.f32 %v2793_v47, %v2796_v48 }
  0xf3   : > { %1919 = vmatmul.msk.bf16.gmra.mxu2 %vm307_vm0, %v246_v35  ;;  %1935 = vmatmul.msk.bf16.gmra.mxu3 %vm307_vm0, %v246_v35  ;;  %v759_v62 = vmax.f32 %v758_v44, %v2790_v45  ;;  %v230_v35 = vld [vmem:[%s2540_s28 + $0xe8] sm:$0xff] }
  0xf4   : > { %v247_v40 = vpack.c.bf16 %v230_v35, %v229_v32 }
  0xf5   : > { %760 = vmax.xlane.f32.xlu0 %v759_v62 }
  0xf6   : > { %v568_v2 = vpop.f32.mrf.mxu2  ;;  %v657_v3 = vpop.f32.mrf.mxu3 }
  0xf7   : > { %v2806_v6 = vadd.f32 %v568_v2, %v2609_v58  ;;  %v2809_v10 = vadd.f32 %v657_v3, %v2611_v59  ;;  %v392_v11 = vpop.f32.mrf.mxu0  ;;  %v481_v19 = vpop.f32.mrf.mxu1 }
  0xf8   : > { %v2813_v23 = vadd.f32 %v392_v11, %v2595_v51  ;;  %v2816_v28 = vadd.f32 %v481_v19, %v2597_v52 }
  0xf9   : > { %v763_v22 = vmax.f32 %v762_v1, %v2806_v6 }
  0xfa   : > { %4154 = vst [vmem:[#allocation5_spill] sm:$0xff] %v2813_v23  ;;  %v767_v44 = vmax.f32 %v2813_v23, %v2816_v28 }
  0xfb   : > { %4155 = vst [vmem:[#allocation6_spill] sm:$0xff] %v2816_v28  ;;  %v764_v31 = vmax.f32 %v763_v22, %v2809_v10  ;;  %v232_v28 = vld [vmem:[%s2540_s28 + $0xf8] sm:$0xff] }
  0xfd   : > { %765 = vmax.xlane.f32.xlu1 %v764_v31 }
  0xfe   : > { %v570_v36 = vpop.f32.mrf.mxu2  ;;  %v659_v39 = vpop.f32.mrf.mxu3 }
  0xff   : > { %v2824_v62 = vadd.f32 %v570_v36, %v2609_v58  ;;  %v395_v1 = vpop.f32.mrf.mxu0  ;;  %v484_v2 = vpop.f32.mrf.mxu1  ;;  %v2828_v11 = vadd.f32 %v659_v39, %v2611_v59 }
 0x100   : > { %v2831_v19 = vadd.f32 %v395_v1, %v2595_v51  ;;  %v2834_v22 = vadd.f32 %v484_v2, %v2597_v52 }
 0x101   : > { %4156 = vst [vmem:[#allocation7_spill] sm:$0xff] %v2824_v62  ;;  %v768_v3 = vmax.f32 %v767_v44, %v2824_v62 }
 0x102   : > { %4157 = vst [vmem:[#allocation8_spill] sm:$0xff] %v2828_v11  ;;  %1888 = vmatmul.msk.bf16.gmra.mxu0 %vm307_vm0, %v247_v40  ;;  %1904 = vmatmul.msk.bf16.gmra.mxu1 %vm307_vm0, %v247_v40  ;;  %v772_v32 = vmax.f32 %v2831_v19, %v2834_v22 }
 0x103   : > { %4158 = vst [vmem:[#allocation9_spill] sm:$0xff] %v2831_v19  ;;  %1920 = vmatmul.msk.bf16.gmra.mxu2 %vm307_vm0, %v247_v40  ;;  %1936 = vmatmul.msk.bf16.gmra.mxu3 %vm307_vm0, %v247_v40  ;;  %v769_v31 = vmax.f32 %v768_v3, %v2828_v11  ;;  %v231_v11 = vld [vmem:[%s2540_s28 + $0xf0] sm:$0xff] }
 0x104   : > { %4159 = vst [vmem:[#allocation10_spill] sm:$0xff] %v2834_v22  ;;  %v248_v19 = vpack.c.bf16 %v232_v28, %v231_v11 }
 0x105   : > { %770 = vmax.xlane.f32.xlu2 %v769_v31 }
 0x106   : > { %v573_v35 = vpop.f32.mrf.mxu2  ;;  %v662_v36 = vpop.f32.mrf.mxu3 }
 0x107   : > { %v2844_v39 = vadd.f32 %v573_v35, %v2609_v58  ;;  %v2847_v44 = vadd.f32 %v662_v36, %v2611_v59  ;;  %v397_v1 = vpop.f32.mrf.mxu0  ;;  %v486_v2 = vpop.f32.mrf.mxu1 }
 0x108   : > { %v2851_v40 = vadd.f32 %v397_v1, %v2595_v51  ;;  %v2854_v3 = vadd.f32 %v486_v2, %v2597_v52 }
 0x109   : > { %4160 = vst [vmem:[#allocation11_spill] sm:$0xff] %v2844_v39  ;;  %v773_v62 = vmax.f32 %v772_v32, %v2844_v39 }
 0x10a   : > { %4161 = vst [vmem:[#allocation12_spill] sm:$0xff] %v2851_v40  ;;  %v777_v36 = vmax.f32 %v2851_v40, %v2854_v3 }
 0x10b   : > { %4162 = vst [vmem:[#allocation13_spill] sm:$0xff] %v2854_v3  ;;  %v774_v31 = vmax.f32 %v773_v62, %v2847_v44 }
 0x10d   : > { %775 = vmax.xlane.f32.xlu0 %v774_v31 }
 0x10e   : > { %v575_v35 = vpop.f32.mrf.mxu2  ;;  %v664_v22 = vpop.f32.mrf.mxu3 }
 0x10f   : > { %v2862_v23 = vadd.f32 %v575_v35, %v2609_v58  ;;  %v400_v32 = vpop.f32.mrf.mxu0  ;;  %v489_v1 = vpop.f32.mrf.mxu1  ;;  %v2866_v2 = vadd.f32 %v664_v22, %v2611_v59 }
 0x110   : > { %v2869_v62 = vadd.f32 %v400_v32, %v2595_v51  ;;  %v2872_v31 = vadd.f32 %v489_v1, %v2597_v52 }
 0x111   : > { %4163 = vst [vmem:[#allocation14_spill] sm:$0xff] %v2862_v23  ;;  %v778_v39 = vmax.f32 %v777_v36, %v2862_v23 }
 0x112   : > { %4164 = vst [vmem:[#allocation15_spill] sm:$0xff] %v2866_v2  ;;  %1889 = vmatmul.msk.bf16.gmra.mxu0 %vm307_vm0, %v248_v19  ;;  %1905 = vmatmul.msk.bf16.gmra.mxu1 %vm307_vm0, %v248_v19  ;;  %v782_v11 = vmax.f32 %v2869_v62, %v2872_v31 }
 0x113   : > { %4165 = vst [vmem:[#allocation16_spill] sm:$0xff] %v2869_v62  ;;  %1921 = vmatmul.msk.bf16.gmra.mxu2 %vm307_vm0, %v248_v19  ;;  %1937 = vmatmul.msk.bf16.gmra.mxu3 %vm307_vm0, %v248_v19  ;;  %v779_v28 = vmax.f32 %v778_v39, %v2866_v2 }
 0x114   : > { %4166 = vst [vmem:[#allocation17_spill] sm:$0xff] %v2872_v31 }
 0x115   : > { %780 = vmax.xlane.f32.xlu1 %v779_v28 }
 0x116   : > { %v578_v22 = vpop.f32.mrf.mxu2  ;;  %v667_v35 = vpop.f32.mrf.mxu3 }
 0x117   : > { %v2882_v36 = vadd.f32 %v578_v22, %v2609_v58  ;;  %v2885_v32 = vadd.f32 %v667_v35, %v2611_v59  ;;  %v402_v1 = vpop.f32.mrf.mxu0  ;;  %v491_v23 = vpop.f32.mrf.mxu1 }
 0x118   : > { %v2889_v19 = vadd.f32 %v402_v1, %v2595_v51  ;;  %v2892_v39 = vadd.f32 %v491_v23, %v2597_v52 }
 0x119   : > { %4167 = vst [vmem:[#allocation18_spill] sm:$0xff] %v2882_v36  ;;  %v783_v3 = vmax.f32 %v782_v11, %v2882_v36 }
 0x11a   : > { %4168 = vst [vmem:[#allocation19_spill] sm:$0xff] %v2885_v32  ;;  %v787_v22 = vmax.f32 %v2889_v19, %v2892_v39 }
 0x11b   : > { %4169 = vst [vmem:[#allocation20_spill] sm:$0xff] %v2892_v39  ;;  %v784_v28 = vmax.f32 %v783_v3, %v2885_v32 }
 0x11d   : > { %785 = vmax.xlane.f32.xlu2 %v784_v28 }
 0x11e   : > { %v580_v31 = vpop.f32.mrf.mxu2  ;;  %v669_v62 = vpop.f32.mrf.mxu3 }
 0x11f   : > { %v2898_v35 = vadd.f32 %v580_v31, %v2609_v58  ;;  %v405_v2 = vpop.f32.mrf.mxu0  ;;  %v494_v40 = vpop.f32.mrf.mxu1  ;;  %v2901_v11 = vadd.f32 %v669_v62, %v2611_v59 }
 0x120   : > { %v2904_v1 = vadd.f32 %v405_v2, %v2595_v51  ;;  %v2907_v23 = vadd.f32 %v494_v40, %v2597_v52  ;;  %v716_v3 = vpop.xlane.xlu0 %715 }
 0x121   : > { %4170 = vst [vmem:[#allocation21_spill] sm:$0xff] %v2898_v35  ;;  %v788_v28 = vmax.f32 %v787_v22, %v2898_v35  ;;  %v2911_v32 = vsub.f32 %v2600_v56, %v716_v3  ;;  %v2914_v31 = vsub.f32 %v2603_v57, %v716_v3  ;;  %v2917_v36 = vsub.f32 %v2616_v63, %v716_v3 }
 0x122   : > { %4171 = vst [vmem:[#allocation22_spill] sm:$0xff] %v2901_v11  ;;  %v2920_v62 = vsub.f32 %v2619_v0, %v716_v3  ;;  %v792_v56 = vmax.f32 %v2904_v1, %v2907_v23 }
 0x123   : > { %4172 = vst [vmem:[#allocation23_spill] sm:$0xff] %v2904_v1  ;;  %v1000_v2 = vmul.f32 1.442695, %v2911_v32  ;;  %v1002_v40 = vmul.f32 1.442695, %v2914_v31  ;;  %v789_v39 = vmax.f32 %v788_v28, %v2901_v11 }
 0x124   : > { %4173 = vst [vmem:[#allocation24_spill] sm:$0xff] %v2907_v23  ;;  %v1004_v22 = vmul.f32 1.442695, %v2917_v36  ;;  %v1006_v57 = vmul.f32 1.442695, %v2920_v62 }
 0x125   : > { %4174 = vst [vmem:[#allocation25_spill] sm:$0xff] %v2911_v32  ;;  %2010 = vpow2.f32 %v1000_v2  ;;  %790 = vmax.xlane.f32.xlu0 %v789_v39 }
 0x126   : > { %4175 = vst [vmem:[#allocation26_spill] sm:$0xff] %v2914_v31  ;;  %2012 = vpow2.f32 %v1002_v40  ;;  %v583_v63 = vpop.f32.mrf.mxu2  ;;  %v672_v35 = vpop.f32.mrf.mxu3 }
 0x127   : > { %4176 = vst [vmem:[#allocation27_spill] sm:$0xff] %v2917_v36  ;;  %v2930_v0 = vadd.f32 %v583_v63, %v2609_v58  ;;  %v2933_v3 = vadd.f32 %v672_v35, %v2611_v59  ;;  %v407_v31 = vpop.f32.mrf.mxu0  ;;  %v496_v28 = vpop.f32.mrf.mxu1  ;;  %2014 = vpow2.f32 %v1004_v22 }
 0x128   : > { %4177 = vst [vmem:[#allocation28_spill] sm:$0xff] %v2920_v62  ;;  %v721_v36 = vpop.xlane.xlu0 %720  ;;  %2016 = vpow2.f32 %v1006_v57 }
 0x129   : > { %4178 = vst [vmem:[#allocation29_spill] sm:$0xff] %v2930_v0  ;;  %v793_v32 = vmax.f32 %v792_v56, %v2930_v0  ;;  %v2937_v2 = vsub.f32 %v2623_v4, %v721_v36  ;;  %v2940_v39 = vsub.f32 %v2626_v5, %v721_v36  ;;  %v2943_v40 = vsub.f32 %v2634_v13, %v721_v36 }
 0x12a   : > { %v2946_v35 = vsub.f32 %v2637_v16, %v721_v36 }
 0x12b   : > { %4179 = vst [vmem:[#allocation30_spill] sm:$0xff] %v2937_v2  ;;  %v2011_v63 = vpop.eup %2010  ;;  %v1008_v62 = vmul.f32 1.442695, %v2937_v2  ;;  %v1010_v22 = vmul.f32 1.442695, %v2940_v39  ;;  %v794_v56 = vmax.f32 %v793_v32, %v2933_v3  ;;  %v2957_v32 = vadd.f32 %v496_v28, %v2597_v52 }
 0x12c   : > { %4180 = vst [vmem:[#allocation31_spill] sm:$0xff] %v2940_v39  ;;  %v2013_v0 = vpop.eup %2012  ;;  %v1012_v4 = vmul.f32 1.442695, %v2943_v40  ;;  %v1014_v1 = vmul.f32 1.442695, %v2946_v35  ;;  %v2954_v39 = vadd.f32 %v407_v31, %v2595_v51 }
 0x12d   : > { %4181 = vst [vmem:[#allocation32_spill] sm:$0xff] %v2943_v40  ;;  %2018 = vpow2.f32 %v1008_v62  ;;  %795 = vmax.xlane.f32.xlu1 %v794_v56  ;;  %v1256_v5 = vadd.f32 %v2013_v0, %v2011_v63  ;;  %v2015_v23 = vpop.eup %2014 }
 0x12e   : > { %4182 = vst [vmem:[#allocation33_spill] sm:$0xff] %v2946_v35  ;;  %2020 = vpow2.f32 %v1010_v22  ;;  %v585_v13 = vpop.f32.mrf.mxu2  ;;  %v674_v57 = vpop.f32.mrf.mxu3 }
 0x12f   : > { %v410_v16 = vpop.f32.mrf.mxu0  ;;  %v499_v36 = vpop.f32.mrf.mxu1  ;;  %v1257_v11 = vadd.f32 %v2015_v23, %v1256_v5  ;;  %2022 = vpow2.f32 %v1012_v4  ;;  %v2969_v23 = vadd.f32 %v585_v13, %v2609_v58 }
 0x130   : > { %v2017_v2 = vpop.eup %2016  ;;  %v726_v62 = vpop.xlane.xlu1 %725  ;;  %2024 = vpow2.f32 %v1014_v1  ;;  %v2981_v1 = vadd.f32 %v410_v16, %v2595_v51 }
 0x131   : > { %v2960_v0 = vsub.f32 %v2640_v17, %v726_v62  ;;  %v2963_v63 = vsub.f32 %v2643_v18, %v726_v62  ;;  %v2966_v22 = vsub.f32 %v2654_v24, %v726_v62  ;;  %v1258_v56 = vadd.f32 %v2017_v2, %v1257_v11 }
 0x132   : > { %v2972_v28 = vsub.f32 %v2657_v25, %v726_v62  ;;  %v797_v18 = vmax.f32 %v2954_v39, %v2957_v32  ;;  %v2984_v25 = vadd.f32 %v499_v36, %v2597_v52 }
 0x133   : > { %4183 = vst [vmem:[#allocation34_spill] sm:$0xff] %v2960_v0  ;;  %v2019_v31 = vpop.eup %2018  ;;  %v1016_v4 = vmul.f32 1.442695, %v2960_v0  ;;  %v1018_v17 = vmul.f32 1.442695, %v2963_v63  ;;  %1259 = vadd.xlane.f32.xlu2 %v1258_v56  ;;  %v2988_v56 = vadd.f32 %v674_v57, %v2611_v59 }
 0x134   : > { %4184 = vst [vmem:[#allocation35_spill] sm:$0xff] %v2963_v63  ;;  %v2021_v5 = vpop.eup %2020  ;;  %v1020_v24 = vmul.f32 1.442695, %v2966_v22  ;;  %v798_v11 = vmax.f32 %v797_v18, %v2969_v23  ;;  %v1022_v63 = vmul.f32 1.442695, %v2972_v28 }
 0x135   : > { %4185 = vst [vmem:[#allocation36_spill] sm:$0xff] %v2966_v22  ;;  %2026 = vpow2.f32 %v1016_v4  ;;  %v1261_v13 = vadd.f32 %v2021_v5, %v2019_v31  ;;  %v2023_v35 = vpop.eup %2022  ;;  %v802_v5 = vmax.f32 %v2981_v1, %v2984_v25 }
 0x136   : > { %4186 = vst [vmem:[#allocation37_spill] sm:$0xff] %v2972_v28  ;;  %2028 = vpow2.f32 %v1018_v17  ;;  %v588_v2 = vpop.f32.mrf.mxu2  ;;  %v677_v62 = vpop.f32.mrf.mxu3  ;;  %v799_v57 = vmax.f32 %v798_v11, %v2988_v56 }
 0x137   : > { %4187 = vst [vmem:[#allocation38_spill] sm:$0xff] %v2984_v25  ;;  %v412_v0 = vpop.f32.mrf.mxu0  ;;  %v501_v40 = vpop.f32.mrf.mxu1  ;;  %v1262_v22 = vadd.f32 %v2023_v35, %v1261_v13  ;;  %2030 = vpow2.f32 %v1020_v24  ;;  %v3002_v35 = vadd.f32 %v588_v2, %v2609_v58 }
 0x138   : > { %v731_v31 = vpop.xlane.xlu1 %730  ;;  %v2025_v4 = vpop.eup %2024  ;;  %2032 = vpow2.f32 %v1022_v63 }
 0x139   : > { %v2991_v16 = vsub.f32 %v2661_v29, %v731_v31  ;;  %v2994_v36 = vsub.f32 %v2664_v30, %v731_v31  ;;  %v2997_v17 = vsub.f32 %v2672_v38, %v731_v31  ;;  %v1263_v18 = vadd.f32 %v2025_v4, %v1262_v22 }
 0x13a   : > { %v3006_v29 = vsub.f32 %v2675_v41, %v731_v31  ;;  %v803_v11 = vmax.f32 %v802_v5, %v3002_v35  ;;  %v3013_v22 = vadd.f32 %v677_v62, %v2611_v59 }
 0x13b   : > { %4188 = vst [vmem:[#allocation39_spill] sm:$0xff] %v2991_v16  ;;  %v2027_v24 = vpop.eup %2026  ;;  %v1024_v30 = vmul.f32 1.442695, %v2991_v16  ;;  %v1026_v13 = vmul.f32 1.442695, %v2994_v36  ;;  %800 = vmax.xlane.f32.xlu2 %v799_v57  ;;  %1264 = vadd.xlane.f32.xlu0 %v1263_v18  ;;  %v3020_v57 = vadd.f32 %v501_v40, %v2597_v52 }
 0x13c   : > { %4189 = vst [vmem:[#allocation40_spill] sm:$0xff] %v2994_v36  ;;  %v2029_v38 = vpop.eup %2028  ;;  %v1028_v28 = vmul.f32 1.442695, %v2997_v17  ;;  %v1030_v31 = vmul.f32 1.442695, %v3006_v29 }
 0x13d   : > { %4190 = vst [vmem:[#allocation41_spill] sm:$0xff] %v2997_v17  ;;  %2034 = vpow2.f32 %v1024_v30  ;;  %v1266_v2 = vadd.f32 %v2029_v38, %v2027_v24  ;;  %v2031_v25 = vpop.eup %2030  ;;  %v3017_v17 = vadd.f32 %v412_v0, %v2595_v51 }
 0x13e   : > { %4191 = vst [vmem:[#allocation42_spill] sm:$0xff] %v3006_v29  ;;  %2036 = vpow2.f32 %v1026_v13  ;;  %v590_v41 = vpop.f32.mrf.mxu2  ;;  %v679_v63 = vpop.f32.mrf.mxu3  ;;  %v804_v13 = vmax.f32 %v803_v11, %v3013_v22 }
 0x13f   : > { %v415_v4 = vpop.f32.mrf.mxu0  ;;  %v504_v36 = vpop.f32.mrf.mxu1  ;;  %v1267_v16 = vadd.f32 %v2031_v25, %v1266_v2  ;;  %2038 = vpow2.f32 %v1028_v28  ;;  %v3032_v25 = vadd.f32 %v590_v41, %v2609_v58 }
 0x140   : > { %v736_v18 = vpop.xlane.xlu2 %735  ;;  %v2033_v5 = vpop.eup %2032  ;;  %2040 = vpow2.f32 %v1030_v31  ;;  %v3048_v31 = vadd.f32 %v504_v36, %v2597_v52 }
 0x141   : > { %v3023_v62 = vsub.f32 %v2678_v42, %v736_v18  ;;  %v3026_v24 = vsub.f32 %v2681_v43, %v736_v18  ;;  %v3029_v30 = vsub.f32 %v2692_v49, %v736_v18  ;;  %v1268_v0 = vadd.f32 %v2033_v5, %v1267_v16 }
 0x142   : > { %v3036_v28 = vsub.f32 %v2695_v50, %v736_v18  ;;  %v807_v49 = vmax.f32 %v3017_v17, %v3020_v57  ;;  %v3045_v50 = vadd.f32 %v415_v4, %v2595_v51 }
 0x143   : > { %4192 = vst [vmem:[#allocation43_spill] sm:$0xff] %v3023_v62  ;;  %v2035_v40 = vpop.eup %2034  ;;  %v1032_v42 = vmul.f32 1.442695, %v3023_v62  ;;  %v1034_v38 = vmul.f32 1.442695, %v3026_v24  ;;  %1269 = vadd.xlane.f32.xlu1 %v1268_v0  ;;  %805 = vmax.xlane.f32.xlu0 %v804_v13  ;;  %v3052_v13 = vadd.f32 %v679_v63, %v2611_v59 }
 0x144   : > { %4193 = vst [vmem:[#allocation44_spill] sm:$0xff] %v3026_v24  ;;  %v2037_v43 = vpop.eup %2036  ;;  %v1036_v2 = vmul.f32 1.442695, %v3029_v30  ;;  %v808_v41 = vmax.f32 %v807_v49, %v3032_v25  ;;  %v1038_v24 = vmul.f32 1.442695, %v3036_v28 }
 0x145   : > { %4194 = vst [vmem:[#allocation45_spill] sm:$0xff] %v3029_v30  ;;  %2042 = vpow2.f32 %v1032_v42  ;;  %v1271_v16 = vadd.f32 %v2037_v43, %v2035_v40  ;;  %v2039_v11 = vpop.eup %2038  ;;  %v812_v43 = vmax.f32 %v3045_v50, %v3048_v31 }
 0x146   : > { %4195 = vst [vmem:[#allocation46_spill] sm:$0xff] %v3036_v28  ;;  %2044 = vpow2.f32 %v1034_v38  ;;  %v593_v18 = vpop.f32.mrf.mxu2  ;;  %v682_v5 = vpop.f32.mrf.mxu3  ;;  %v809_v63 = vmax.f32 %v808_v41, %v3052_v13 }
 0x147   : > { %v417_v62 = vpop.f32.mrf.mxu0  ;;  %v506_v30 = vpop.f32.mrf.mxu1  ;;  %v1272_v0 = vadd.f32 %v2039_v11, %v1271_v16  ;;  %2046 = vpow2.f32 %v1036_v2  ;;  %v3066_v49 = vadd.f32 %v593_v18, %v2609_v58 }
 0x148   : > { %v741_v40 = vpop.xlane.xlu2 %740  ;;  %v2041_v42 = vpop.eup %2040  ;;  %2048 = vpow2.f32 %v1038_v24 }
 0x149   : > { %v3055_v4 = vsub.f32 %v2699_v60, %v741_v40  ;;  %v3058_v36 = vsub.f32 %v2702_v61, %v741_v40  ;;  %v3061_v38 = vsub.f32 %v2710_v9, %v741_v40  ;;  %v1273_v2 = vadd.f32 %v2041_v42, %v1272_v0 }
 0x14a   : > { %v3070_v60 = vsub.f32 %v2713_v12, %v741_v40  ;;  %v813_v41 = vmax.f32 %v812_v43, %v3066_v49  ;;  %v3077_v0 = vadd.f32 %v682_v5, %v2611_v59 }
 0x14b   : > { %4196 = vst [vmem:[#allocation47_spill] sm:$0xff] %v3055_v4  ;;  %v2043_v16 = vpop.eup %2042  ;;  %v1040_v61 = vmul.f32 1.442695, %v3055_v4  ;;  %v1042_v11 = vmul.f32 1.442695, %v3058_v36  ;;  %810 = vmax.xlane.f32.xlu1 %v809_v63  ;;  %1274 = vadd.xlane.f32.xlu2 %v1273_v2  ;;  %v3084_v63 = vadd.f32 %v506_v30, %v2597_v52 }
 0x14c   : > { %4197 = vst [vmem:[#allocation48_spill] sm:$0xff] %v3058_v36  ;;  %v2045_v9 = vpop.eup %2044  ;;  %v1044_v28 = vmul.f32 1.442695, %v3061_v38  ;;  %v1046_v40 = vmul.f32 1.442695, %v3070_v60 }
 0x14d   : > { %4198 = vst [vmem:[#allocation49_spill] sm:$0xff] %v3061_v38  ;;  %2050 = vpow2.f32 %v1040_v61  ;;  %v1276_v18 = vadd.f32 %v2045_v9, %v2043_v16  ;;  %v2047_v29 = vpop.eup %2046  ;;  %v3081_v38 = vadd.f32 %v417_v62, %v2595_v51  ;;  %v814_v62 = vmax.f32 %v813_v41, %v3077_v0 }
 0x14e   : > { %4199 = vst [vmem:[#allocation50_spill] sm:$0xff] %v3070_v60  ;;  %2052 = vpow2.f32 %v1042_v11  ;;  %v595_v12 = vpop.f32.mrf.mxu2  ;;  %v684_v24 = vpop.f32.mrf.mxu3 }
 0x14f   : > { %v420_v42 = vpop.f32.mrf.mxu0  ;;  %v509_v36 = vpop.f32.mrf.mxu1  ;;  %v1277_v4 = vadd.f32 %v2047_v29, %v1276_v18  ;;  %2054 = vpow2.f32 %v1044_v28  ;;  %v3096_v29 = vadd.f32 %v595_v12, %v2609_v58 }
 0x150   : > { %v746_v2 = vpop.xlane.xlu0 %745  ;;  %v2049_v43 = vpop.eup %2048  ;;  %2056 = vpow2.f32 %v1046_v40  ;;  %v3112_v40 = vadd.f32 %v509_v36, %v2597_v52 }
 0x151   : > { %v3087_v5 = vsub.f32 %v2716_v14, %v746_v2  ;;  %v3090_v16 = vsub.f32 %v2719_v15, %v746_v2  ;;  %v3093_v61 = vsub.f32 %v2730_v26, %v746_v2  ;;  %v1278_v11 = vadd.f32 %v2049_v43, %v1277_v4 }
 0x152   : > { %v3100_v28 = vsub.f32 %v2733_v27, %v746_v2  ;;  %v817_v26 = vmax.f32 %v3081_v38, %v3084_v63  ;;  %v3109_v27 = vadd.f32 %v420_v42, %v2595_v51 }
 0x153   : > { %4200 = vst [vmem:[#allocation51_spill] sm:$0xff] %v3087_v5  ;;  %v2051_v30 = vpop.eup %2050  ;;  %v1048_v14 = vmul.f32 1.442695, %v3087_v5  ;;  %v1050_v9 = vmul.f32 1.442695, %v3090_v16  ;;  %815 = vmax.xlane.f32.xlu2 %v814_v62  ;;  %1279 = vadd.xlane.f32.xlu0 %v1278_v11  ;;  %v3116_v11 = vadd.f32 %v684_v24, %v2611_v59 }
 0x154   : > { %4201 = vst [vmem:[#allocation52_spill] sm:$0xff] %v3090_v16  ;;  %v2053_v15 = vpop.eup %2052  ;;  %v1052_v18 = vmul.f32 1.442695, %v3093_v61  ;;  %v818_v12 = vmax.f32 %v817_v26, %v3096_v29  ;;  %v1054_v16 = vmul.f32 1.442695, %v3100_v28 }
 0x155   : > { %4202 = vst [vmem:[#allocation53_spill] sm:$0xff] %v3093_v61  ;;  %2058 = vpow2.f32 %v1048_v14  ;;  %v1281_v41 = vadd.f32 %v2053_v15, %v2051_v30  ;;  %v2055_v4 = vpop.eup %2054  ;;  %v822_v15 = vmax.f32 %v3109_v27, %v3112_v40 }
 0x156   : > { %4203 = vst [vmem:[#allocation54_spill] sm:$0xff] %v3100_v28  ;;  %2060 = vpow2.f32 %v1050_v9  ;;  %v598_v2 = vpop.f32.mrf.mxu2  ;;  %v687_v43 = vpop.f32.mrf.mxu3 }
 0x157   : > { %v422_v5 = vpop.f32.mrf.mxu0  ;;  %v511_v61 = vpop.f32.mrf.mxu1  ;;  %v1282_v62 = vadd.f32 %v2055_v4, %v1281_v41  ;;  %2062 = vpow2.f32 %v1052_v18  ;;  %v3130_v26 = vadd.f32 %v598_v2, %v2609_v58  ;;  %v819_v18 = vmax.f32 %v818_v12, %v3116_v11 }
 0x158   : > { %v751_v30 = vpop.xlane.xlu1 %750  ;;  %v2057_v14 = vpop.eup %2056  ;;  %2064 = vpow2.f32 %v1054_v16  ;;  %v3141_v12 = vadd.f32 %v687_v43, %v2611_v59 }
 0x159   : > { %v3119_v42 = vsub.f32 %v2737_v33, %v751_v30  ;;  %v3122_v36 = vsub.f32 %v2740_v34, %v751_v30  ;;  %v3125_v9 = vsub.f32 %v2748_v46, %v751_v30  ;;  %v1283_v24 = vadd.f32 %v2057_v14, %v1282_v62 }
 0x15a   : > { %v3134_v33 = vsub.f32 %v2751_v53, %v751_v30  ;;  %v823_v62 = vmax.f32 %v822_v15, %v3130_v26 }
 0x15b   : > { %4204 = vst [vmem:[#allocation55_spill] sm:$0xff] %v3119_v42  ;;  %v2059_v41 = vpop.eup %2058  ;;  %v1056_v34 = vmul.f32 1.442695, %v3119_v42  ;;  %v1058_v4 = vmul.f32 1.442695, %v3122_v36  ;;  %1284 = vadd.xlane.f32.xlu1 %v1283_v24  ;;  %820 = vmax.xlane.f32.xlu0 %v819_v18  ;;  %v3148_v24 = vadd.f32 %v511_v61, %v2597_v52 }
 0x15c   : > { %4205 = vst [vmem:[#allocation56_spill] sm:$0xff] %v3122_v36  ;;  %v2061_v46 = vpop.eup %2060  ;;  %v1060_v28 = vmul.f32 1.442695, %v3125_v9  ;;  %v1062_v30 = vmul.f32 1.442695, %v3134_v33  ;;  %v824_v43 = vmax.f32 %v823_v62, %v3141_v12 }
 0x15d   : > { %4206 = vst [vmem:[#allocation57_spill] sm:$0xff] %v3125_v9  ;;  %2066 = vpow2.f32 %v1056_v34  ;;  %v1286_v2 = vadd.f32 %v2061_v46, %v2059_v41  ;;  %v2063_v60 = vpop.eup %2062  ;;  %v3145_v9 = vadd.f32 %v422_v5, %v2595_v51 }
 0x15e   : > { %4207 = vst [vmem:[#allocation58_spill] sm:$0xff] %v3134_v33  ;;  %2068 = vpow2.f32 %v1058_v4  ;;  %v600_v53 = vpop.f32.mrf.mxu2  ;;  %v689_v16 = vpop.f32.mrf.mxu3 }
 0x15f   : > { %v425_v14 = vpop.f32.mrf.mxu0  ;;  %v514_v36 = vpop.f32.mrf.mxu1  ;;  %v1287_v42 = vadd.f32 %v2063_v60, %v1286_v2  ;;  %4208 = vst [vmem:[#allocation59_spill] sm:$0xff] %v3145_v9  ;;  %2070 = vpow2.f32 %v1060_v28  ;;  %v3151_v15 = vadd.f32 %v600_v53, %v2609_v58  ;;  %v827_v60 = vmax.f32 %v3145_v9, %v3148_v24 }
 0x160   : > { %4209 = vst [vmem:[#allocation60_spill] sm:$0xff] %v3148_v24  ;;  %v2065_v18 = vpop.eup %2064  ;;  %2072 = vpow2.f32 %v1062_v30  ;;  %v3158_v28 = vadd.f32 %v425_v14, %v2595_v51  ;;  %v3161_v2 = vadd.f32 %v514_v36, %v2597_v52  ;;  %v3164_v33 = vadd.f32 %v689_v16, %v2611_v59 }
 0x161   : > { %4210 = vst [vmem:[#allocation61_spill] sm:$0xff] %v3151_v15  ;;  %v1288_v41 = vadd.f32 %v2065_v18, %v1287_v42  ;;  %v828_v61 = vmax.f32 %v827_v60, %v3151_v15 }
 0x162   : > { %4211 = vst [vmem:[#allocation62_spill] sm:$0xff] %v3158_v28 }
 0x163   : > { %v2067_v34 = vpop.eup %2066  ;;  %825 = vmax.xlane.f32.xlu1 %v824_v43  ;;  %1289 = vadd.xlane.f32.xlu2 %v1288_v41  ;;  %4212 = vst [vmem:[#allocation63_spill] sm:$0xff] %v3161_v2  ;;  %v832_v41 = vmax.f32 %v3158_v28, %v3161_v2 }
 0x164   : > { %v2069_v4 = vpop.eup %2068  ;;  %4213 = vst [vmem:[#allocation64_spill] sm:$0xff] %v3164_v33 }
 0x165   : > { %v1291_v5 = vadd.f32 %v2069_v4, %v2067_v34  ;;  %v2071_v46 = vpop.eup %2070  ;;  %v829_v4 = vmax.f32 %v828_v61, %v3164_v33 }
 0x166   : > { %v603_v62 = vpop.f32.mrf.mxu2  ;;  %v692_v42 = vpop.f32.mrf.mxu3 }
 0x167   : > { %v427_v53 = vpop.f32.mrf.mxu0  ;;  %v516_v30 = vpop.f32.mrf.mxu1  ;;  %v1292_v18 = vadd.f32 %v2071_v46, %v1291_v5  ;;  %v3169_v34 = vadd.f32 %v603_v62, %v2609_v58  ;;  %v3180_v5 = vadd.f32 %v692_v42, %v2611_v59 }
 0x168   : > { %v2073_v43 = vpop.eup %2072  ;;  %v3173_v36 = vadd.f32 %v427_v53, %v2595_v51  ;;  %v3176_v60 = vadd.f32 %v516_v30, %v2597_v52 }
 0x169   : > { %4214 = vst [vmem:[#allocation65_spill] sm:$0xff] %v3169_v34  ;;  %v1293_v14 = vadd.f32 %v2073_v43, %v1292_v18  ;;  %v833_v16 = vmax.f32 %v832_v41, %v3169_v34  ;;  %v761_v34 = vpop.xlane.xlu0 %760 }
 0x16a   : > { %4215 = vst [vmem:[#allocation66_spill] sm:$0xff] %v3173_v36  ;;  %v837_v62 = vmax.f32 %v3173_v36, %v3176_v60 }
 0x16b   : > { %4216 = vst [vmem:[#allocation67_spill] sm:$0xff] %v3176_v60  ;;  %1294 = vadd.xlane.f32.xlu0 %v1293_v14  ;;  %830 = vmax.xlane.f32.xlu2 %v829_v4  ;;  %v834_v14 = vmax.f32 %v833_v16, %v3180_v5 }
 0x16c   : > { %4217 = vst [vmem:[#allocation68_spill] sm:$0xff] %v3180_v5 }
 0x16e   : > { %v605_v46 = vpop.f32.mrf.mxu2  ;;  %v694_v2 = vpop.f32.mrf.mxu3 }
 0x16f   : > { %v3185_v61 = vadd.f32 %v605_v46, %v2609_v58  ;;  %v430_v53 = vpop.f32.mrf.mxu0  ;;  %v519_v18 = vpop.f32.mrf.mxu1  ;;  %v3189_v43 = vadd.f32 %v694_v2, %v2611_v59 }
 0x170   : > { %v3192_v41 = vadd.f32 %v430_v53, %v2595_v51  ;;  %v3195_v42 = vadd.f32 %v519_v18, %v2597_v52  ;;  %v756_v46 = vpop.xlane.xlu2 %755 }
 0x171   : > { %4218 = vst [vmem:[#allocation69_spill] sm:$0xff] %v3185_v61  ;;  %v838_v30 = vmax.f32 %v837_v62, %v3185_v61 }
 0x172   : > { %4219 = vst [vmem:[#allocation70_spill] sm:$0xff] %v3189_v43  ;;  %v842_v60 = vmax.f32 %v3192_v41, %v3195_v42 }
 0x173   : > { %4220 = vst [vmem:[#allocation71_spill] sm:$0xff] %v3192_v41  ;;  %v839_v4 = vmax.f32 %v838_v30, %v3189_v43  ;;  %835 = vmax.xlane.f32.xlu0 %v834_v14  ;;  %v3209_v30 = vsub.f32 %v2754_v54, %v756_v46  ;;  %v3212_v14 = vsub.f32 %v2757_v55, %v756_v46 }
 0x174   : > { %4221 = vst [vmem:[#allocation72_spill] sm:$0xff] %v3195_v42  ;;  %v3222_v42 = vsub.f32 %v2775_v20, %v761_v34  ;;  %v3225_v41 = vsub.f32 %v2778_v21, %v761_v34  ;;  %v3228_v54 = vsub.f32 %v2768_v7, %v756_v46  ;;  %v3241_v7 = vsub.f32 %v2786_v37, %v761_v34 }
 0x175   : > { %840 = vmax.xlane.f32.xlu1 %v839_v4  ;;  %4224 = vst [vmem:[#allocation75_spill] sm:$0xff] %v3209_v30  ;;  %v1064_v55 = vmul.f32 1.442695, %v3209_v30  ;;  %v3244_v30 = vsub.f32 %v2790_v45, %v761_v34 }
 0x176   : > { %v608_v62 = vpop.f32.mrf.mxu2  ;;  %v697_v61 = vpop.f32.mrf.mxu3  ;;  %4225 = vst [vmem:[#allocation76_spill] sm:$0xff] %v3212_v14  ;;  %v1072_v43 = vmul.f32 1.442695, %v3222_v42  ;;  %v1068_v37 = vmul.f32 1.442695, %v3228_v54 }
 0x177   : > { %v3202_v2 = vadd.f32 %v608_v62, %v2609_v58  ;;  %v3205_v53 = vadd.f32 %v697_v61, %v2611_v59  ;;  %v432_v18 = vpop.f32.mrf.mxu0  ;;  %v521_v36 = vpop.f32.mrf.mxu1  ;;  %4228 = vst [vmem:[#allocation79_spill] sm:$0xff] %v3222_v42  ;;  %2074 = vpow2.f32 %v1064_v55  ;;  %v4246_v42 = vld [vmem:[#allocation9_spill] sm:$0xff] }
 0x178   : > { %v3215_v4 = vadd.f32 %v432_v18, %v2595_v51  ;;  %v3218_v62 = vadd.f32 %v521_v36, %v2597_v52  ;;  %4229 = vst [vmem:[#allocation80_spill] sm:$0xff] %v3225_v41  ;;  %v3232_v36 = vsub.f32 %v2771_v8, %v756_v46  ;;  %v1074_v8 = vmul.f32 1.442695, %v3225_v41 }
 0x179   : > { %4222 = vst [vmem:[#allocation73_spill] sm:$0xff] %v3202_v2  ;;  %v843_v16 = vmax.f32 %v842_v60, %v3202_v2  ;;  %v766_v60 = vpop.xlane.xlu1 %765 }
 0x17a   : > { %4223 = vst [vmem:[#allocation74_spill] sm:$0xff] %v3205_v53  ;;  %v847_v20 = vmax.f32 %v3215_v4, %v3218_v62  ;;  %v3260_v45 = vsub.f32 %v2793_v47, %v766_v60  ;;  %v1070_v34 = vmul.f32 1.442695, %v3232_v36  ;;  %v3270_v55 = vsub.f32 %v2806_v6, %v766_v60 }
 0x17b   : > { %4226 = vst [vmem:[#allocation77_spill] sm:$0xff] %v3215_v4  ;;  %v844_v61 = vmax.f32 %v843_v16, %v3205_v53  ;;  %v1066_v16 = vmul.f32 1.442695, %v3212_v14 }
 0x17c   : > { %4227 = vst [vmem:[#allocation78_spill] sm:$0xff] %v3218_v62 }
 0x17d   : > { %845 = vmax.xlane.f32.xlu2 %v844_v61  ;;  %4230 = vst [vmem:[#allocation81_spill] sm:$0xff] %v3228_v54  ;;  %2076 = vpow2.f32 %v1066_v16  ;;  %v3272_v54 = vpop.xlane.xlu2 %770  ;;  %v3286_v41 = vpop.eup %2074 }
 0x17e   : > { %v610_v18 = vpop.f32.mrf.mxu2  ;;  %v699_v2 = vpop.f32.mrf.mxu3  ;;  %4231 = vst [vmem:[#allocation82_spill] sm:$0xff] %v3232_v36  ;;  %2078 = vpow2.f32 %v1072_v43  ;;  %v3277_v43 = vsub.f32 %v2809_v10, %v766_v60  ;;  %v4244_v10 = vld [vmem:[#allocation5_spill] sm:$0xff] }
 0x17f   : > { %v3238_v21 = vadd.f32 %v610_v18, %v2609_v58  ;;  %v435_v53 = vpop.f32.mrf.mxu0  ;;  %v524_v61 = vpop.f32.mrf.mxu1  ;;  %4233 = vst [vmem:[#allocation84_spill] sm:$0xff] %v3241_v7  ;;  %v3250_v14 = vadd.f32 %v699_v2, %v2611_v59  ;;  %v1076_v2 = vmul.f32 1.442695, %v3241_v7  ;;  %2080 = vpow2.f32 %v1074_v8 }
 0x180   : > { %4234 = vst [vmem:[#allocation85_spill] sm:$0xff] %v3244_v30  ;;  %v3253_v18 = vadd.f32 %v435_v53, %v2595_v51  ;;  %v3256_v62 = vadd.f32 %v524_v61, %v2597_v52  ;;  %v3266_v53 = vsub.f32 %v2796_v48, %v766_v60  ;;  %v1078_v61 = vmul.f32 1.442695, %v3244_v30  ;;  %v776_v16 = vpop.xlane.xlu0 %775 }
 0x181   : > { %4232 = vst [vmem:[#allocation83_spill] sm:$0xff] %v3238_v21  ;;  %v848_v46 = vmax.f32 %v847_v20, %v3238_v21  ;;  %2082 = vpow2.f32 %v1068_v37  ;;  %v1080_v48 = vmul.f32 1.442695, %v3260_v45  ;;  %v3291_v60 = vsub.f32 %v4244_v10, %v3272_v54 }
 0x182   : > { %4235 = vst [vmem:[#allocation86_spill] sm:$0xff] %v3250_v14  ;;  %v852_v47 = vmax.f32 %v3253_v18, %v3256_v62  ;;  %2084 = vpow2.f32 %v1070_v34  ;;  %v1082_v37 = vmul.f32 1.442695, %v3266_v53  ;;  %v1084_v34 = vmul.f32 1.442695, %v3270_v55 }
 0x183   : > { %4236 = vst [vmem:[#allocation87_spill] sm:$0xff] %v3253_v18  ;;  %v849_v20 = vmax.f32 %v848_v46, %v3250_v14  ;;  %2086 = vpow2.f32 %v1076_v2 }
 0x184   : > { %4237 = vst [vmem:[#allocation88_spill] sm:$0xff] %v3256_v62  ;;  %2088 = vpow2.f32 %v1078_v61  ;;  %v3299_v62 = vsub.f32 %v4246_v42, %v776_v16  ;;  %v4254_v42 = vld [vmem:[#allocation7_spill] sm:$0xff] }
 0x185   : > { %4238 = vst [vmem:[#allocation89_spill] sm:$0xff] %v3260_v45  ;;  %850 = vmax.xlane.f32.xlu0 %v849_v20  ;;  %v3293_v20 = vpop.eup %2076  ;;  %2090 = vpow2.f32 %v1080_v48  ;;  %v1086_v45 = vmul.f32 1.442695, %v3277_v43  ;;  %v4252_v48 = vld [vmem:[#allocation6_spill] sm:$0xff] }
 0x186   : > { %4239 = vst [vmem:[#allocation90_spill] sm:$0xff] %v3266_v53  ;;  %v613_v46 = vpop.f32.mrf.mxu2  ;;  %v702_v8 = vpop.f32.mrf.mxu3  ;;  %v4248_v53 = vld [vmem:[#allocation10_spill] sm:$0xff]  ;;  %2092 = vpow2.f32 %v1082_v37  ;;  %v1096_v37 = vmul.f32 1.442695, %v3299_v62 }
 0x187   : > { %4240 = vst [vmem:[#allocation91_spill] sm:$0xff] %v3270_v55  ;;  %v3281_v36 = vadd.f32 %v613_v46, %v2609_v58  ;;  %v3284_v6 = vadd.f32 %v702_v8, %v2611_v59  ;;  %v437_v30 = vpop.f32.mrf.mxu0  ;;  %v526_v7 = vpop.f32.mrf.mxu1  ;;  %v3302_v18 = vsub.f32 %v4248_v53, %v776_v16  ;;  %v1088_v53 = vmul.f32 1.442695, %v3291_v60 }
 0x188   : > { %4241 = vst [vmem:[#allocation92_spill] sm:$0xff] %v3277_v43  ;;  %v2079_v8 = vpop.eup %2078  ;;  %v3305_v10 = vadd.f32 %v437_v30, %v2595_v51  ;;  %v3308_v61 = vadd.f32 %v526_v7, %v2597_v52  ;;  %v3315_v43 = vsub.f32 %v4252_v48, %v3272_v54  ;;  %2094 = vpow2.f32 %v1084_v34  ;;  %v781_v7 = vpop.xlane.xlu1 %780 }
 0x189   : > { %4242 = vst [vmem:[#allocation93_spill] sm:$0xff] %v3281_v36  ;;  %v853_v46 = vmax.f32 %v852_v47, %v3281_v36  ;;  %v2081_v2 = vpop.eup %2080  ;;  %v3319_v36 = vsub.f32 %v4254_v42, %v3272_v54  ;;  %2096 = vpow2.f32 %v1086_v45  ;;  %v3329_v42 = vsub.f32 %v2847_v44, %v776_v16 }
 0x18a   : > { %4243 = vst [vmem:[#allocation94_spill] sm:$0xff] %v3284_v6  ;;  %v3311_v47 = vpop.eup %2082  ;;  %v1301_v4 = vadd.f32 %v2081_v2, %v2079_v8  ;;  %v857_v34 = vmax.f32 %v3305_v10, %v3308_v61  ;;  %2098 = vpow2.f32 %v1088_v53  ;;  %v4260_v2 = vld [vmem:[#allocation12_spill] sm:$0xff] }
 0x18b   : > { %4245 = vst [vmem:[#allocation5_spill] sm:$0xff] %v3291_v60  ;;  %v854_v55 = vmax.f32 %v853_v46, %v3284_v6  ;;  %v3322_v30 = vpop.eup %2084  ;;  %v4256_v46 = vld [vmem:[#allocation11_spill] sm:$0xff]  ;;  %v1098_v60 = vmul.f32 1.442695, %v3302_v18  ;;  %v1092_v8 = vmul.f32 1.442695, %v3319_v36  ;;  %v3340_v33 = vsub.f32 %v4260_v2, %v781_v7 }
 0x18c   : > { %4247 = vst [vmem:[#allocation9_spill] sm:$0xff] %v3299_v62  ;;  %v2087_v14 = vpop.eup %2086  ;;  %v3325_v6 = vsub.f32 %v4256_v46, %v776_v16  ;;  %v1090_v62 = vmul.f32 1.442695, %v3315_v43  ;;  %2100 = vpow2.f32 %v1096_v37 }
 0x18d   : > { %4249 = vst [vmem:[#allocation10_spill] sm:$0xff] %v3302_v18  ;;  %855 = vmax.xlane.f32.xlu1 %v854_v55  ;;  %v2089_v5 = vpop.eup %2088  ;;  %2102 = vpow2.f32 %v1098_v60  ;;  %v1302_v37 = vadd.f32 %v2087_v14, %v1301_v4  ;;  %v4269_v60 = vld [vmem:[#allocation15_spill] sm:$0xff] }
 0x18e   : > { %4250 = vst [vmem:[#allocation95_spill] sm:$0xff] %v3305_v10  ;;  %v615_v48 = vpop.f32.mrf.mxu2  ;;  %v704_v21 = vpop.f32.mrf.mxu3  ;;  %v1100_v53 = vmul.f32 1.442695, %v3325_v6  ;;  %2104 = vpow2.f32 %v1090_v62 }
 0x18f   : > { %4251 = vst [vmem:[#allocation96_spill] sm:$0xff] %v3308_v61  ;;  %v3335_v55 = vadd.f32 %v615_v48, %v2609_v58  ;;  %v440_v45 = vpop.f32.mrf.mxu0  ;;  %v529_v46 = vpop.f32.mrf.mxu1  ;;  %v3344_v16 = vadd.f32 %v704_v21, %v2611_v59  ;;  %2106 = vpow2.f32 %v1092_v8 }
 0x190   : > { %4253 = vst [vmem:[#allocation6_spill] sm:$0xff] %v3315_v43  ;;  %v2091_v28 = vpop.eup %2090  ;;  %v3347_v18 = vadd.f32 %v440_v45, %v2595_v51  ;;  %v3350_v48 = vadd.f32 %v529_v46, %v2597_v52  ;;  %v4265_v43 = vld [vmem:[#allocation13_spill] sm:$0xff]  ;;  %v4267_v45 = vld [vmem:[#allocation14_spill] sm:$0xff]  ;;  %v1104_v46 = vmul.f32 1.442695, %v3340_v33  ;;  %2108 = vpow2.f32 %v1100_v53 }
 0x191   : > { %4255 = vst [vmem:[#allocation7_spill] sm:$0xff] %v3319_v36  ;;  %v858_v44 = vmax.f32 %v857_v34, %v3335_v55  ;;  %v2093_v61 = vpop.eup %2092  ;;  %v3354_v36 = vsub.f32 %v4265_v43, %v781_v7  ;;  %v1102_v34 = vmul.f32 1.442695, %v3329_v42  ;;  %v3361_v10 = vsub.f32 %v4267_v45, %v781_v7  ;;  %v3372_v45 = vpop.xlane.xlu2 %785 }
 0x192   : > { %4257 = vst [vmem:[#allocation11_spill] sm:$0xff] %v3325_v6  ;;  %v2095_v2 = vpop.eup %2094  ;;  %v862_v43 = vmax.f32 %v3347_v18, %v3350_v48 }
 0x193   : > { %4258 = vst [vmem:[#allocation97_spill] sm:$0xff] %v3329_v42  ;;  %v859_v21 = vmax.f32 %v858_v44, %v3344_v16  ;;  %v3369_v42 = vsub.f32 %v4269_v60, %v781_v7  ;;  %v1106_v44 = vmul.f32 1.442695, %v3354_v36  ;;  %2110 = vpow2.f32 %v1102_v34 }
 0x194   : > { %4259 = vst [vmem:[#allocation98_spill] sm:$0xff] %v3335_v55  ;;  %v3358_v55 = vpop.eup %2096  ;;  %2112 = vpow2.f32 %v1104_v46  ;;  %v1108_v53 = vmul.f32 1.442695, %v3361_v10 }
 0x195   : > { %4261 = vst [vmem:[#allocation12_spill] sm:$0xff] %v3340_v33  ;;  %860 = vmax.xlane.f32.xlu2 %v859_v21  ;;  %v3366_v6 = vpop.eup %2098  ;;  %v1303_v33 = vadd.f32 %v2089_v5, %v1302_v37  ;;  %2114 = vpow2.f32 %v1106_v44  ;;  %v1110_v46 = vmul.f32 1.442695, %v3369_v42  ;;  %v4276_v5 = vld [vmem:[#allocation16_spill] sm:$0xff] }
 0x196   : > { %4262 = vst [vmem:[#allocation99_spill] sm:$0xff] %v3344_v16  ;;  %v618_v62 = vpop.f32.mrf.mxu2  ;;  %v707_v16 = vpop.f32.mrf.mxu3  ;;  %2116 = vpow2.f32 %v1108_v53 }
 0x197   : > { %4263 = vst [vmem:[#allocation100_spill] sm:$0xff] %v3347_v18  ;;  %v3375_v14 = vadd.f32 %v618_v62, %v2609_v58  ;;  %v3378_v4 = vadd.f32 %v707_v16, %v2611_v59  ;;  %v442_v8 = vpop.f32.mrf.mxu0  ;;  %v2101_v21 = vpop.eup %2100  ;;  %v4273_v62 = vld [vmem:[#allocation20_spill] sm:$0xff]  ;;  %v4275_v16 = vld [vmem:[#allocation21_spill] sm:$0xff] }
 0x198   : > { %4264 = vst [vmem:[#allocation101_spill] sm:$0xff] %v3350_v48  ;;  %v531_v7 = vpop.f32.mrf.mxu1  ;;  %v791_v60 = vpop.xlane.xlu0 %790 }
 0x199   : > { %4266 = vst [vmem:[#allocation13_spill] sm:$0xff] %v3354_v36  ;;  %v1306_v36 = vadd.f32 %v2093_v61, %v2091_v28  ;;  %v2103_v48 = vpop.eup %2102  ;;  %v863_v34 = vmax.f32 %v862_v43, %v3375_v14  ;;  %v3383_v18 = vsub.f32 %v2889_v19, %v791_v60  ;;  %v3386_v15 = vsub.f32 %v4273_v62, %v791_v60 }
 0x19a   : > { %4268 = vst [vmem:[#allocation14_spill] sm:$0xff] %v3361_v10  ;;  %v3389_v24 = vsub.f32 %v4275_v16, %v791_v60  ;;  %v3391_v9 = vpop.eup %2104  ;;  %v3396_v28 = vsub.f32 %v4276_v5, %v3372_v45  ;;  %v3399_v61 = vadd.f32 %v442_v8, %v2595_v51  ;;  %v3404_v37 = vadd.f32 %v531_v7, %v2597_v52  ;;  %v4280_v7 = vld [vmem:[#allocation17_spill] sm:$0xff] }
 0x19b   : > { %4270 = vst [vmem:[#allocation15_spill] sm:$0xff] %v3369_v42  ;;  %v3401_v19 = vpop.eup %2106  ;;  %v1120_v43 = vmul.f32 1.442695, %v3383_v18  ;;  %v1122_v62 = vmul.f32 1.442695, %v3386_v15  ;;  %v864_v44 = vmax.f32 %v863_v34, %v3378_v4  ;;  %v4278_v42 = vld [vmem:[#allocation22_spill] sm:$0xff]  ;;  %v1316_v51 = vadd.f32 %v2103_v48, %v2101_v21 }
 0x19c   : > { %4271 = vst [vmem:[#allocation102_spill] sm:$0xff] %v3378_v4  ;;  %v2109_v16 = vpop.eup %2108  ;;  %v3410_v10 = vsub.f32 %v4278_v42, %v791_v60  ;;  %v1124_v5 = vmul.f32 1.442695, %v3389_v24  ;;  %v1307_v4 = vadd.f32 %v2095_v2, %v1306_v36  ;;  %v867_v42 = vmax.f32 %v3399_v61, %v3404_v37  ;;  %v4282_v2 = vld [vmem:[#allocation23_spill] sm:$0xff] }
 0x19d   : > { %4272 = vst [vmem:[#allocation103_spill] sm:$0xff] %v3383_v18  ;;  %v2111_v8 = vpop.eup %2110  ;;  %2118 = vpow2.f32 %v1120_v43  ;;  %865 = vmax.xlane.f32.xlu0 %v864_v44  ;;  %1304 = vadd.xlane.f32.xlu2 %v1303_v33  ;;  %v3415_v18 = vsub.f32 %v4280_v7, %v3372_v45  ;;  %v1296_v33 = vadd.f32 %v3293_v20, %v3286_v41  ;;  %v4283_v7 = vld [vmem:[#allocation24_spill] sm:$0xff] }
 0x19e   : > { %4274 = vst [vmem:[#allocation20_spill] sm:$0xff] %v3386_v15  ;;  %v2113_v52 = vpop.eup %2112  ;;  %v1112_v15 = vmul.f32 1.442695, %v3396_v28  ;;  %2120 = vpow2.f32 %v1122_v62  ;;  %v620_v34 = vpop.f32.mrf.mxu2  ;;  %v1126_v60 = vmul.f32 1.442695, %v3410_v10  ;;  %v1317_v44 = vadd.f32 %v2109_v16, %v1316_v51  ;;  %v4286_v20 = vld [vmem:[#allocation8_spill] sm:$0xff] }
 0x19f   : > { %4277 = vst [vmem:[#allocation21_spill] sm:$0xff] %v3396_v28  ;;  %v709_v53 = vpop.f32.mrf.mxu3  ;;  %2122 = vpow2.f32 %v1110_v46  ;;  %v3421_v48 = vadd.f32 %v620_v34, %v2609_v58  ;;  %v2115_v21 = vpop.eup %2114  ;;  %v4285_v34 = vld [vmem:[#allocation29_spill] sm:$0xff]  ;;  %v1308_v16 = vadd.f32 %v3358_v55, %v1307_v4 }
 0x1a0   : > { %4279 = vst [vmem:[#allocation16_spill] sm:$0xff] %v3410_v10  ;;  %2124 = vpow2.f32 %v1124_v5  ;;  %v3427_v43 = vadd.f32 %v709_v53, %v2611_v59  ;;  %v796_v62 = vpop.xlane.xlu1 %795  ;;  %v2117_v41 = vpop.eup %2116  ;;  %v3441_v5 = vsub.f32 %v4286_v20, %v3272_v54  ;;  %v1114_v59 = vmul.f32 1.442695, %v3415_v18 }
 0x1a1   : > { %4281 = vst [vmem:[#allocation22_spill] sm:$0xff] %v3415_v18  ;;  %v868_v36 = vmax.f32 %v867_v42, %v3421_v48  ;;  %v3431_v46 = vsub.f32 %v4282_v2, %v796_v62  ;;  %v3434_v58 = vsub.f32 %v4283_v7, %v796_v62  ;;  %v3437_v28 = vsub.f32 %v4285_v34, %v796_v62 }
 0x1a2   : > { %2126 = vpow2.f32 %v1112_v15  ;;  %v1321_v7 = vadd.f32 %v2115_v21, %v2113_v52  ;;  %v3449_v10 = vsub.f32 %v2933_v3, %v796_v62  ;;  %v1318_v15 = vadd.f32 %v2111_v8, %v1317_v44  ;;  %v4288_v3 = vld [vmem:[#allocation19_spill] sm:$0xff] }
 0x1a3   : > { %4284 = vst [vmem:[#allocation17_spill] sm:$0xff] %v3434_v58  ;;  %v2119_v51 = vpop.eup %2118  ;;  %v1128_v53 = vmul.f32 1.442695, %v3431_v46  ;;  %v1130_v42 = vmul.f32 1.442695, %v3434_v58  ;;  %v869_v2 = vmax.f32 %v868_v36, %v3427_v43  ;;  %2128 = vpow2.f32 %v1126_v60  ;;  %v4287_v58 = vld [vmem:[#allocation18_spill] sm:$0xff] }
 0x1a4   : > { %v2121_v34 = vpop.eup %2120  ;;  %v1132_v54 = vmul.f32 1.442695, %v3437_v28  ;;  %v1094_v18 = vmul.f32 1.442695, %v3441_v5  ;;  %v3455_v36 = vsub.f32 %v4287_v58, %v3372_v45  ;;  %v3459_v52 = vsub.f32 %v4288_v3, %v3372_v45 }
 0x1a5   : > { %v2123_v20 = vpop.eup %2122  ;;  %2130 = vpow2.f32 %v1128_v53  ;;  %870 = vmax.xlane.f32.xlu1 %v869_v2  ;;  %1309 = vadd.xlane.f32.xlu0 %v1308_v16  ;;  %v1331_v55 = vadd.f32 %v2121_v34, %v2119_v51  ;;  %v1297_v21 = vadd.f32 %v3311_v47, %v1296_v33  ;;  %v1322_v60 = vadd.f32 %v2117_v41, %v1321_v7 }
 0x1a6   : > { %v2125_v4 = vpop.eup %2124  ;;  %2132 = vpow2.f32 %v1130_v42  ;;  %1319 = vadd.xlane.f32.xlu2 %v1318_v15  ;;  %v1260_v8 = vpop.xlane.xlu2 %1259  ;;  %v1134_v44 = vmul.f32 1.442695, %v3449_v10  ;;  %v1311_v58 = vadd.f32 %v3391_v9, %v3366_v6  ;;  %v1116_v45 = vmul.f32 1.442695, %v3455_v36 }
 0x1a7   : > { %2134 = vpow2.f32 %v1114_v59  ;;  %v1332_v16 = vadd.f32 %v2125_v4, %v1331_v55  ;;  %v1118_v59 = vmul.f32 1.442695, %v3459_v52  ;;  %v1298_v47 = vadd.f32 %v3322_v30, %v1297_v21 }
 0x1a8   : > { %v2127_v62 = vpop.eup %2126  ;;  %2136 = vpow2.f32 %v1132_v54  ;;  %v1323_v33 = vadd.f32 %v2123_v20, %v1322_v60  ;;  %v1312_v9 = vadd.f32 %v3401_v19, %v1311_v58  ;;  %v4289_v60 = vld [vmem:[#allocation25_spill] sm:$0xff] }
 0x1a9   : > { %2138 = vlog2.f32 %v1260_v8  ;;  %v2129_v51 = vpop.eup %2128 }
 0x1aa   : > { %2140 = vpow2.f32 %v1094_v18  ;;  %v1333_v42 = vadd.f32 %v2129_v51, %v1332_v16  ;;  %v4290_v16 = vld [vmem:[#allocation26_spill] sm:$0xff]  ;;  %v4291_v51 = vld [vmem:[#allocation27_spill] sm:$0xff] }
 0x1ab   : > { %v2131_v53 = vpop.eup %2130  ;;  %2142 = vpow2.f32 %v1134_v44 }
 0x1ac   : > { %v2133_v41 = vpop.eup %2132  ;;  %2144 = vpow2.f32 %v1116_v45 }
 0x1ad   : > { %v2135_v2 = vpop.eup %2134  ;;  %1299 = vadd.xlane.f32.xlu1 %v1298_v47  ;;  %1324 = vadd.xlane.f32.xlu0 %v1323_v33  ;;  %v1336_v6 = vadd.f32 %v2133_v41, %v2131_v53  ;;  %2146 = vpow2.f32 %v1118_v59 }
 0x1ae   : > { %v2137_v18 = vpop.eup %2136  ;;  %1334 = vadd.xlane.f32.xlu2 %v1333_v42  ;;  %v801_v34 = vpop.xlane.xlu2 %800  ;;  %v1326_v8 = vadd.f32 %v2135_v2, %v2127_v62 }
 0x1af   : > { %v2139_v7 = vpop.eup %2138  ;;  %v1265_v54 = vpop.xlane.xlu0 %1264  ;;  %v1337_v30 = vadd.f32 %v2137_v18, %v1336_v6  ;;  %v3473_v55 = vsub.f32 %v2954_v39, %v801_v34  ;;  %v3476_v4 = vsub.f32 %v2957_v32, %v801_v34  ;;  %v3479_v19 = vsub.f32 %v2969_v23, %v801_v34  ;;  %v4292_v39 = vld [vmem:[#allocation28_spill] sm:$0xff] }
 0x1b0   : > { %v2141_v15 = vpop.eup %2140  ;;  %v1417_v20 = vmul.f32 0.6931472, %v2139_v7  ;;  %2148 = vlog2.f32 %v1265_v54  ;;  %v3485_v53 = vsub.f32 %v2988_v56, %v801_v34  ;;  %v4293_v34 = vld [vmem:[#allocation38_spill] sm:$0xff] }
 0x1b1   : > { %v1313_v3 = vadd.f32 %v2141_v15, %v1312_v9  ;;  %v2143_v21 = vpop.eup %2142  ;;  %v1136_v32 = vmul.f32 1.442695, %v3473_v55  ;;  %v1138_v23 = vmul.f32 1.442695, %v3476_v4  ;;  %v1140_v62 = vmul.f32 1.442695, %v3479_v19 }
 0x1b2   : > { %v1480_v44 = vsub.f32 %v4289_v60, %v1417_v20  ;;  %v1481_v58 = vsub.f32 %v4290_v16, %v1417_v20  ;;  %v1482_v45 = vsub.f32 %v4291_v51, %v1417_v20  ;;  %v1483_v59 = vsub.f32 %v4292_v39, %v1417_v20  ;;  %v2145_v33 = vpop.eup %2144  ;;  %v4296_v60 = vld [vmem:[#allocation32_spill] sm:$0xff] }
 0x1b3   : > { %v1338_v47 = vadd.f32 %v2143_v21, %v1337_v30  ;;  %v2147_v41 = vpop.eup %2146  ;;  %2150 = vpow2.f32 %v1136_v32  ;;  %v1327_v56 = vadd.f32 %v2145_v33, %v1326_v8  ;;  %v1142_v42 = vmul.f32 1.442695, %v3485_v53  ;;  %v4295_v21 = vld [vmem:[#allocation31_spill] sm:$0xff] }
 0x1b4   : > { %1608 = vst [vmem:[%s3490_s6] sm:$0xff] %v1480_v44  ;;  %2152 = vpow2.f32 %v1138_v23 }
 0x1b5   : > { %1609 = vst [vmem:[%s3490_s6 + $0x8] sm:$0xff] %v1481_v58  ;;  %1314 = vadd.xlane.f32.xlu1 %v1313_v3  ;;  %1339 = vadd.xlane.f32.xlu0 %v1338_v47  ;;  %2154 = vpow2.f32 %v1140_v62  ;;  %v1328_v20 = vadd.f32 %v2147_v41, %v1327_v56  ;;  %v4294_v3 = vld [vmem:[#allocation30_spill] sm:$0xff]  ;;  %v4297_v58 = vld [vmem:[#allocation33_spill] sm:$0xff] }
 0x1b6   : > { %1610 = vst [vmem:[%s3490_s6 + $0x10] sm:$0xff] %v1482_v45  ;;  %v2149_v2 = vpop.eup %2148  ;;  %v1270_v9 = vpop.xlane.xlu1 %1269 }
 0x1b7   : > { %1611 = vst [vmem:[%s3490_s6 + $0x18] sm:$0xff] %v1483_v59  ;;  %v806_v6 = vpop.xlane.xlu0 %805  ;;  %v1419_v18 = vmul.f32 0.6931472, %v2149_v2  ;;  %2156 = vlog2.f32 %v1270_v9 }
 0x1b8   : > { %v3499_v7 = vsub.f32 %v2981_v1, %v806_v6  ;;  %v3502_v54 = vsub.f32 %v4293_v34, %v806_v6  ;;  %v3505_v30 = vsub.f32 %v3002_v35, %v806_v6  ;;  %v3508_v15 = vsub.f32 %v3013_v22, %v806_v6  ;;  %v4298_v34 = vld [vmem:[#allocation34_spill] sm:$0xff] }
 0x1b9   : > { %2158 = vpow2.f32 %v1142_v42  ;;  %v1484_v8 = vsub.f32 %v4294_v3, %v1419_v18  ;;  %v1485_v1 = vsub.f32 %v4295_v21, %v1419_v18  ;;  %v1486_v44 = vsub.f32 %v4296_v60, %v1419_v18  ;;  %v2151_v16 = vpop.eup %2150  ;;  %v4299_v3 = vld [vmem:[#allocation35_spill] sm:$0xff]  ;;  %v4300_v21 = vld [vmem:[#allocation36_spill] sm:$0xff] }
 0x1ba   : > { %v1487_v51 = vsub.f32 %v4297_v58, %v1419_v18  ;;  %v1144_v45 = vmul.f32 1.442695, %v3499_v7  ;;  %v1146_v35 = vmul.f32 1.442695, %v3502_v54  ;;  %v1148_v22 = vmul.f32 1.442695, %v3505_v30  ;;  %v2153_v39 = vpop.eup %2152 }
 0x1bb   : > { %1612 = vst [vmem:[%s3490_s6 + $0x20] sm:$0xff] %v1484_v8  ;;  %v1150_v59 = vmul.f32 1.442695, %v3508_v15  ;;  %v1341_v32 = vadd.f32 %v2153_v39, %v2151_v16  ;;  %v2155_v23 = vpop.eup %2154 }
 0x1bc   : > { %1613 = vst [vmem:[%s3490_s6 + $0x28] sm:$0xff] %v1485_v1  ;;  %2160 = vpow2.f32 %v1144_v45 }
 0x1bd   : > { %1329 = vadd.xlane.f32.xlu1 %v1328_v20  ;;  %1614 = vst [vmem:[%s3490_s6 + $0x30] sm:$0xff] %v1486_v44  ;;  %2162 = vpow2.f32 %v1146_v35  ;;  %v2157_v47 = vpop.eup %2156  ;;  %v1342_v41 = vadd.f32 %v2155_v23, %v1341_v32  ;;  %v4301_v44 = vld [vmem:[#allocation37_spill] sm:$0xff] }
 0x1be   : > { %1615 = vst [vmem:[%s3490_s6 + $0x38] sm:$0xff] %v1487_v51  ;;  %2164 = vpow2.f32 %v1148_v22  ;;  %v811_v33 = vpop.xlane.xlu1 %810  ;;  %v1275_v62 = vpop.xlane.xlu2 %1274  ;;  %v1421_v42 = vmul.f32 0.6931472, %v2157_v47 }
 0x1bf   : > { %v2159_v56 = vpop.eup %2158  ;;  %2166 = vpow2.f32 %v1150_v59  ;;  %v3523_v2 = vsub.f32 %v3017_v17, %v811_v33  ;;  %v3526_v9 = vsub.f32 %v3020_v57, %v811_v33  ;;  %v3529_v6 = vsub.f32 %v3032_v25, %v811_v33 }
 0x1c0   : > { %v3532_v18 = vsub.f32 %v3052_v13, %v811_v33  ;;  %2168 = vlog2.f32 %v1275_v62  ;;  %v1488_v20 = vsub.f32 %v4298_v34, %v1421_v42  ;;  %v1489_v8 = vsub.f32 %v4299_v3, %v1421_v42 }
 0x1c1   : > { %v1490_v1 = vsub.f32 %v4300_v21, %v1421_v42  ;;  %v1343_v17 = vadd.f32 %v2159_v56, %v1342_v41  ;;  %v1491_v57 = vsub.f32 %v4301_v44, %v1421_v42  ;;  %v1152_v25 = vmul.f32 1.442695, %v3523_v2  ;;  %v4302_v42 = vld [vmem:[#allocation39_spill] sm:$0xff] }
 0x1c2   : > { %v2161_v60 = vpop.eup %2160  ;;  %v1154_v16 = vmul.f32 1.442695, %v3526_v9  ;;  %v1156_v13 = vmul.f32 1.442695, %v3529_v6  ;;  %1616 = vst [vmem:[%s3490_s6 + $0x40] sm:$0xff] %v1488_v20  ;;  %v4303_v20 = vld [vmem:[#allocation40_spill] sm:$0xff] }
 0x1c3   : > { %v2163_v58 = vpop.eup %2162  ;;  %v1158_v51 = vmul.f32 1.442695, %v3532_v18  ;;  %1617 = vst [vmem:[%s3490_s6 + $0x48] sm:$0xff] %v1489_v8  ;;  %2170 = vpow2.f32 %v1152_v25  ;;  %v4304_v8 = vld [vmem:[#allocation41_spill] sm:$0xff] }
 0x1c4   : > { %v2165_v45 = vpop.eup %2164  ;;  %v1346_v35 = vadd.f32 %v2163_v58, %v2161_v60  ;;  %1618 = vst [vmem:[%s3490_s6 + $0x50] sm:$0xff] %v1490_v1  ;;  %2172 = vpow2.f32 %v1154_v16 }
 0x1c5   : > { %1344 = vadd.xlane.f32.xlu1 %v1343_v17  ;;  %v2167_v22 = vpop.eup %2166  ;;  %1619 = vst [vmem:[%s3490_s6 + $0x58] sm:$0xff] %v1491_v57  ;;  %2174 = vpow2.f32 %v1156_v13  ;;  %v4305_v17 = vld [vmem:[#allocation42_spill] sm:$0xff] }
 0x1c6   : > { %v2169_v39 = vpop.eup %2168  ;;  %v816_v59 = vpop.xlane.xlu2 %815  ;;  %v1347_v23 = vadd.f32 %v2165_v45, %v1346_v35  ;;  %2176 = vpow2.f32 %v1158_v51 }
 0x1c7   : > { %v1280_v32 = vpop.xlane.xlu0 %1279  ;;  %v1423_v47 = vmul.f32 0.6931472, %v2169_v39  ;;  %v3547_v33 = vsub.f32 %v3045_v50, %v816_v59  ;;  %v3550_v62 = vsub.f32 %v3048_v31, %v816_v59  ;;  %v3553_v41 = vsub.f32 %v3066_v49, %v816_v59 }
 0x1c8   : > { %2178 = vlog2.f32 %v1280_v32  ;;  %v1348_v56 = vadd.f32 %v2167_v22, %v1347_v23  ;;  %v3559_v1 = vsub.f32 %v3077_v0, %v816_v59 }
 0x1c9   : > { %v1492_v34 = vsub.f32 %v4302_v42, %v1423_v47  ;;  %v1493_v3 = vsub.f32 %v4303_v20, %v1423_v47  ;;  %v1494_v21 = vsub.f32 %v4304_v8, %v1423_v47  ;;  %v2171_v50 = vpop.eup %2170  ;;  %v1495_v31 = vsub.f32 %v4305_v17, %v1423_v47  ;;  %v4308_v20 = vld [vmem:[#allocation45_spill] sm:$0xff]  ;;  %v4309_v8 = vld [vmem:[#allocation46_spill] sm:$0xff] }
 0x1ca   : > { %v1160_v49 = vmul.f32 1.442695, %v3547_v33  ;;  %v1162_v60 = vmul.f32 1.442695, %v3550_v62  ;;  %1349 = vadd.xlane.f32.xlu2 %v1348_v56  ;;  %v2173_v44 = vpop.eup %2172  ;;  %v1164_v57 = vmul.f32 1.442695, %v3553_v41 }
 0x1cb   : > { %1620 = vst [vmem:[%s3490_s6 + $0x60] sm:$0xff] %v1492_v34  ;;  %v2175_v25 = vpop.eup %2174  ;;  %v1351_v16 = vadd.f32 %v2173_v44, %v2171_v50  ;;  %v1166_v0 = vmul.f32 1.442695, %v3559_v1  ;;  %v4306_v56 = vld [vmem:[#allocation43_spill] sm:$0xff]  ;;  %v4307_v34 = vld [vmem:[#allocation44_spill] sm:$0xff] }
 0x1cc   : > { %1621 = vst [vmem:[%s3490_s6 + $0x68] sm:$0xff] %v1493_v3  ;;  %2180 = vpow2.f32 %v1160_v49  ;;  %v2177_v13 = vpop.eup %2176 }
 0x1cd   : > { %1622 = vst [vmem:[%s3490_s6 + $0x70] sm:$0xff] %v1494_v21  ;;  %2182 = vpow2.f32 %v1162_v60  ;;  %v1352_v35 = vadd.f32 %v2175_v25, %v1351_v16 }
 0x1ce   : > { %v2179_v58 = vpop.eup %2178  ;;  %1623 = vst [vmem:[%s3490_s6 + $0x78] sm:$0xff] %v1495_v31  ;;  %v1285_v51 = vpop.xlane.xlu1 %1284  ;;  %2184 = vpow2.f32 %v1164_v57 }
 0x1cf   : > { %v821_v45 = vpop.xlane.xlu0 %820  ;;  %v1425_v22 = vmul.f32 0.6931472, %v2179_v58  ;;  %2186 = vlog2.f32 %v1285_v51  ;;  %v1353_v47 = vadd.f32 %v2177_v13, %v1352_v35 }
 0x1d0   : > { %v3571_v39 = vsub.f32 %v3081_v38, %v821_v45  ;;  %v3574_v59 = vsub.f32 %v3084_v63, %v821_v45  ;;  %v3577_v32 = vsub.f32 %v3096_v29, %v821_v45  ;;  %v3580_v23 = vsub.f32 %v3116_v11, %v821_v45 }
 0x1d1   : > { %2188 = vpow2.f32 %v1166_v0  ;;  %v1496_v42 = vsub.f32 %v4306_v56, %v1425_v22  ;;  %v1497_v38 = vsub.f32 %v4307_v34, %v1425_v22  ;;  %v1498_v3 = vsub.f32 %v4308_v20, %v1425_v22  ;;  %1354 = vadd.xlane.f32.xlu0 %v1353_v47  ;;  %v4311_v56 = vld [vmem:[#allocation48_spill] sm:$0xff]  ;;  %v4312_v34 = vld [vmem:[#allocation49_spill] sm:$0xff] }
 0x1d2   : > { %v2181_v63 = vpop.eup %2180  ;;  %v1499_v21 = vsub.f32 %v4309_v8, %v1425_v22  ;;  %v1168_v29 = vmul.f32 1.442695, %v3571_v39  ;;  %v1170_v50 = vmul.f32 1.442695, %v3574_v59  ;;  %v1172_v11 = vmul.f32 1.442695, %v3577_v32 }
 0x1d3   : > { %v2183_v17 = vpop.eup %2182  ;;  %1624 = vst [vmem:[%s3490_s6 + $0x80] sm:$0xff] %v1496_v42  ;;  %v1174_v31 = vmul.f32 1.442695, %v3580_v23  ;;  %v4310_v22 = vld [vmem:[#allocation47_spill] sm:$0xff] }
 0x1d4   : > { %1625 = vst [vmem:[%s3490_s6 + $0x88] sm:$0xff] %v1497_v38  ;;  %2190 = vpow2.f32 %v1168_v29  ;;  %v1356_v49 = vadd.f32 %v2183_v17, %v2181_v63  ;;  %v2185_v60 = vpop.eup %2184 }
 0x1d5   : > { %1626 = vst [vmem:[%s3490_s6 + $0x90] sm:$0xff] %v1498_v3  ;;  %2192 = vpow2.f32 %v1170_v50  ;;  %v2187_v44 = vpop.eup %2186  ;;  %v4313_v3 = vld [vmem:[#allocation50_spill] sm:$0xff] }
 0x1d6   : > { %1627 = vst [vmem:[%s3490_s6 + $0x98] sm:$0xff] %v1499_v21  ;;  %2194 = vpow2.f32 %v1172_v11  ;;  %v826_v57 = vpop.xlane.xlu1 %825  ;;  %v1290_v25 = vpop.xlane.xlu2 %1289  ;;  %v1357_v16 = vadd.f32 %v2185_v60, %v1356_v49  ;;  %v1427_v0 = vmul.f32 0.6931472, %v2187_v44 }
 0x1d7   : > { %v2189_v13 = vpop.eup %2188  ;;  %2196 = vpow2.f32 %v1174_v31  ;;  %v3595_v58 = vsub.f32 %v3109_v27, %v826_v57  ;;  %v3598_v51 = vsub.f32 %v3112_v40, %v826_v57  ;;  %v3601_v45 = vsub.f32 %v3130_v26, %v826_v57 }
 0x1d8   : > { %2198 = vlog2.f32 %v1290_v25  ;;  %v1358_v35 = vadd.f32 %v2189_v13, %v1357_v16  ;;  %v1500_v47 = vsub.f32 %v4310_v22, %v1427_v0  ;;  %v1501_v42 = vsub.f32 %v4311_v56, %v1427_v0  ;;  %v4315_v16 = vld [vmem:[#allocation60_spill] sm:$0xff] }
 0x1d9   : > { %v1502_v38 = vsub.f32 %v4312_v34, %v1427_v0  ;;  %v3607_v20 = vsub.f32 %v3141_v12, %v826_v57  ;;  %v1503_v40 = vsub.f32 %v4313_v3, %v1427_v0  ;;  %v1176_v26 = vmul.f32 1.442695, %v3595_v58  ;;  %v4314_v57 = vld [vmem:[#allocation59_spill] sm:$0xff]  ;;  %v4316_v0 = vld [vmem:[#allocation61_spill] sm:$0xff]  ;;  %v4317_v22 = vld [vmem:[#allocation64_spill] sm:$0xff] }
 0x1da   : > { %v2191_v27 = vpop.eup %2190  ;;  %v1178_v63 = vmul.f32 1.442695, %v3598_v51  ;;  %1359 = vadd.xlane.f32.xlu1 %v1358_v35  ;;  %1628 = vst [vmem:[%s3490_s6 + $0xa0] sm:$0xff] %v1500_v47  ;;  %v1180_v21 = vmul.f32 1.442695, %v3601_v45  ;;  %v4320_v3 = vld [vmem:[#allocation53_spill] sm:$0xff] }
 0x1db   : > { %v2193_v8 = vpop.eup %2192  ;;  %1629 = vst [vmem:[%s3490_s6 + $0xa8] sm:$0xff] %v1501_v42  ;;  %2200 = vpow2.f32 %v1176_v26  ;;  %v1182_v12 = vmul.f32 1.442695, %v3607_v20  ;;  %v4318_v42 = vld [vmem:[#allocation51_spill] sm:$0xff] }
 0x1dc   : > { %v2195_v29 = vpop.eup %2194  ;;  %v1361_v50 = vadd.f32 %v2193_v8, %v2191_v27  ;;  %1630 = vst [vmem:[%s3490_s6 + $0xb0] sm:$0xff] %v1502_v38  ;;  %2202 = vpow2.f32 %v1178_v63  ;;  %v4319_v38 = vld [vmem:[#allocation52_spill] sm:$0xff]  ;;  %v4321_v63 = vld [vmem:[#allocation54_spill] sm:$0xff] }
 0x1dd   : > { %v2197_v11 = vpop.eup %2196  ;;  %1631 = vst [vmem:[%s3490_s6 + $0xb8] sm:$0xff] %v1503_v40  ;;  %2204 = vpow2.f32 %v1180_v21 }
 0x1de   : > { %v2199_v17 = vpop.eup %2198  ;;  %v831_v31 = vpop.xlane.xlu2 %830  ;;  %v1362_v60 = vadd.f32 %v2195_v29, %v1361_v50 }
 0x1df   : > { %v1295_v49 = vpop.xlane.xlu0 %1294  ;;  %v1429_v44 = vmul.f32 0.6931472, %v2199_v17  ;;  %v3619_v25 = vsub.f32 %v4314_v57, %v831_v31  ;;  %v3622_v13 = vsub.f32 %v4315_v16, %v831_v31  ;;  %v3625_v35 = vsub.f32 %v4316_v0, %v831_v31  ;;  %v4322_v0 = vld [vmem:[#allocation62_spill] sm:$0xff] }
 0x1e0   : > { %v3628_v47 = vsub.f32 %v4317_v22, %v831_v31  ;;  %2206 = vlog2.f32 %v1295_v49  ;;  %v1363_v56 = vadd.f32 %v2197_v11, %v1362_v60 }
 0x1e1   : > { %2208 = vpow2.f32 %v1182_v12  ;;  %v1504_v34 = vsub.f32 %v4318_v42, %v1429_v44  ;;  %v1505_v27 = vsub.f32 %v4319_v38, %v1429_v44  ;;  %v1506_v40 = vsub.f32 %v4320_v3, %v1429_v44  ;;  %v2201_v26 = vpop.eup %2200  ;;  %v4325_v38 = vld [vmem:[#allocation65_spill] sm:$0xff]  ;;  %v4327_v3 = vld [vmem:[#allocation68_spill] sm:$0xff] }
 0x1e2   : > { %v1507_v8 = vsub.f32 %v4321_v63, %v1429_v44  ;;  %v1184_v21 = vmul.f32 1.442695, %v3619_v25  ;;  %v1186_v29 = vmul.f32 1.442695, %v3622_v13  ;;  %v1188_v50 = vmul.f32 1.442695, %v3625_v35  ;;  %1364 = vadd.xlane.f32.xlu2 %v1363_v56  ;;  %v2203_v11 = vpop.eup %2202 }
 0x1e3   : > { %1632 = vst [vmem:[%s3490_s6 + $0xc0] sm:$0xff] %v1504_v34  ;;  %v1190_v12 = vmul.f32 1.442695, %v3628_v47  ;;  %v1366_v17 = vadd.f32 %v2203_v11, %v2201_v26  ;;  %v2205_v31 = vpop.eup %2204  ;;  %v4323_v56 = vld [vmem:[#allocation63_spill] sm:$0xff]  ;;  %v4329_v63 = vld [vmem:[#allocation66_spill] sm:$0xff] }
 0x1e4   : > { %1633 = vst [vmem:[%s3490_s6 + $0xc8] sm:$0xff] %v1505_v27  ;;  %2210 = vpow2.f32 %v1184_v21  ;;  %v4331_v21 = vld [vmem:[#allocation55_spill] sm:$0xff] }
 0x1e5   : > { %1634 = vst [vmem:[%s3490_s6 + $0xd0] sm:$0xff] %v1506_v40  ;;  %2212 = vpow2.f32 %v1186_v29  ;;  %v1367_v44 = vadd.f32 %v2205_v31, %v1366_v17  ;;  %v4334_v31 = vld [vmem:[#allocation58_spill] sm:$0xff] }
 0x1e6   : > { %v2207_v49 = vpop.eup %2206  ;;  %1635 = vst [vmem:[%s3490_s6 + $0xd8] sm:$0xff] %v1507_v8  ;;  %2214 = vpow2.f32 %v1188_v50  ;;  %v4332_v50 = vld [vmem:[#allocation56_spill] sm:$0xff] }
 0x1e7   : > { %v836_v60 = vpop.xlane.xlu0 %835  ;;  %v2209_v57 = vpop.eup %2208  ;;  %2216 = vpow2.f32 %v1190_v12  ;;  %v1431_v16 = vmul.f32 0.6931472, %v2207_v49  ;;  %v4333_v12 = vld [vmem:[#allocation57_spill] sm:$0xff] }
 0x1e8   : > { %v3643_v22 = vsub.f32 %v4322_v0, %v836_v60  ;;  %v3646_v42 = vsub.f32 %v4323_v56, %v836_v60  ;;  %v841_v34 = vpop.xlane.xlu1 %840  ;;  %v3649_v27 = vsub.f32 %v4325_v38, %v836_v60  ;;  %v3652_v40 = vsub.f32 %v4327_v3, %v836_v60 }
 0x1e9   : > { %v1368_v26 = vadd.f32 %v2209_v57, %v1367_v44  ;;  %v3655_v8 = vsub.f32 %v4329_v63, %v841_v34  ;;  %v1508_v29 = vsub.f32 %v4331_v21, %v1431_v16  ;;  %v1509_v11 = vsub.f32 %v4332_v50, %v1431_v16  ;;  %v4335_v57 = vld [vmem:[#allocation67_spill] sm:$0xff]  ;;  %v4336_v21 = vld [vmem:[#allocation69_spill] sm:$0xff] }
 0x1ea   : > { %4324 = vst [vmem:[#allocation23_spill] sm:$0xff] %v3646_v42  ;;  %v1510_v17 = vsub.f32 %v4333_v12, %v1431_v16  ;;  %v1511_v49 = vsub.f32 %v4334_v31, %v1431_v16  ;;  %v2211_v0 = vpop.eup %2210  ;;  %v1192_v56 = vmul.f32 1.442695, %v3643_v22  ;;  %v1194_v60 = vmul.f32 1.442695, %v3646_v42 }
 0x1eb   : > { %4326 = vst [vmem:[#allocation24_spill] sm:$0xff] %v3649_v27  ;;  %v1196_v44 = vmul.f32 1.442695, %v3649_v27  ;;  %1369 = vadd.xlane.f32.xlu0 %v1368_v26  ;;  %v3665_v38 = vsub.f32 %v4335_v57, %v841_v34  ;;  %v2213_v3 = vpop.eup %2212  ;;  %v1198_v63 = vmul.f32 1.442695, %v3652_v40  ;;  %v3670_v50 = vsub.f32 %v4336_v21, %v841_v34  ;;  %v4338_v57 = vld [vmem:[#allocation70_spill] sm:$0xff] }
 0x1ec   : > { %4328 = vst [vmem:[#allocation29_spill] sm:$0xff] %v3652_v40  ;;  %v2215_v16 = vpop.eup %2214  ;;  %2218 = vpow2.f32 %v1192_v56  ;;  %v1200_v12 = vmul.f32 1.442695, %v3655_v8  ;;  %v1371_v31 = vadd.f32 %v2213_v3, %v2211_v0  ;;  %v4340_v56 = vld [vmem:[#allocation71_spill] sm:$0xff]  ;;  %v4342_v0 = vld [vmem:[#allocation72_spill] sm:$0xff]  ;;  %v4346_v3 = vld [vmem:[#allocation74_spill] sm:$0xff] }
 0x1ed   : > { %4330 = vst [vmem:[#allocation8_spill] sm:$0xff] %v3655_v8  ;;  %v2217_v42 = vpop.eup %2216  ;;  %2220 = vpow2.f32 %v1194_v60  ;;  %v1202_v26 = vmul.f32 1.442695, %v3665_v38  ;;  %v1204_v21 = vmul.f32 1.442695, %v3670_v50  ;;  %v4344_v60 = vld [vmem:[#allocation73_spill] sm:$0xff] }
 0x1ee   : > { %1636 = vst [vmem:[%s3490_s6 + $0xe0] sm:$0xff] %v1508_v29  ;;  %2222 = vpow2.f32 %v1196_v44  ;;  %v3678_v29 = vsub.f32 %v4338_v57, %v841_v34  ;;  %v1372_v40 = vadd.f32 %v2215_v16, %v1371_v31 }
 0x1ef   : > { %4337 = vst [vmem:[#allocation18_spill] sm:$0xff] %v3670_v50  ;;  %2224 = vpow2.f32 %v1198_v63 }
 0x1f0   : > { %1637 = vst [vmem:[%s3490_s6 + $0xe8] sm:$0xff] %v1509_v11  ;;  %v846_v27 = vpop.xlane.xlu2 %845  ;;  %2226 = vpow2.f32 %v1200_v12  ;;  %v1373_v11 = vadd.f32 %v2217_v42, %v1372_v40  ;;  %v1206_v34 = vmul.f32 1.442695, %v3678_v29 }
 0x1f1   : > { %1638 = vst [vmem:[%s3490_s6 + $0xf0] sm:$0xff] %v1510_v17  ;;  %v3682_v8 = vsub.f32 %v4340_v56, %v846_v27  ;;  %v3685_v17 = vsub.f32 %v4342_v0, %v846_v27  ;;  %2228 = vpow2.f32 %v1202_v26  ;;  %v3692_v63 = vsub.f32 %v4346_v3, %v846_v27 }
 0x1f2   : > { %1639 = vst [vmem:[%s3490_s6 + $0xf8] sm:$0xff] %v1511_v49  ;;  %v3688_v49 = vsub.f32 %v4344_v60, %v846_v27  ;;  %v2219_v44 = vpop.eup %2218  ;;  %1374 = vadd.xlane.f32.xlu1 %v1373_v11  ;;  %2230 = vpow2.f32 %v1204_v21  ;;  %v4350_v21 = vld [vmem:[#allocation78_spill] sm:$0xff] }
 0x1f3   : > { %4339 = vst [vmem:[#allocation19_spill] sm:$0xff] %v3678_v29  ;;  %v1208_v16 = vmul.f32 1.442695, %v3682_v8  ;;  %v1210_v42 = vmul.f32 1.442695, %v3685_v17  ;;  %v2221_v40 = vpop.eup %2220 }
 0x1f4   : > { %4341 = vst [vmem:[#allocation25_spill] sm:$0xff] %v3682_v8  ;;  %v1212_v12 = vmul.f32 1.442695, %v3688_v49  ;;  %v2223_v31 = vpop.eup %2222  ;;  %v1376_v26 = vadd.f32 %v2221_v40, %v2219_v44  ;;  %v1214_v11 = vmul.f32 1.442695, %v3692_v63  ;;  %v4348_v8 = vld [vmem:[#allocation77_spill] sm:$0xff] }
 0x1f5   : > { %4343 = vst [vmem:[#allocation26_spill] sm:$0xff] %v3685_v17  ;;  %2232 = vpow2.f32 %v1208_v16  ;;  %v2225_v57 = vpop.eup %2224 }
 0x1f6   : > { %4345 = vst [vmem:[#allocation27_spill] sm:$0xff] %v3688_v49  ;;  %2234 = vpow2.f32 %v1210_v42  ;;  %v2227_v56 = vpop.eup %2226  ;;  %v1377_v0 = vadd.f32 %v2223_v31, %v1376_v26  ;;  %v4352_v49 = vld [vmem:[#allocation83_spill] sm:$0xff] }
 0x1f7   : > { %4347 = vst [vmem:[#allocation28_spill] sm:$0xff] %v3692_v63  ;;  %2236 = vpow2.f32 %v1206_v34  ;;  %v2229_v27 = vpop.eup %2228  ;;  %v4353_v34 = vld [vmem:[#allocation86_spill] sm:$0xff] }
 0x1f8   : > { %2238 = vpow2.f32 %v1212_v12  ;;  %v851_v60 = vpop.xlane.xlu0 %850  ;;  %v1378_v3 = vadd.f32 %v2225_v57, %v1377_v0  ;;  %v2231_v44 = vpop.eup %2230  ;;  %v1381_v42 = vadd.f32 %v2229_v27, %v2227_v56 }
 0x1f9   : > { %v3699_v17 = vsub.f32 %v4348_v8, %v851_v60  ;;  %v3702_v29 = vsub.f32 %v4350_v21, %v851_v60  ;;  %v3705_v16 = vsub.f32 %v4352_v49, %v851_v60  ;;  %2240 = vpow2.f32 %v1214_v11 }
 0x1fa   : > { %1379 = vadd.xlane.f32.xlu2 %v1378_v3  ;;  %v3708_v31 = vsub.f32 %v4353_v34, %v851_v60  ;;  %v1382_v0 = vadd.f32 %v2231_v44, %v1381_v42  ;;  %v4354_v34 = vld [vmem:[#allocation87_spill] sm:$0xff]  ;;  %v4358_v44 = vld [vmem:[#allocation93_spill] sm:$0xff] }
 0x1fb   : > { %4349 = vst [vmem:[#allocation38_spill] sm:$0xff] %v3699_v17  ;;  %v2233_v40 = vpop.eup %2232  ;;  %v1216_v12 = vmul.f32 1.442695, %v3699_v17  ;;  %v1218_v26 = vmul.f32 1.442695, %v3702_v29 }
 0x1fc   : > { %4351 = vst [vmem:[#allocation30_spill] sm:$0xff] %v3702_v29  ;;  %v2235_v8 = vpop.eup %2234  ;;  %v1220_v57 = vmul.f32 1.442695, %v3705_v16  ;;  %v1222_v11 = vmul.f32 1.442695, %v3708_v31  ;;  %v4356_v29 = vld [vmem:[#allocation88_spill] sm:$0xff] }
 0x1fd   : > { %v2237_v21 = vpop.eup %2236  ;;  %2242 = vpow2.f32 %v1216_v12  ;;  %v1386_v49 = vadd.f32 %v2235_v8, %v2233_v40 }
 0x1fe   : > { %v2239_v63 = vpop.eup %2238  ;;  %2244 = vpow2.f32 %v1218_v26  ;;  %v1383_v56 = vadd.f32 %v2237_v21, %v1382_v0  ;;  %v4359_v26 = vld [vmem:[#allocation94_spill] sm:$0xff] }
 0x1ff   : > { %v1387_v27 = vadd.f32 %v2239_v63, %v1386_v49  ;;  %2246 = vpow2.f32 %v1220_v57  ;;  %v2241_v3 = vpop.eup %2240 }
 0x200   : > { %1384 = vadd.xlane.f32.xlu0 %v1383_v56  ;;  %v856_v60 = vpop.xlane.xlu1 %855  ;;  %2248 = vpow2.f32 %v1222_v11 }
 0x201   : > { %v3715_v17 = vsub.f32 %v4354_v34, %v856_v60  ;;  %v3718_v50 = vsub.f32 %v4356_v29, %v856_v60  ;;  %v3721_v42 = vsub.f32 %v4358_v44, %v856_v60  ;;  %v1388_v40 = vadd.f32 %v2241_v3, %v1387_v27  ;;  %v4363_v44 = vld [vmem:[#allocation96_spill] sm:$0xff] }
 0x202   : > { %v3724_v8 = vsub.f32 %v4359_v26, %v856_v60  ;;  %v4361_v60 = vld [vmem:[#allocation95_spill] sm:$0xff] }
 0x203   : > { %4355 = vst [vmem:[#allocation31_spill] sm:$0xff] %v3715_v17  ;;  %v2243_v12 = vpop.eup %2242  ;;  %v1224_v63 = vmul.f32 1.442695, %v3715_v17  ;;  %v1226_v57 = vmul.f32 1.442695, %v3718_v50  ;;  %1389 = vadd.xlane.f32.xlu1 %v1388_v40 }
 0x204   : > { %4357 = vst [vmem:[#allocation32_spill] sm:$0xff] %v3718_v50  ;;  %v2245_v0 = vpop.eup %2244  ;;  %v1228_v21 = vmul.f32 1.442695, %v3721_v42  ;;  %v1230_v56 = vmul.f32 1.442695, %v3724_v8  ;;  %v4365_v50 = vld [vmem:[#allocation98_spill] sm:$0xff] }
 0x205   : > { %4360 = vst [vmem:[#allocation33_spill] sm:$0xff] %v3724_v8  ;;  %2250 = vpow2.f32 %v1224_v63  ;;  %v1391_v29 = vadd.f32 %v2245_v0, %v2243_v12  ;;  %v2247_v49 = vpop.eup %2246 }
 0x206   : > { %2252 = vpow2.f32 %v1226_v57  ;;  %v2249_v3 = vpop.eup %2248 }
 0x207   : > { %v1392_v27 = vadd.f32 %v2247_v49, %v1391_v29  ;;  %2254 = vpow2.f32 %v1228_v21  ;;  %v4367_v21 = vld [vmem:[#allocation99_spill] sm:$0xff] }
 0x208   : > { %v861_v11 = vpop.xlane.xlu2 %860  ;;  %2256 = vpow2.f32 %v1230_v56 }
 0x209   : > { %v3731_v34 = vsub.f32 %v4361_v60, %v861_v11  ;;  %v3734_v26 = vsub.f32 %v4363_v44, %v861_v11  ;;  %v3737_v17 = vsub.f32 %v4365_v50, %v861_v11  ;;  %v1393_v40 = vadd.f32 %v2249_v3, %v1392_v27 }
 0x20a   : > { %v3742_v29 = vsub.f32 %v4367_v21, %v861_v11  ;;  %v4371_v11 = vld [vmem:[#allocation101_spill] sm:$0xff] }
 0x20b   : > { %4362 = vst [vmem:[#allocation34_spill] sm:$0xff] %v3731_v34  ;;  %v2251_v63 = vpop.eup %2250  ;;  %v1232_v12 = vmul.f32 1.442695, %v3731_v34  ;;  %v1234_v57 = vmul.f32 1.442695, %v3734_v26  ;;  %1394 = vadd.xlane.f32.xlu2 %v1393_v40 }
 0x20c   : > { %4364 = vst [vmem:[#allocation35_spill] sm:$0xff] %v3734_v26  ;;  %v2253_v0 = vpop.eup %2252  ;;  %v1236_v49 = vmul.f32 1.442695, %v3737_v17  ;;  %v1238_v27 = vmul.f32 1.442695, %v3742_v29  ;;  %v4369_v26 = vld [vmem:[#allocation100_spill] sm:$0xff] }
 0x20d   : > { %4366 = vst [vmem:[#allocation36_spill] sm:$0xff] %v3737_v17  ;;  %2258 = vpow2.f32 %v1232_v12  ;;  %v1396_v60 = vadd.f32 %v2253_v0, %v2251_v63  ;;  %v2255_v44 = vpop.eup %2254  ;;  %v4374_v63 = vld [vmem:[#allocation102_spill] sm:$0xff] }
 0x20e   : > { %4368 = vst [vmem:[#allocation37_spill] sm:$0xff] %v3742_v29  ;;  %2260 = vpow2.f32 %v1234_v57  ;;  %v2257_v34 = vpop.eup %2256 }
 0x20f   : > { %v1397_v50 = vadd.f32 %v2255_v44, %v1396_v60  ;;  %2262 = vpow2.f32 %v1236_v49 }
 0x210   : > { %v1305_v56 = vpop.xlane.xlu2 %1304  ;;  %v866_v3 = vpop.xlane.xlu0 %865 }
 0x211   : > { %2264 = vlog2.f32 %v1305_v56  ;;  %v3747_v8 = vsub.f32 %v4369_v26, %v866_v3  ;;  %v3750_v21 = vsub.f32 %v4371_v11, %v866_v3  ;;  %v3753_v40 = vsub.f32 %v3375_v14, %v866_v3 }
 0x212   : > { %v3756_v12 = vsub.f32 %v4374_v63, %v866_v3  ;;  %v1398_v57 = vadd.f32 %v2257_v34, %v1397_v50  ;;  %2266 = vpow2.f32 %v1238_v27 }
 0x213   : > { %4370 = vst [vmem:[#allocation39_spill] sm:$0xff] %v3747_v8  ;;  %v2259_v0 = vpop.eup %2258  ;;  %v1240_v49 = vmul.f32 1.442695, %v3747_v8  ;;  %v1242_v60 = vmul.f32 1.442695, %v3750_v21 }
 0x214   : > { %4372 = vst [vmem:[#allocation40_spill] sm:$0xff] %v3750_v21  ;;  %v2261_v44 = vpop.eup %2260  ;;  %v1244_v26 = vmul.f32 1.442695, %v3753_v40  ;;  %1399 = vadd.xlane.f32.xlu0 %v1398_v57  ;;  %v1246_v14 = vmul.f32 1.442695, %v3756_v12 }
 0x215   : > { %4373 = vst [vmem:[#allocation41_spill] sm:$0xff] %v3753_v40  ;;  %2268 = vpow2.f32 %v1240_v49  ;;  %v1401_v56 = vadd.f32 %v2261_v44, %v2259_v0  ;;  %v2263_v11 = vpop.eup %2262 }
 0x216   : > { %4375 = vst [vmem:[#allocation42_spill] sm:$0xff] %v3756_v12  ;;  %2270 = vpow2.f32 %v1242_v60  ;;  %v4377_v60 = vld [vmem:[#allocation79_spill] sm:$0xff]  ;;  %v4379_v12 = vld [vmem:[#allocation84_spill] sm:$0xff] }
 0x217   : > { %v2265_v29 = vpop.eup %2264  ;;  %2272 = vpow2.f32 %v1244_v26  ;;  %v1402_v63 = vadd.f32 %v2263_v11, %v1401_v56 }
 0x218   : > { %v1435_v3 = vmul.f32 0.6931472, %v2265_v29  ;;  %v871_v34 = vpop.xlane.xlu1 %870  ;;  %v1310_v50 = vpop.xlane.xlu0 %1309  ;;  %v4378_v29 = vld [vmem:[#allocation80_spill] sm:$0xff]  ;;  %2274 = vpow2.f32 %v1246_v14 }
 0x219   : > { %v3763_v21 = vsub.f32 %v3399_v61, %v871_v34  ;;  %v3766_v27 = vsub.f32 %v3404_v37, %v871_v34  ;;  %v3769_v57 = vsub.f32 %v3421_v48, %v871_v34  ;;  %v1320_v0 = vpop.xlane.xlu2 %1319  ;;  %v2267_v49 = vpop.eup %2266  ;;  %v4380_v61 = vld [vmem:[#allocation85_spill] sm:$0xff]  ;;  %v3779_v17 = vsub.f32 %v3427_v43, %v871_v34 }
 0x21a   : > { %v1516_v44 = vsub.f32 %v4377_v60, %v1435_v3  ;;  %v1517_v26 = vsub.f32 %v4378_v29, %v1435_v3  ;;  %v1518_v40 = vsub.f32 %v4379_v12, %v1435_v3  ;;  %v1519_v11 = vsub.f32 %v4380_v61, %v1435_v3 }
 0x21b   : > { %4376 = vst [vmem:[#allocation43_spill] sm:$0xff] %v3769_v57  ;;  %v2269_v56 = vpop.eup %2268  ;;  %v1248_v37 = vmul.f32 1.442695, %v3763_v21  ;;  %v1250_v48 = vmul.f32 1.442695, %v3766_v27  ;;  %2276 = vlog2.f32 %v1320_v0  ;;  %v1403_v12 = vadd.f32 %v2267_v49, %v1402_v63 }
 0x21c   : > { %v2271_v8 = vpop.eup %2270  ;;  %1644 = vst [vmem:[%s3490_s6 + $0x120] sm:$0xff] %v1516_v44  ;;  %v1252_v60 = vmul.f32 1.442695, %v3769_v57  ;;  %2278 = vlog2.f32 %v1310_v50  ;;  %v1254_v0 = vmul.f32 1.442695, %v3779_v17 }
 0x21d   : > { %4381 = vst [vmem:[#allocation44_spill] sm:$0xff] %v3779_v17  ;;  %2280 = vpow2.f32 %v1248_v37  ;;  %v1406_v14 = vadd.f32 %v2271_v8, %v2269_v56  ;;  %v2273_v29 = vpop.eup %2272  ;;  %1404 = vadd.xlane.f32.xlu1 %v1403_v12  ;;  %v4382_v56 = vld [vmem:[#allocation9_spill] sm:$0xff]  ;;  %v4383_v37 = vld [vmem:[#allocation10_spill] sm:$0xff] }
 0x21e   : > { %1645 = vst [vmem:[%s3490_s6 + $0x128] sm:$0xff] %v1517_v26  ;;  %2282 = vpow2.f32 %v1250_v48  ;;  %v2275_v61 = vpop.eup %2274 }
 0x21f   : > { %1646 = vst [vmem:[%s3490_s6 + $0x130] sm:$0xff] %v1518_v40  ;;  %v1407_v3 = vadd.f32 %v2273_v29, %v1406_v14  ;;  %2284 = vpow2.f32 %v1252_v60  ;;  %v4384_v60 = vld [vmem:[#allocation11_spill] sm:$0xff]  ;;  %v4385_v14 = vld [vmem:[#allocation97_spill] sm:$0xff] }
 0x220   : > { %1647 = vst [vmem:[%s3490_s6 + $0x138] sm:$0xff] %v1519_v11  ;;  %v1300_v44 = vpop.xlane.xlu1 %1299  ;;  %v1325_v43 = vpop.xlane.xlu0 %1324 }
 0x221   : > { %v2277_v34 = vpop.eup %2276  ;;  %2286 = vlog2.f32 %v1300_v44  ;;  %v1335_v57 = vpop.xlane.xlu2 %1334  ;;  %v1408_v50 = vadd.f32 %v2275_v61, %v1407_v3 }
 0x222   : > { %v2279_v63 = vpop.eup %2278  ;;  %v1441_v49 = vmul.f32 0.6931472, %v2277_v34  ;;  %2288 = vlog2.f32 %v1335_v57  ;;  %v4386_v57 = vld [vmem:[#allocation89_spill] sm:$0xff] }
 0x223   : > { %v2281_v8 = vpop.eup %2280  ;;  %v1437_v40 = vmul.f32 0.6931472, %v2279_v63  ;;  %1409 = vadd.xlane.f32.xlu2 %v1408_v50  ;;  %2290 = vpow2.f32 %v1254_v0  ;;  %v4387_v50 = vld [vmem:[#allocation90_spill] sm:$0xff] }
 0x224   : > { %v2283_v26 = vpop.eup %2282  ;;  %v1528_v11 = vsub.f32 %v4382_v56, %v1441_v49  ;;  %v1529_v48 = vsub.f32 %v4383_v37, %v1441_v49  ;;  %v1530_v12 = vsub.f32 %v4384_v60, %v1441_v49  ;;  %v1531_v29 = vsub.f32 %v4385_v14, %v1441_v49  ;;  %v4388_v56 = vld [vmem:[#allocation91_spill] sm:$0xff]  ;;  %v4389_v49 = vld [vmem:[#allocation92_spill] sm:$0xff] }
 0x225   : > { %2292 = vlog2.f32 %v1325_v43  ;;  %v2285_v3 = vpop.eup %2284  ;;  %v1520_v61 = vsub.f32 %v4386_v57, %v1437_v40  ;;  %v1411_v44 = vadd.f32 %v2283_v26, %v2281_v8  ;;  %v1521_v0 = vsub.f32 %v4387_v50, %v1437_v40  ;;  %v4390_v26 = vld [vmem:[#allocation75_spill] sm:$0xff]  ;;  %v4391_v50 = vld [vmem:[#allocation76_spill] sm:$0xff] }
 0x226   : > { %1656 = vst [vmem:[%s3490_s6 + $0x180] sm:$0xff] %v1528_v11  ;;  %v1522_v37 = vsub.f32 %v4388_v56, %v1437_v40  ;;  %v1523_v11 = vsub.f32 %v4389_v49, %v1437_v40  ;;  %v4392_v56 = vld [vmem:[#allocation81_spill] sm:$0xff]  ;;  %v4393_v40 = vld [vmem:[#allocation82_spill] sm:$0xff] }
 0x227   : > { %v2287_v34 = vpop.eup %2286  ;;  %1657 = vst [vmem:[%s3490_s6 + $0x188] sm:$0xff] %v1529_v48  ;;  %v1412_v43 = vadd.f32 %v2285_v3, %v1411_v44 }
 0x228   : > { %v2289_v63 = vpop.eup %2288  ;;  %1658 = vst [vmem:[%s3490_s6 + $0x190] sm:$0xff] %v1530_v12  ;;  %v1433_v60 = vmul.f32 0.6931472, %v2287_v34  ;;  %v1315_v17 = vpop.xlane.xlu1 %1314 }
 0x229   : > { %1659 = vst [vmem:[%s3490_s6 + $0x198] sm:$0xff] %v1531_v29  ;;  %2294 = vlog2.f32 %v1315_v17  ;;  %v2291_v8 = vpop.eup %2290  ;;  %v1447_v14 = vmul.f32 0.6931472, %v2289_v63  ;;  %v1340_v57 = vpop.xlane.xlu0 %1339 }
 0x22a   : > { %1648 = vst [vmem:[%s3490_s6 + $0x140] sm:$0xff] %v1520_v61  ;;  %v1512_v48 = vsub.f32 %v4390_v26, %v1433_v60  ;;  %v1513_v34 = vsub.f32 %v4391_v50, %v1433_v60  ;;  %v1514_v29 = vsub.f32 %v4392_v56, %v1433_v60  ;;  %v1413_v3 = vadd.f32 %v2291_v8, %v1412_v43  ;;  %v4394_v61 = vld [vmem:[#allocation103_spill] sm:$0xff]  ;;  %v4397_v8 = vld [vmem:[#allocation12_spill] sm:$0xff]  ;;  %v4398_v50 = vld [vmem:[#allocation13_spill] sm:$0xff] }
 0x22b   : > { %v2293_v12 = vpop.eup %2292  ;;  %1649 = vst [vmem:[%s3490_s6 + $0x148] sm:$0xff] %v1521_v0  ;;  %v1515_v17 = vsub.f32 %v4393_v40, %v1433_v60  ;;  %2296 = vlog2.f32 %v1340_v57  ;;  %v1540_v44 = vsub.f32 %v4394_v61, %v1447_v14  ;;  %v4395_v0 = vld [vmem:[#allocation20_spill] sm:$0xff]  ;;  %v4399_v56 = vld [vmem:[#allocation14_spill] sm:$0xff] }
 0x22c   : > { %1650 = vst [vmem:[%s3490_s6 + $0x150] sm:$0xff] %v1522_v37  ;;  %v1443_v63 = vmul.f32 0.6931472, %v2293_v12  ;;  %v1541_v26 = vsub.f32 %v4395_v0, %v1447_v14  ;;  %1414 = vadd.xlane.f32.xlu0 %v1413_v3  ;;  %v1542_v37 = vsub.f32 %v3389_v24, %v1447_v14  ;;  %v4396_v60 = vld [vmem:[#allocation16_spill] sm:$0xff]  ;;  %v4403_v0 = vld [vmem:[#allocation7_spill] sm:$0xff] }
 0x22d   : > { %1651 = vst [vmem:[%s3490_s6 + $0x158] sm:$0xff] %v1523_v11  ;;  %v1543_v11 = vsub.f32 %v4396_v60, %v1447_v14  ;;  %v4401_v14 = vld [vmem:[#allocation5_spill] sm:$0xff] }
 0x22e   : > { %1640 = vst [vmem:[%s3490_s6 + $0x100] sm:$0xff] %v1512_v48  ;;  %v1532_v48 = vsub.f32 %v4397_v8, %v1443_v63  ;;  %v1534_v24 = vsub.f32 %v4399_v56, %v1443_v63 }
 0x22f   : > { %v2295_v49 = vpop.eup %2294  ;;  %1641 = vst [vmem:[%s3490_s6 + $0x108] sm:$0xff] %v1513_v34  ;;  %v1533_v34 = vsub.f32 %v4398_v50, %v1443_v63 }
 0x230   : > { %1642 = vst [vmem:[%s3490_s6 + $0x110] sm:$0xff] %v1514_v29  ;;  %v1330_v43 = vpop.xlane.xlu1 %1329  ;;  %v1439_v57 = vmul.f32 0.6931472, %v2295_v49  ;;  %v4400_v29 = vld [vmem:[#allocation15_spill] sm:$0xff] }
 0x231   : > { %1643 = vst [vmem:[%s3490_s6 + $0x118] sm:$0xff] %v1515_v17  ;;  %2298 = vlog2.f32 %v1330_v43  ;;  %v2297_v12 = vpop.eup %2296  ;;  %v1535_v3 = vsub.f32 %v4400_v29, %v1443_v63 }
 0x232   : > { %1668 = vst [vmem:[%s3490_s6 + $0x1e0] sm:$0xff] %v1540_v44  ;;  %v1524_v40 = vsub.f32 %v4401_v14, %v1439_v57  ;;  %v1449_v17 = vmul.f32 0.6931472, %v2297_v12  ;;  %v4402_v44 = vld [vmem:[#allocation6_spill] sm:$0xff]  ;;  %v1527_v63 = vsub.f32 %v3441_v5, %v1439_v57  ;;  %v4405_v5 = vld [vmem:[#allocation21_spill] sm:$0xff] }
 0x233   : > { %1669 = vst [vmem:[%s3490_s6 + $0x1e8] sm:$0xff] %v1541_v26  ;;  %v1525_v49 = vsub.f32 %v4402_v44, %v1439_v57  ;;  %v1526_v26 = vsub.f32 %v4403_v0, %v1439_v57 }
 0x234   : > { %1670 = vst [vmem:[%s3490_s6 + $0x1f0] sm:$0xff] %v1542_v37  ;;  %v1544_v43 = vsub.f32 %v3431_v46, %v1449_v17  ;;  %v1547_v12 = vsub.f32 %v3449_v10, %v1449_v17  ;;  %v4406_v46 = vld [vmem:[#allocation22_spill] sm:$0xff] }
 0x235   : > { %1671 = vst [vmem:[%s3490_s6 + $0x1f8] sm:$0xff] %v1543_v11  ;;  %v4404_v11 = vld [vmem:[#allocation17_spill] sm:$0xff] }
 0x236   : > { %1660 = vst [vmem:[%s3490_s6 + $0x1a0] sm:$0xff] %v1532_v48  ;;  %v1545_v8 = vsub.f32 %v4404_v11, %v1449_v17  ;;  %v1546_v48 = vsub.f32 %v3437_v28, %v1449_v17 }
 0x237   : > { %v2299_v61 = vpop.eup %2298  ;;  %1661 = vst [vmem:[%s3490_s6 + $0x1a8] sm:$0xff] %v1533_v34 }
 0x238   : > { %1662 = vst [vmem:[%s3490_s6 + $0x1b0] sm:$0xff] %v1534_v24  ;;  %v1345_v37 = vpop.xlane.xlu1 %1344  ;;  %v1445_v60 = vmul.f32 0.6931472, %v2299_v61 }
 0x239   : > { %1663 = vst [vmem:[%s3490_s6 + $0x1b8] sm:$0xff] %v1535_v3  ;;  %2300 = vlog2.f32 %v1345_v37 }
 0x23a   : > { %1652 = vst [vmem:[%s3490_s6 + $0x160] sm:$0xff] %v1524_v40  ;;  %v1536_v57 = vsub.f32 %v4405_v5, %v1445_v60  ;;  %v1537_v56 = vsub.f32 %v4406_v46, %v1445_v60  ;;  %v1538_v24 = vsub.f32 %v3455_v36, %v1445_v60  ;;  %v1539_v10 = vsub.f32 %v3459_v52, %v1445_v60 }
 0x23b   : > { %1653 = vst [vmem:[%s3490_s6 + $0x168] sm:$0xff] %v1525_v49 }
 0x23c   : > { %1654 = vst [vmem:[%s3490_s6 + $0x170] sm:$0xff] %v1526_v26 }
 0x23d   : > { %1655 = vst [vmem:[%s3490_s6 + $0x178] sm:$0xff] %v1527_v63  ;;  %v1350_v50 = vpop.xlane.xlu2 %1349 }
 0x23e   : > { %1672 = vst [vmem:[%s3490_s6 + $0x200] sm:$0xff] %v1544_v43  ;;  %2302 = vlog2.f32 %v1350_v50 }
 0x23f   : > { %v2301_v34 = vpop.eup %2300  ;;  %1673 = vst [vmem:[%s3490_s6 + $0x208] sm:$0xff] %v1545_v8 }
 0x240   : > { %1674 = vst [vmem:[%s3490_s6 + $0x210] sm:$0xff] %v1546_v48  ;;  %v1451_v28 = vmul.f32 0.6931472, %v2301_v34 }
 0x241   : > { %1675 = vst [vmem:[%s3490_s6 + $0x218] sm:$0xff] %v1547_v12 }
 0x242   : > { %1664 = vst [vmem:[%s3490_s6 + $0x1c0] sm:$0xff] %v1536_v57  ;;  %v1548_v29 = vsub.f32 %v3473_v55, %v1451_v28  ;;  %v1549_v3 = vsub.f32 %v3476_v4, %v1451_v28  ;;  %v1550_v14 = vsub.f32 %v3479_v19, %v1451_v28  ;;  %v1551_v36 = vsub.f32 %v3485_v53, %v1451_v28  ;;  %v4409_v28 = vld [vmem:[#allocation29_spill] sm:$0xff] }
 0x243   : > { %1665 = vst [vmem:[%s3490_s6 + $0x1c8] sm:$0xff] %v1537_v56 }
 0x244   : > { %1666 = vst [vmem:[%s3490_s6 + $0x1d0] sm:$0xff] %v1538_v24  ;;  %v2303_v40 = vpop.eup %2302  ;;  %v1355_v17 = vpop.xlane.xlu0 %1354  ;;  %v4408_v24 = vld [vmem:[#allocation24_spill] sm:$0xff] }
 0x245   : > { %1667 = vst [vmem:[%s3490_s6 + $0x1d8] sm:$0xff] %v1539_v10  ;;  %v1453_v52 = vmul.f32 0.6931472, %v2303_v40  ;;  %2304 = vlog2.f32 %v1355_v17  ;;  %v4412_v17 = vld [vmem:[#allocation19_spill] sm:$0xff] }
 0x246   : > { %1676 = vst [vmem:[%s3490_s6 + $0x220] sm:$0xff] %v1548_v29 }
 0x247   : > { %1677 = vst [vmem:[%s3490_s6 + $0x228] sm:$0xff] %v1549_v3  ;;  %v1552_v55 = vsub.f32 %v3499_v7, %v1453_v52  ;;  %v1553_v4 = vsub.f32 %v3502_v54, %v1453_v52  ;;  %v1554_v19 = vsub.f32 %v3505_v30, %v1453_v52  ;;  %v1555_v61 = vsub.f32 %v3508_v15, %v1453_v52 }
 0x248   : > { %1678 = vst [vmem:[%s3490_s6 + $0x230] sm:$0xff] %v1550_v14  ;;  %v4410_v14 = vld [vmem:[#allocation8_spill] sm:$0xff] }
 0x249   : > { %1679 = vst [vmem:[%s3490_s6 + $0x238] sm:$0xff] %v1551_v36  ;;  %v4411_v36 = vld [vmem:[#allocation18_spill] sm:$0xff] }
 0x24a   : > { %1680 = vst [vmem:[%s3490_s6 + $0x240] sm:$0xff] %v1552_v55 }
 0x24b   : > { %1681 = vst [vmem:[%s3490_s6 + $0x248] sm:$0xff] %v1553_v4  ;;  %v2305_v53 = vpop.eup %2304 }
 0x24c   : > { %1682 = vst [vmem:[%s3490_s6 + $0x250] sm:$0xff] %v1554_v19  ;;  %v1455_v44 = vmul.f32 0.6931472, %v2305_v53  ;;  %v4413_v53 = vld [vmem:[#allocation25_spill] sm:$0xff] }
 0x24d   : > { %1683 = vst [vmem:[%s3490_s6 + $0x258] sm:$0xff] %v1555_v61  ;;  %v1360_v49 = vpop.xlane.xlu1 %1359 }
 0x24e   : > { %2306 = vlog2.f32 %v1360_v49  ;;  %v1556_v7 = vsub.f32 %v3523_v2, %v1455_v44  ;;  %v1557_v54 = vsub.f32 %v3526_v9, %v1455_v44  ;;  %v1558_v30 = vsub.f32 %v3529_v6, %v1455_v44  ;;  %v4414_v49 = vld [vmem:[#allocation26_spill] sm:$0xff] }
 0x24f   : > { %v1559_v15 = vsub.f32 %v3532_v18, %v1455_v44 }
 0x250   : > { %1684 = vst [vmem:[%s3490_s6 + $0x260] sm:$0xff] %v1556_v7  ;;  %v4415_v7 = vld [vmem:[#allocation27_spill] sm:$0xff] }
 0x251   : > { %1685 = vst [vmem:[%s3490_s6 + $0x268] sm:$0xff] %v1557_v54 }
 0x252   : > { %1686 = vst [vmem:[%s3490_s6 + $0x270] sm:$0xff] %v1558_v30  ;;  %v4416_v30 = vld [vmem:[#allocation28_spill] sm:$0xff] }
 0x253   : > { %1687 = vst [vmem:[%s3490_s6 + $0x278] sm:$0xff] %v1559_v15 }
 0x254   : > { %v2307_v0 = vpop.eup %2306 }
 0x255   : > { %v1457_v26 = vmul.f32 0.6931472, %v2307_v0  ;;  %v1365_v37 = vpop.xlane.xlu2 %1364 }
 0x256   : > { %2308 = vlog2.f32 %v1365_v37 }
 0x257   : > { %v1560_v2 = vsub.f32 %v3547_v33, %v1457_v26  ;;  %v1561_v9 = vsub.f32 %v3550_v62, %v1457_v26  ;;  %v1562_v6 = vsub.f32 %v3553_v41, %v1457_v26  ;;  %v1563_v18 = vsub.f32 %v3559_v1, %v1457_v26 }
 0x259   : > { %1688 = vst [vmem:[%s3490_s6 + $0x280] sm:$0xff] %v1560_v2  ;;  %v4417_v2 = vld [vmem:[#allocation38_spill] sm:$0xff] }
 0x25a   : > { %1689 = vst [vmem:[%s3490_s6 + $0x288] sm:$0xff] %v1561_v9 }
 0x25b   : > { %1690 = vst [vmem:[%s3490_s6 + $0x290] sm:$0xff] %v1562_v6  ;;  %v4418_v6 = vld [vmem:[#allocation30_spill] sm:$0xff] }
 0x25c   : > { %v2309_v63 = vpop.eup %2308  ;;  %1691 = vst [vmem:[%s3490_s6 + $0x298] sm:$0xff] %v1563_v18 }
 0x25d   : > { %v1459_v43 = vmul.f32 0.6931472, %v2309_v63 }
 0x25e   : > { %v1370_v60 = vpop.xlane.xlu0 %1369 }
 0x25f   : > { %2310 = vlog2.f32 %v1370_v60  ;;  %v1564_v33 = vsub.f32 %v3571_v39, %v1459_v43  ;;  %v1565_v62 = vsub.f32 %v3574_v59, %v1459_v43  ;;  %v1566_v41 = vsub.f32 %v3577_v32, %v1459_v43 }
 0x260   : > { %v1567_v1 = vsub.f32 %v3580_v23, %v1459_v43 }
 0x261   : > { %1692 = vst [vmem:[%s3490_s6 + $0x2a0] sm:$0xff] %v1564_v33 }
 0x262   : > { %1693 = vst [vmem:[%s3490_s6 + $0x2a8] sm:$0xff] %v1565_v62  ;;  %v4419_v62 = vld [vmem:[#allocation31_spill] sm:$0xff] }
 0x263   : > { %1694 = vst [vmem:[%s3490_s6 + $0x2b0] sm:$0xff] %v1566_v41 }
 0x264   : > { %1695 = vst [vmem:[%s3490_s6 + $0x2b8] sm:$0xff] %v1567_v1  ;;  %v4420_v1 = vld [vmem:[#allocation32_spill] sm:$0xff] }
 0x265   : > { %v2311_v11 = vpop.eup %2310  ;;  %v1375_v48 = vpop.xlane.xlu1 %1374 }
 0x266   : > { %v1461_v8 = vmul.f32 0.6931472, %v2311_v11  ;;  %2312 = vlog2.f32 %v1375_v48 }
 0x268   : > { %v1568_v39 = vsub.f32 %v3595_v58, %v1461_v8  ;;  %v1569_v59 = vsub.f32 %v3598_v51, %v1461_v8  ;;  %v1570_v32 = vsub.f32 %v3601_v45, %v1461_v8  ;;  %v1571_v12 = vsub.f32 %v3607_v20, %v1461_v8 }
 0x26a   : > { %1696 = vst [vmem:[%s3490_s6 + $0x2c0] sm:$0xff] %v1568_v39  ;;  %v4421_v39 = vld [vmem:[#allocation33_spill] sm:$0xff] }
 0x26b   : > { %1697 = vst [vmem:[%s3490_s6 + $0x2c8] sm:$0xff] %v1569_v59 }
 0x26c   : > { %1698 = vst [vmem:[%s3490_s6 + $0x2d0] sm:$0xff] %v1570_v32  ;;  %v2313_v23 = vpop.eup %2312 }
 0x26d   : > { %1699 = vst [vmem:[%s3490_s6 + $0x2d8] sm:$0xff] %v1571_v12  ;;  %v1463_v5 = vmul.f32 0.6931472, %v2313_v23  ;;  %v1380_v57 = vpop.xlane.xlu2 %1379  ;;  %v4422_v12 = vld [vmem:[#allocation34_spill] sm:$0xff] }
 0x26e   : > { %2314 = vlog2.f32 %v1380_v57  ;;  %v4424_v57 = vld [vmem:[#allocation36_spill] sm:$0xff] }
 0x26f   : > { %v1572_v58 = vsub.f32 %v3619_v25, %v1463_v5  ;;  %v1573_v50 = vsub.f32 %v3622_v13, %v1463_v5  ;;  %v1574_v51 = vsub.f32 %v3625_v35, %v1463_v5  ;;  %v1575_v45 = vsub.f32 %v3628_v47, %v1463_v5  ;;  %v4407_v13 = vld [vmem:[#allocation23_spill] sm:$0xff] }
 0x271   : > { %1700 = vst [vmem:[%s3490_s6 + $0x2e0] sm:$0xff] %v1572_v58 }
 0x272   : > { %1701 = vst [vmem:[%s3490_s6 + $0x2e8] sm:$0xff] %v1573_v50  ;;  %v4425_v50 = vld [vmem:[#allocation37_spill] sm:$0xff] }
 0x273   : > { %v1385_v20 = vpop.xlane.xlu0 %1384  ;;  %1702 = vst [vmem:[%s3490_s6 + $0x2f0] sm:$0xff] %v1574_v51 }
 0x274   : > { %2316 = vlog2.f32 %v1385_v20  ;;  %v2315_v34 = vpop.eup %2314  ;;  %1703 = vst [vmem:[%s3490_s6 + $0x2f8] sm:$0xff] %v1575_v45 }
 0x275   : > { %v1465_v46 = vmul.f32 0.6931472, %v2315_v34  ;;  %v4426_v34 = vld [vmem:[#allocation39_spill] sm:$0xff] }
 0x276   : > { %v1390_v56 = vpop.xlane.xlu1 %1389 }
 0x277   : > { %v1576_v25 = vsub.f32 %v3643_v22, %v1465_v46  ;;  %v1577_v35 = vsub.f32 %v4407_v13, %v1465_v46  ;;  %v1578_v47 = vsub.f32 %v4408_v24, %v1465_v46  ;;  %v1579_v10 = vsub.f32 %v4409_v28, %v1465_v46  ;;  %v4428_v13 = vld [vmem:[#allocation41_spill] sm:$0xff]  ;;  %v4429_v24 = vld [vmem:[#allocation42_spill] sm:$0xff] }
 0x278   : > { %2318 = vlog2.f32 %v1390_v56  ;;  %v4427_v56 = vld [vmem:[#allocation40_spill] sm:$0xff] }
 0x279   : > { %1704 = vst [vmem:[%s3490_s6 + $0x300] sm:$0xff] %v1576_v25 }
 0x27a   : > { %v2317_v29 = vpop.eup %2316  ;;  %1705 = vst [vmem:[%s3490_s6 + $0x308] sm:$0xff] %v1577_v35 }
 0x27b   : > { %v1467_v3 = vmul.f32 0.6931472, %v2317_v29  ;;  %1706 = vst [vmem:[%s3490_s6 + $0x310] sm:$0xff] %v1578_v47 }
 0x27c   : > { %1707 = vst [vmem:[%s3490_s6 + $0x318] sm:$0xff] %v1579_v10 }
 0x27d   : > { %v1580_v40 = vsub.f32 %v4410_v14, %v1467_v3  ;;  %v1581_v22 = vsub.f32 %v3665_v38, %v1467_v3  ;;  %v1582_v52 = vsub.f32 %v4411_v36, %v1467_v3  ;;  %v1583_v55 = vsub.f32 %v4412_v17, %v1467_v3  ;;  %v4431_v36 = vld [vmem:[#allocation44_spill] sm:$0xff] }
 0x27e   : > { %v2319_v4 = vpop.eup %2318  ;;  %v1395_v19 = vpop.xlane.xlu2 %1394 }
 0x27f   : > { %1708 = vst [vmem:[%s3490_s6 + $0x320] sm:$0xff] %v1580_v40  ;;  %v1469_v61 = vmul.f32 0.6931472, %v2319_v4  ;;  %2320 = vlog2.f32 %v1395_v19  ;;  %v4430_v40 = vld [vmem:[#allocation43_spill] sm:$0xff] }
 0x280   : > { %1709 = vst [vmem:[%s3490_s6 + $0x328] sm:$0xff] %v1581_v22 }
 0x281   : > { %1710 = vst [vmem:[%s3490_s6 + $0x330] sm:$0xff] %v1582_v52  ;;  %v1584_v44 = vsub.f32 %v4413_v53, %v1469_v61  ;;  %v1585_v38 = vsub.f32 %v4414_v49, %v1469_v61  ;;  %v1586_v54 = vsub.f32 %v4415_v7, %v1469_v61  ;;  %v1587_v15 = vsub.f32 %v4416_v30, %v1469_v61 }
 0x282   : > { %1711 = vst [vmem:[%s3490_s6 + $0x338] sm:$0xff] %v1583_v55 }
 0x283   : > { %1712 = vst [vmem:[%s3490_s6 + $0x340] sm:$0xff] %v1584_v44 }
 0x284   : > { %1713 = vst [vmem:[%s3490_s6 + $0x348] sm:$0xff] %v1585_v38 }
 0x285   : > { %v2321_v0 = vpop.eup %2320  ;;  %1714 = vst [vmem:[%s3490_s6 + $0x350] sm:$0xff] %v1586_v54 }
 0x286   : > { %1715 = vst [vmem:[%s3490_s6 + $0x358] sm:$0xff] %v1587_v15  ;;  %v1471_v26 = vmul.f32 0.6931472, %v2321_v0 }
 0x287   : > { %v1400_v37 = vpop.xlane.xlu0 %1399 }
 0x288   : > { %2322 = vlog2.f32 %v1400_v37  ;;  %v1588_v9 = vsub.f32 %v4417_v2, %v1471_v26  ;;  %v1589_v18 = vsub.f32 %v4418_v6, %v1471_v26  ;;  %v1590_v63 = vsub.f32 %v3705_v16, %v1471_v26 }
 0x289   : > { %v1591_v43 = vsub.f32 %v3708_v31, %v1471_v26 }
 0x28a   : > { %1716 = vst [vmem:[%s3490_s6 + $0x360] sm:$0xff] %v1588_v9 }
 0x28b   : > { %1717 = vst [vmem:[%s3490_s6 + $0x368] sm:$0xff] %v1589_v18 }
 0x28c   : > { %1718 = vst [vmem:[%s3490_s6 + $0x370] sm:$0xff] %v1590_v63 }
 0x28d   : > { %1719 = vst [vmem:[%s3490_s6 + $0x378] sm:$0xff] %v1591_v43 }
 0x28e   : > { %v2323_v60 = vpop.eup %2322 }
 0x28f   : > { %v1473_v33 = vmul.f32 0.6931472, %v2323_v60 }
 0x290   : > { %v1405_v48 = vpop.xlane.xlu1 %1404 }
 0x291   : > { %v1592_v41 = vsub.f32 %v4419_v62, %v1473_v33  ;;  %v1593_v11 = vsub.f32 %v4420_v1, %v1473_v33  ;;  %v1594_v8 = vsub.f32 %v3721_v42, %v1473_v33  ;;  %v1595_v16 = vsub.f32 %v4421_v39, %v1473_v33  ;;  %v4423_v42 = vld [vmem:[#allocation35_spill] sm:$0xff] }
 0x292   : > { %2324 = vlog2.f32 %v1405_v48 }
 0x293   : > { %1720 = vst [vmem:[%s3490_s6 + $0x380] sm:$0xff] %v1592_v41 }
 0x294   : > { %1721 = vst [vmem:[%s3490_s6 + $0x388] sm:$0xff] %v1593_v11 }
 0x295   : > { %1722 = vst [vmem:[%s3490_s6 + $0x390] sm:$0xff] %v1594_v8 }
 0x296   : > { %1723 = vst [vmem:[%s3490_s6 + $0x398] sm:$0xff] %v1595_v16  ;;  %v1410_v31 = vpop.xlane.xlu2 %1409 }
 0x297   : > { %2326 = vlog2.f32 %v1410_v31 }
 0x298   : > { %v2325_v59 = vpop.eup %2324 }
 0x299   : > { %v1475_v32 = vmul.f32 0.6931472, %v2325_v59 }
 0x29b   : > { %v1596_v23 = vsub.f32 %v4422_v12, %v1475_v32  ;;  %v1597_v5 = vsub.f32 %v4423_v42, %v1475_v32  ;;  %v1598_v58 = vsub.f32 %v4424_v57, %v1475_v32  ;;  %v1599_v51 = vsub.f32 %v4425_v50, %v1475_v32 }
 0x29d   : > { %v2327_v45 = vpop.eup %2326  ;;  %1724 = vst [vmem:[%s3490_s6 + $0x3a0] sm:$0xff] %v1596_v23 }
 0x29e   : > { %1725 = vst [vmem:[%s3490_s6 + $0x3a8] sm:$0xff] %v1597_v5  ;;  %v1477_v20 = vmul.f32 0.6931472, %v2327_v45 }
 0x29f   : > { %1726 = vst [vmem:[%s3490_s6 + $0x3b0] sm:$0xff] %v1598_v58  ;;  %v1415_v28 = vpop.xlane.xlu0 %1414 }
 0x2a0   : > { %1727 = vst [vmem:[%s3490_s6 + $0x3b8] sm:$0xff] %v1599_v51  ;;  %v1600_v46 = vsub.f32 %v4426_v34, %v1477_v20  ;;  %v1601_v25 = vsub.f32 %v4427_v56, %v1477_v20  ;;  %v1602_v35 = vsub.f32 %v4428_v13, %v1477_v20  ;;  %v1603_v47 = vsub.f32 %v4429_v24, %v1477_v20 }
 0x2a1   : > { %2328 = vlog2.f32 %v1415_v28 }
 0x2a2   : > { %1728 = vst [vmem:[%s3490_s6 + $0x3c0] sm:$0xff] %v1600_v46 }
 0x2a3   : > { %1729 = vst [vmem:[%s3490_s6 + $0x3c8] sm:$0xff] %v1601_v25 }
 0x2a4   : > { %1730 = vst [vmem:[%s3490_s6 + $0x3d0] sm:$0xff] %v1602_v35 }
 0x2a5   : > { %1731 = vst [vmem:[%s3490_s6 + $0x3d8] sm:$0xff] %v1603_v47 }
 0x2a7   : > { %v2329_v10 = vpop.eup %2328 }
 0x2a8   : > { %v1479_v29 = vmul.f32 0.6931472, %v2329_v10 }
 0x2aa   : > { %v1604_v3 = vsub.f32 %v3763_v21, %v1479_v29  ;;  %v1605_v14 = vsub.f32 %v3766_v27, %v1479_v29  ;;  %v1606_v22 = vsub.f32 %v4430_v40, %v1479_v29  ;;  %v1607_v52 = vsub.f32 %v4431_v36, %v1479_v29 }
 0x2ac   : > { %1732 = vst [vmem:[%s3490_s6 + $0x3e0] sm:$0xff] %v1604_v3 }
 0x2ad   : > { %1733 = vst [vmem:[%s3490_s6 + $0x3e8] sm:$0xff] %v1605_v14 }
 0x2ae   : > { %1734 = vst [vmem:[%s3490_s6 + $0x3f0] sm:$0xff] %v1606_v22 }
 0x2af   : > { %1735 = vst [vmem:[%s3490_s6 + $0x3f8] sm:$0xff] %v1607_v52 }
 0x2b0   : > { %2357 = shalt.err (!%p2354_p5)
}
 0x2b1   : > { %s2410_s30 = smov 512   ;;  %s2411_s4 = smov 32  }
 0x2b2   : > { %1953 = dma.vmem_to_hbm [thread:$0]  (%p2472_p4), %s1753_s11, 16384, %s1755_s18, %s1737_s15, %s2410_s30, %s2410_s30, %s2411_s4  }
 0x2b3 PF: > { %p1959_p6 = scmp.ge.s32.totalorder %s2408_s17, 2  ;;  %s1769_s5 = sand.u32 1, %s2388_s12  }
 0x2b4   : > { %s1770_s6 = scalar_lea.sflag [#allocation3], %s1769_s5 }
 0x2b5   : > { %p1956_p7 = pnand %p1959_p6, %p2479_p8 }
 0x2b7   : > { %p1957_p9 = pneg %p1956_p7 }
 0x2b9   : > { %2383 = dma.done.wait (%p1957_p9), %s1770_s6, 16384  }
 0x2ba   : > { %2385 = vsyncadd (%p1957_p9), %s1770_s6, 4294950912  ;;  %s16_s17 = sadd.s32 1, %s2408_s17   ;;  %s4432_s12 = smov %s2392_s13 }
 0x2bb   : > { %p13_p10 = scmp.ge.s32.totalorder %s16_s17, 4   ;;  %s4433_s13 = smov %s2396_s14 }
 0x2bc   : > { %s4434_s14 = smov %s2485_s25  ;;  %s4435_s15 = smov %s2404_s16 }
 0x2bd   : > { %s4436_s16 = smov %s4438_s20  ;;  %15 = sbr.rel (!%p13_p10) target bundleno = 4 (0x4), region = 67 }
 0x2c2   :  { %1776 = vsyncpa [#allocation3], 1 }
 0x2c3   :  { %1778 = vsyncpa [#allocation3 + $0x1], 1 }

// kernel: tpu_custom_call.1
= control target key start
LH: loop header
LB: loop body
LE: loop exit
PB: predicated region body
PF: predicated region fallthrough
CT: control target
= control target key end

     0   :  { %8 = vsyncpa [#allocation3], 0  ;;  %s4009_s0 = inlined_call_operand.vmem [shape: f32[2,256,32], index: 0, kind: input, shape index: {}]   ;;  %s4010_s1 = inlined_call_operand.vmem [shape: bf16[32,512], index: 1, kind: input, shape index: {}]   ;;  %s4011_s2 = inlined_call_operand.vmem [shape: f32[1,512], index: 2, kind: input, shape index: {}]   ;;  %s4012_s3 = inlined_call_operand.hbm [shape: f32[2,256,512], index: 3, kind: output, shape index: {}]  }
   0x1   :  { %10 = vsyncpa [#allocation3 + $0x1], 0  ;;  %s2432_s12 = smov 0   ;;  %s2434_s13 = smov 0  }
   0x2   :  { %s2436_s14 = smov 0   ;;  %s2438_s15 = smov 0  }
   0x3   :  { %s2440_s16 = smov 0   ;;  %s2442_s17 = smov 0  }
   0x4 LB: > { %s1834_s18 = sadd.s32 4294967295, %s2408_s17   ;;  %s1835_s19 = sadd.s32 4294967294, %s2408_s17   ;;  %s2408_s17 = sphi %s2442_s17, %s16_s17   ;;  %s2404_s16 = sphi %s2440_s16, %s4436_s16   ;;  %s2400_s15 = sphi %s2438_s15, %s4435_s15   ;;  %s2396_s14 = sphi %s2436_s14, %s4434_s14   ;;  %s2392_s13 = sphi %s2434_s13, %s4433_s13   ;;  %s2388_s12 = sphi %s2432_s12, %s4432_s12  }
   0x5   : > { %s28_s20 = sadd.s32 1, %s2404_s16  ;;  %s107_s21 = sadd.s32 1, %s2396_s14 }
   0x6   : > { %p30_p0 = scmp.ge.s32.totalorder %s28_s20, 2  ;;  %p117_p1 = scmp.ne.s32.totalorder %s2396_s14, %s2392_s13 }
   0x7   : > { %p118_p2 = scmp.eq.s32.totalorder %s1834_s18, 1  ;;  %p123_p3 = scmp.ne.s32.totalorder %s2392_s13, %s2388_s12 }
   0x8   : > { %s4438_s20 = smov (%p30_p0, %s28_s20), 0  ;;  %p124_p5 = scmp.eq.s32.totalorder %s1835_s19, 1 }
   0x9   : > { %p2472_p4 = por %p118_p2, %p117_p1  ;;  %s102_s23 = ssub.s32 %s2404_s16, %s4438_s20 }
   0xa   : > { %p1838_p6 = scmp.ge.s32.totalorder %s2408_s17, 1  ;;  %p105_p7 = scmp.eq.s32.totalorder %s102_s23, 0 }
   0xb   : > { %p2479_p8 = por %p124_p5, %p123_p3  ;;  %p161_p9 = scmp.lt.s32.totalorder %s2408_s17, 3 }
   0xc   : > { %s2485_s25 = scalar_select %p105_p7, %s2396_s14, %s107_s21  }
   0xd   : > { %p162_p10 = pnand %p1838_p6, %p161_p9 }
   0xf   : > { %165 = sbr.rel (%p162_p10) target bundleno = 691 (0x2b3), region = 32 }
  0x14   : > { %v1860_v0 = vld [vmem:[%s4010_s1 + $0x20] sm:$0xf]  ;;  %v1950_v1 = vld [vmem:[%s4010_s1 + $0x2c] sm:$0xf0]  ;;  %v1948_v2 = vld [vmem:[%s4010_s1 + $0x24] sm:$0xf] }
  0x15   : > { %v1861_v3 = vor.u32 %v1950_v1, %v1860_v0  ;;  %v1862_v4 = vld [vmem:[%s4010_s1 + $0x30] sm:$0xf0]  ;;  %v1868_v5 = vld [vmem:[%s4010_s1 + $0x28] sm:$0xf]  ;;  %v1951_v6 = vld [vmem:[%s4010_s1 + $0x34] sm:$0xf0] }
  0x16   : > { %v1865_v7 = vor.u32 %v1948_v2, %v1862_v4  ;;  %v1869_v8 = vor.u32 %v1951_v6, %v1868_v5  ;;  %v1949_v9 = vld [vmem:[%s4010_s1 + $0x2c] sm:$0xf]  ;;  %v1870_v10 = vld [vmem:[%s4010_s1 + $0x38] sm:$0xf0]  ;;  %v1844_v11 = vld [vmem:[%s4010_s1] sm:$0xf] }
  0x17   : > { %362 = vmatpush.bf16.msra.mxu0 %v1861_v3  ;;  %v1873_v12 = vor.u32 %v1949_v9, %v1870_v10  ;;  %v1946_v13 = vld [vmem:[%s4010_s1 + $0xc] sm:$0xf0]  ;;  %v1944_v14 = vld [vmem:[%s4010_s1 + $0x4] sm:$0xf]  ;;  %v1846_v15 = vld [vmem:[%s4010_s1 + $0x10] sm:$0xf0] }
  0x18   : > { %451 = vmatpush.bf16.msra.mxu1 %v1865_v7  ;;  %540 = vmatpush.bf16.msra.mxu2 %v1869_v8  ;;  %v1845_v16 = vor.u32 %v1946_v13, %v1844_v11  ;;  %v1849_v17 = vor.u32 %v1944_v14, %v1846_v15  ;;  %v1852_v18 = vld [vmem:[%s4010_s1 + $0x8] sm:$0xf]  ;;  %v1947_v19 = vld [vmem:[%s4010_s1 + $0x14] sm:$0xf0]  ;;  %v1945_v20 = vld [vmem:[%s4010_s1 + $0xc] sm:$0xf] }
  0x19   : > { %629 = vmatpush.bf16.msra.mxu3 %v1873_v12  ;;  %v1853_v21 = vor.u32 %v1947_v19, %v1852_v18  ;;  %v1854_v22 = vld [vmem:[%s4010_s1 + $0x18] sm:$0xf0]  ;;  %p190_p11 = scmp.lt.s32.totalorder %s2400_s15, 1  ;;  %vm307_vm0 = vcmask 261120   ;;  %v257_v48 = vld [vmem:[%s4011_s2] sm:$0xf] }
  0x1a   : > { %v1857_v23 = vor.u32 %v1945_v20, %v1854_v22  ;;  %v2595_v51 = vperm.slane %v257_v48, 0  ;;  %v2597_v52 = vperm.slane %v257_v48, 1  ;;  %v2609_v58 = vperm.slane %v257_v48, 2  ;;  %s186_s4 = sand.u32 1, %s2392_s13   ;;  %s1952_s7 = sshll.u32 %s2400_s15, 10 }
  0x1b   : > { %363 = vmatpush.bf16.msra.mxu0 %v1845_v16  ;;  %s191_s21 = scalar_select %p190_p11, %s2400_s15, 1  ;;  %v2611_v59 = vperm.slane %v257_v48, 3 }
  0x1c   : > { %452 = vmatpush.bf16.msra.mxu1 %v1849_v17  ;;  %541 = vmatpush.bf16.msra.mxu2 %v1853_v21  ;;  %s1839_s5 = sshll.u32 %s186_s4, 10  ;;  %s1751_s10 = scalar_lea.hbm %s4012_s3, %s1952_s7 }
  0x1d   : > { %630 = vmatpush.bf16.msra.mxu3 %v1857_v23  ;;  %s1943_s23 = sshll.u32 %s191_s21, 8  ;;  %s3490_s6 = scalar_lea.vmem [#allocation2], %s1839_s5 }
  0x1e   : > { %s2540_s28 = scalar_lea.vmem %s4009_s0, %s1943_s23  ;;  %s1752_s11 = sshll.u32 %s3490_s6, 4  ;;  %s1753_s11 = int_to_ptr.vmem [resolvable:$true] %s1752_s11 }
  0x1f   : > { %v201_v24 = vld [vmem:[%s2540_s28] sm:$0xff]  ;;  %v202_v25 = vld [vmem:[%s2540_s28 + $0x8] sm:$0xff]  ;;  %v203_v27 = vld [vmem:[%s2540_s28 + $0x10] sm:$0xff]  ;;  %s1754_s18 = sshll.u32 %s1751_s10, 4  ;;  %s1737_s15 = scalar_lea.sflag [#allocation3], %s186_s4  ;;  %s1755_s18 = int_to_ptr.hbm [resolvable:$true] %s1754_s18 }
  0x20   : > { %v233_v26 = vpack.c.bf16 %v202_v25, %v201_v24  ;;  %v204_v28 = vld [vmem:[%s2540_s28 + $0x18] sm:$0xff]  ;;  %v205_v30 = vld [vmem:[%s2540_s28 + $0x20] sm:$0xff]  ;;  %v206_v31 = vld [vmem:[%s2540_s28 + $0x28] sm:$0xff]  ;;  %s2344_s19 = sshra.s32 %s1755_s18, 4  ;;  %s2350_s27 = scalar_lea.hbm %s4012_s3, 2048  ;;  %s2345_s19 = int_to_ptr.hbm [resolvable:$true] %s2344_s19 }
  0x21   : > { %v234_v29 = vpack.c.bf16 %v204_v28, %v203_v27  ;;  %v235_v32 = vpack.c.bf16 %v206_v31, %v205_v30  ;;  %v207_v33 = vld [vmem:[%s2540_s28 + $0x30] sm:$0xff]  ;;  %v208_v34 = vld [vmem:[%s2540_s28 + $0x38] sm:$0xff]  ;;  %v209_v36 = vld [vmem:[%s2540_s28 + $0x40] sm:$0xff]  ;;  %s2346_s21 = scalar_lea.hbm %s2345_s19, 1024  ;;  %p2351_p1 = scmp.lt.s32.totalorder %s2345_s19, %s4012_s3 }
  0x22   : > { %1874 = vmatmul.msk.bf16.vlgmr.msra.gmra.mxu0 %vm307_vm0, %v233_v26  ;;  %1890 = vmatmul.msk.bf16.vlgmr.msra.gmra.mxu1 %vm307_vm0, %v233_v26  ;;  %v236_v35 = vpack.c.bf16 %v208_v34, %v207_v33  ;;  %v210_v37 = vld [vmem:[%s2540_s28 + $0x48] sm:$0xff]  ;;  %v211_v39 = vld [vmem:[%s2540_s28 + $0x50] sm:$0xff]  ;;  %v212_v40 = vld [vmem:[%s2540_s28 + $0x58] sm:$0xff]  ;;  %p2347_p12 = scmp.ne.s32.totalorder %s2345_s19, %s2346_s21  ;;  %p2352_p2 = scmp.lt.s32.totalorder %s2350_s27, %s2346_s21 }
  0x23   : > { %1906 = vmatmul.msk.bf16.vlgmr.msra.gmra.mxu2 %vm307_vm0, %v233_v26  ;;  %1922 = vmatmul.msk.bf16.vlgmr.msra.gmra.mxu3 %vm307_vm0, %v233_v26  ;;  %v237_v38 = vpack.c.bf16 %v210_v37, %v209_v36  ;;  %v238_v41 = vpack.c.bf16 %v212_v40, %v211_v39  ;;  %v213_v42 = vld [vmem:[%s2540_s28 + $0x60] sm:$0xff]  ;;  %v214_v43 = vld [vmem:[%s2540_s28 + $0x68] sm:$0xff]  ;;  %v215_v45 = vld [vmem:[%s2540_s28 + $0x70] sm:$0xff] }
  0x24   : > { %v239_v44 = vpack.c.bf16 %v214_v43, %v213_v42  ;;  %v216_v46 = vld [vmem:[%s2540_s28 + $0x78] sm:$0xff]  ;;  %v217_v49 = vld [vmem:[%s2540_s28 + $0x80] sm:$0xff]  ;;  %v218_v50 = vld [vmem:[%s2540_s28 + $0x88] sm:$0xff]  ;;  %p2348_p13 = pnand %p2347_p12, %p2472_p4  ;;  %p2353_p3 = por %p2352_p2, %p2351_p1 }
  0x25   : > { %v240_v47 = vpack.c.bf16 %v216_v46, %v215_v45  ;;  %v241_v53 = vpack.c.bf16 %v218_v50, %v217_v49  ;;  %v219_v7 = vld [vmem:[%s2540_s28 + $0x90] sm:$0xff]  ;;  %v220_v8 = vld [vmem:[%s2540_s28 + $0x98] sm:$0xff]  ;;  %v222_v33 = vld [vmem:[%s2540_s28 + $0xa8] sm:$0xff] }
  0x26   : > { %v242_v11 = vpack.c.bf16 %v220_v8, %v219_v7  ;;  %p2349_p0 = pneg %p2348_p13 }
  0x28   : > { %p2354_p5 = pnand %p2353_p3, %p2349_p0 }
  0x32   : > { %1875 = vmatmul.msk.bf16.gmra.mxu0 %vm307_vm0, %v234_v29  ;;  %1891 = vmatmul.msk.bf16.gmra.mxu1 %vm307_vm0, %v234_v29 }
  0x33   : > { %1907 = vmatmul.msk.bf16.gmra.mxu2 %vm307_vm0, %v234_v29  ;;  %1923 = vmatmul.msk.bf16.gmra.mxu3 %vm307_vm0, %v234_v29 }
  0x42   : > { %1876 = vmatmul.msk.bf16.gmra.mxu0 %vm307_vm0, %v235_v32  ;;  %1892 = vmatmul.msk.bf16.gmra.mxu1 %vm307_vm0, %v235_v32 }
  0x43   : > { %1908 = vmatmul.msk.bf16.gmra.mxu2 %vm307_vm0, %v235_v32  ;;  %1924 = vmatmul.msk.bf16.gmra.mxu3 %vm307_vm0, %v235_v32  ;;  %v221_v32 = vld [vmem:[%s2540_s28 + $0xa0] sm:$0xff] }
  0x44   : > { %v243_v36 = vpack.c.bf16 %v222_v33, %v221_v32 }
  0x52   : > { %1877 = vmatmul.msk.bf16.gmra.mxu0 %vm307_vm0, %v236_v35  ;;  %1893 = vmatmul.msk.bf16.gmra.mxu1 %vm307_vm0, %v236_v35 }
  0x53   : > { %1909 = vmatmul.msk.bf16.gmra.mxu2 %vm307_vm0, %v236_v35  ;;  %1925 = vmatmul.msk.bf16.gmra.mxu3 %vm307_vm0, %v236_v35 }
  0x62   : > { %1878 = vmatmul.msk.bf16.gmra.mxu0 %vm307_vm0, %v237_v38  ;;  %1894 = vmatmul.msk.bf16.gmra.mxu1 %vm307_vm0, %v237_v38 }
  0x63   : > { %1910 = vmatmul.msk.bf16.gmra.mxu2 %vm307_vm0, %v237_v38  ;;  %1926 = vmatmul.msk.bf16.gmra.mxu3 %vm307_vm0, %v237_v38 }
  0x72   : > { %1879 = vmatmul.msk.bf16.gmra.mxu0 %vm307_vm0, %v238_v41  ;;  %1895 = vmatmul.msk.bf16.gmra.mxu1 %vm307_vm0, %v238_v41 }
  0x73   : > { %1911 = vmatmul.msk.bf16.gmra.mxu2 %vm307_vm0, %v238_v41  ;;  %1927 = vmatmul.msk.bf16.gmra.mxu3 %vm307_vm0, %v238_v41 }
  0x82   : > { %1880 = vmatmul.msk.bf16.gmra.mxu0 %vm307_vm0, %v239_v44  ;;  %1896 = vmatmul.msk.bf16.gmra.mxu1 %vm307_vm0, %v239_v44 }
  0x83   : > { %1912 = vmatmul.msk.bf16.gmra.mxu2 %vm307_vm0, %v239_v44  ;;  %1928 = vmatmul.msk.bf16.gmra.mxu3 %vm307_vm0, %v239_v44 }
  0x92   : > { %1881 = vmatmul.msk.bf16.gmra.mxu0 %vm307_vm0, %v240_v47  ;;  %1897 = vmatmul.msk.bf16.gmra.mxu1 %vm307_vm0, %v240_v47 }
  0x93   : > { %1913 = vmatmul.msk.bf16.gmra.mxu2 %vm307_vm0, %v240_v47  ;;  %1929 = vmatmul.msk.bf16.gmra.mxu3 %vm307_vm0, %v240_v47 }
  0x9f   : > { %v365_v54 = vpop.f32.mrf.mxu0  ;;  %v454_v55 = vpop.f32.mrf.mxu1 }
  0xa0   : > { %v2600_v56 = vadd.f32 %v365_v54, %v2595_v51  ;;  %v2603_v57 = vadd.f32 %v454_v55, %v2597_v52 }
  0xa2   : > { %1882 = vmatmul.msk.bf16.gmra.mxu0 %vm307_vm0, %v241_v53  ;;  %1898 = vmatmul.msk.bf16.gmra.mxu1 %vm307_vm0, %v241_v53  ;;  %v712_v60 = vmax.f32 %v2600_v56, %v2603_v57 }
  0xa3   : > { %1914 = vmatmul.msk.bf16.gmra.mxu2 %vm307_vm0, %v241_v53  ;;  %1930 = vmatmul.msk.bf16.gmra.mxu3 %vm307_vm0, %v241_v53 }
  0xa6   : > { %v543_v61 = vpop.f32.mrf.mxu2  ;;  %v632_v62 = vpop.f32.mrf.mxu3 }
  0xa7   : > { %v2616_v63 = vadd.f32 %v543_v61, %v2609_v58  ;;  %v2619_v0 = vadd.f32 %v632_v62, %v2611_v59  ;;  %v367_v1 = vpop.f32.mrf.mxu0  ;;  %v456_v2 = vpop.f32.mrf.mxu1 }
  0xa8   : > { %v2623_v4 = vadd.f32 %v367_v1, %v2595_v51  ;;  %v2626_v5 = vadd.f32 %v456_v2, %v2597_v52  ;;  %v223_v1 = vld [vmem:[%s2540_s28 + $0xb0] sm:$0xff]  ;;  %v224_v2 = vld [vmem:[%s2540_s28 + $0xb8] sm:$0xff] }
  0xa9   : > { %v713_v3 = vmax.f32 %v712_v60, %v2616_v63  ;;  %v244_v7 = vpack.c.bf16 %v224_v2, %v223_v1 }
  0xaa   : > { %v717_v12 = vmax.f32 %v2623_v4, %v2626_v5 }
  0xab   : > { %v714_v6 = vmax.f32 %v713_v3, %v2619_v0 }
  0xad   : > { %715 = vmax.xlane.f32.xlu0 %v714_v6 }
  0xae   : > { %v545_v9 = vpop.f32.mrf.mxu2  ;;  %v634_v10 = vpop.f32.mrf.mxu3 }
  0xaf   : > { %v2634_v13 = vadd.f32 %v545_v9, %v2609_v58  ;;  %v370_v14 = vpop.f32.mrf.mxu0  ;;  %v459_v15 = vpop.f32.mrf.mxu1  ;;  %v2637_v16 = vadd.f32 %v634_v10, %v2611_v59 }
  0xb0   : > { %v2640_v17 = vadd.f32 %v370_v14, %v2595_v51  ;;  %v2643_v18 = vadd.f32 %v459_v15, %v2597_v52 }
  0xb1   : > { %v718_v19 = vmax.f32 %v717_v12, %v2634_v13 }
  0xb2   : > { %1883 = vmatmul.msk.bf16.gmra.mxu0 %vm307_vm0, %v242_v11  ;;  %1899 = vmatmul.msk.bf16.gmra.mxu1 %vm307_vm0, %v242_v11  ;;  %v722_v21 = vmax.f32 %v2640_v17, %v2643_v18 }
  0xb3   : > { %1915 = vmatmul.msk.bf16.gmra.mxu2 %vm307_vm0, %v242_v11  ;;  %1931 = vmatmul.msk.bf16.gmra.mxu3 %vm307_vm0, %v242_v11  ;;  %v719_v20 = vmax.f32 %v718_v19, %v2637_v16 }
  0xb5   : > { %720 = vmax.xlane.f32.xlu0 %v719_v20 }
  0xb6   : > { %v548_v22 = vpop.f32.mrf.mxu2  ;;  %v637_v23 = vpop.f32.mrf.mxu3 }
  0xb7   : > { %v2654_v24 = vadd.f32 %v548_v22, %v2609_v58  ;;  %v2657_v25 = vadd.f32 %v637_v23, %v2611_v59  ;;  %v372_v26 = vpop.f32.mrf.mxu0  ;;  %v461_v27 = vpop.f32.mrf.mxu1 }
  0xb8   : > { %v2661_v29 = vadd.f32 %v372_v26, %v2595_v51  ;;  %v2664_v30 = vadd.f32 %v461_v27, %v2597_v52 }
  0xb9   : > { %v723_v28 = vmax.f32 %v722_v21, %v2654_v24 }
  0xba   : > { %v727_v37 = vmax.f32 %v2661_v29, %v2664_v30 }
  0xbb   : > { %v724_v31 = vmax.f32 %v723_v28, %v2657_v25 }
  0xbd   : > { %725 = vmax.xlane.f32.xlu1 %v724_v31 }
  0xbe   : > { %v550_v34 = vpop.f32.mrf.mxu2  ;;  %v639_v35 = vpop.f32.mrf.mxu3 }
  0xbf   : > { %v2672_v38 = vadd.f32 %v550_v34, %v2609_v58  ;;  %v375_v39 = vpop.f32.mrf.mxu0  ;;  %v464_v40 = vpop.f32.mrf.mxu1  ;;  %v2675_v41 = vadd.f32 %v639_v35, %v2611_v59 }
  0xc0   : > { %v2678_v42 = vadd.f32 %v375_v39, %v2595_v51  ;;  %v2681_v43 = vadd.f32 %v464_v40, %v2597_v52 }
  0xc1   : > { %v728_v44 = vmax.f32 %v727_v37, %v2672_v38  ;;  %v226_v37 = vld [vmem:[%s2540_s28 + $0xc8] sm:$0xff] }
  0xc2   : > { %1884 = vmatmul.msk.bf16.gmra.mxu0 %vm307_vm0, %v243_v36  ;;  %1900 = vmatmul.msk.bf16.gmra.mxu1 %vm307_vm0, %v243_v36  ;;  %v732_v46 = vmax.f32 %v2678_v42, %v2681_v43 }
  0xc3   : > { %1916 = vmatmul.msk.bf16.gmra.mxu2 %vm307_vm0, %v243_v36  ;;  %1932 = vmatmul.msk.bf16.gmra.mxu3 %vm307_vm0, %v243_v36  ;;  %v729_v45 = vmax.f32 %v728_v44, %v2675_v41  ;;  %v225_v36 = vld [vmem:[%s2540_s28 + $0xc0] sm:$0xff] }
  0xc4   : > { %v245_v44 = vpack.c.bf16 %v226_v37, %v225_v36 }
  0xc5   : > { %730 = vmax.xlane.f32.xlu1 %v729_v45 }
  0xc6   : > { %v553_v47 = vpop.f32.mrf.mxu2  ;;  %v642_v48 = vpop.f32.mrf.mxu3 }
  0xc7   : > { %v2692_v49 = vadd.f32 %v553_v47, %v2609_v58  ;;  %v2695_v50 = vadd.f32 %v642_v48, %v2611_v59  ;;  %v377_v53 = vpop.f32.mrf.mxu0  ;;  %v466_v54 = vpop.f32.mrf.mxu1 }
  0xc8   : > { %v2699_v60 = vadd.f32 %v377_v53, %v2595_v51  ;;  %v2702_v61 = vadd.f32 %v466_v54, %v2597_v52 }
  0xc9   : > { %v733_v55 = vmax.f32 %v732_v46, %v2692_v49 }
  0xca   : > { %v737_v8 = vmax.f32 %v2699_v60, %v2702_v61 }
  0xcb   : > { %v734_v62 = vmax.f32 %v733_v55, %v2695_v50 }
  0xcd   : > { %735 = vmax.xlane.f32.xlu2 %v734_v62 }
  0xce   : > { %v555_v3 = vpop.f32.mrf.mxu2  ;;  %v644_v6 = vpop.f32.mrf.mxu3 }
  0xcf   : > { %v2710_v9 = vadd.f32 %v555_v3, %v2609_v58  ;;  %v380_v10 = vpop.f32.mrf.mxu0  ;;  %v469_v11 = vpop.f32.mrf.mxu1  ;;  %v2713_v12 = vadd.f32 %v644_v6, %v2611_v59 }
  0xd0   : > { %v2716_v14 = vadd.f32 %v380_v10, %v2595_v51  ;;  %v2719_v15 = vadd.f32 %v469_v11, %v2597_v52 }
  0xd1   : > { %v738_v19 = vmax.f32 %v737_v8, %v2710_v9 }
  0xd2   : > { %1885 = vmatmul.msk.bf16.gmra.mxu0 %vm307_vm0, %v244_v7  ;;  %1901 = vmatmul.msk.bf16.gmra.mxu1 %vm307_vm0, %v244_v7  ;;  %v742_v21 = vmax.f32 %v2716_v14, %v2719_v15 }
  0xd3   : > { %1917 = vmatmul.msk.bf16.gmra.mxu2 %vm307_vm0, %v244_v7  ;;  %1933 = vmatmul.msk.bf16.gmra.mxu3 %vm307_vm0, %v244_v7  ;;  %v739_v20 = vmax.f32 %v738_v19, %v2713_v12 }
  0xd5   : > { %740 = vmax.xlane.f32.xlu2 %v739_v20 }
  0xd6   : > { %v558_v22 = vpop.f32.mrf.mxu2  ;;  %v647_v23 = vpop.f32.mrf.mxu3 }
  0xd7   : > { %v2730_v26 = vadd.f32 %v558_v22, %v2609_v58  ;;  %v2733_v27 = vadd.f32 %v647_v23, %v2611_v59  ;;  %v382_v28 = vpop.f32.mrf.mxu0  ;;  %v471_v31 = vpop.f32.mrf.mxu1  ;;  %v227_v23 = vld [vmem:[%s2540_s28 + $0xd0] sm:$0xff] }
  0xd8   : > { %v2737_v33 = vadd.f32 %v382_v28, %v2595_v51  ;;  %v2740_v34 = vadd.f32 %v471_v31, %v2597_v52  ;;  %v228_v28 = vld [vmem:[%s2540_s28 + $0xd8] sm:$0xff] }
  0xd9   : > { %v743_v32 = vmax.f32 %v742_v21, %v2730_v26 }
  0xda   : > { %v747_v45 = vmax.f32 %v2737_v33, %v2740_v34 }
  0xdb   : > { %v744_v35 = vmax.f32 %v743_v32, %v2733_v27 }
  0xdd   : > { %745 = vmax.xlane.f32.xlu0 %v744_v35  ;;  %v246_v35 = vpack.c.bf16 %v228_v28, %v227_v23 }
  0xde   : > { %v560_v39 = vpop.f32.mrf.mxu2  ;;  %v649_v40 = vpop.f32.mrf.mxu3 }
  0xdf   : > { %v2748_v46 = vadd.f32 %v560_v39, %v2609_v58  ;;  %v385_v47 = vpop.f32.mrf.mxu0  ;;  %v474_v48 = vpop.f32.mrf.mxu1  ;;  %v2751_v53 = vadd.f32 %v649_v40, %v2611_v59 }
  0xe0   : > { %v2754_v54 = vadd.f32 %v385_v47, %v2595_v51  ;;  %v2757_v55 = vadd.f32 %v474_v48, %v2597_v52 }
  0xe1   : > { %v748_v62 = vmax.f32 %v747_v45, %v2748_v46 }
  0xe2   : > { %1886 = vmatmul.msk.bf16.gmra.mxu0 %vm307_vm0, %v245_v44  ;;  %1902 = vmatmul.msk.bf16.gmra.mxu1 %vm307_vm0, %v245_v44  ;;  %v752_v2 = vmax.f32 %v2754_v54, %v2757_v55 }
  0xe3   : > { %1918 = vmatmul.msk.bf16.gmra.mxu2 %vm307_vm0, %v245_v44  ;;  %1934 = vmatmul.msk.bf16.gmra.mxu3 %vm307_vm0, %v245_v44  ;;  %v749_v1 = vmax.f32 %v748_v62, %v2751_v53 }
  0xe5   : > { %750 = vmax.xlane.f32.xlu1 %v749_v1 }
  0xe6   : > { %v563_v3 = vpop.f32.mrf.mxu2  ;;  %v652_v6 = vpop.f32.mrf.mxu3 }
  0xe7   : > { %v2768_v7 = vadd.f32 %v563_v3, %v2609_v58  ;;  %v2771_v8 = vadd.f32 %v652_v6, %v2611_v59  ;;  %v387_v10 = vpop.f32.mrf.mxu0  ;;  %v476_v11 = vpop.f32.mrf.mxu1 }
  0xe8   : > { %v2775_v20 = vadd.f32 %v387_v10, %v2595_v51  ;;  %v2778_v21 = vadd.f32 %v476_v11, %v2597_v52 }
  0xe9   : > { %v753_v19 = vmax.f32 %v752_v2, %v2768_v7 }
  0xea   : > { %v757_v36 = vmax.f32 %v2775_v20, %v2778_v21 }
  0xeb   : > { %v754_v22 = vmax.f32 %v753_v19, %v2771_v8 }
  0xed   : > { %755 = vmax.xlane.f32.xlu2 %v754_v22 }
  0xee   : > { %v565_v31 = vpop.f32.mrf.mxu2  ;;  %v654_v32 = vpop.f32.mrf.mxu3 }
  0xef   : > { %v2786_v37 = vadd.f32 %v565_v31, %v2609_v58  ;;  %v390_v39 = vpop.f32.mrf.mxu0  ;;  %v479_v40 = vpop.f32.mrf.mxu1  ;;  %v2790_v45 = vadd.f32 %v654_v32, %v2611_v59  ;;  %v229_v32 = vld [vmem:[%s2540_s28 + $0xe0] sm:$0xff] }
  0xf0   : > { %v2793_v47 = vadd.f32 %v390_v39, %v2595_v51  ;;  %v2796_v48 = vadd.f32 %v479_v40, %v2597_v52 }
  0xf1   : > { %v758_v44 = vmax.f32 %v757_v36, %v2786_v37 }
  0xf2   : > { %1887 = vmatmul.msk.bf16.gmra.mxu0 %vm307_vm0, %v246_v35  ;;  %1903 = vmatmul.msk.bf16.gmra.mxu1 %vm307_vm0, %v246_v35  ;;  %v762_v1 = vmax.f32 %v2793_v47, %v2796_v48 }
  0xf3   : > { %1919 = vmatmul.msk.bf16.gmra.mxu2 %vm307_vm0, %v246_v35  ;;  %1935 = vmatmul.msk.bf16.gmra.mxu3 %vm307_vm0, %v246_v35  ;;  %v759_v62 = vmax.f32 %v758_v44, %v2790_v45  ;;  %v230_v35 = vld [vmem:[%s2540_s28 + $0xe8] sm:$0xff] }
  0xf4   : > { %v247_v40 = vpack.c.bf16 %v230_v35, %v229_v32 }
  0xf5   : > { %760 = vmax.xlane.f32.xlu0 %v759_v62 }
  0xf6   : > { %v568_v2 = vpop.f32.mrf.mxu2  ;;  %v657_v3 = vpop.f32.mrf.mxu3 }
  0xf7   : > { %v2806_v6 = vadd.f32 %v568_v2, %v2609_v58  ;;  %v2809_v10 = vadd.f32 %v657_v3, %v2611_v59  ;;  %v392_v11 = vpop.f32.mrf.mxu0  ;;  %v481_v19 = vpop.f32.mrf.mxu1 }
  0xf8   : > { %v2813_v23 = vadd.f32 %v392_v11, %v2595_v51  ;;  %v2816_v28 = vadd.f32 %v481_v19, %v2597_v52 }
  0xf9   : > { %v763_v22 = vmax.f32 %v762_v1, %v2806_v6 }
  0xfa   : > { %4154 = vst [vmem:[#allocation5_spill] sm:$0xff] %v2813_v23  ;;  %v767_v44 = vmax.f32 %v2813_v23, %v2816_v28 }
  0xfb   : > { %4155 = vst [vmem:[#allocation6_spill] sm:$0xff] %v2816_v28  ;;  %v764_v31 = vmax.f32 %v763_v22, %v2809_v10  ;;  %v232_v28 = vld [vmem:[%s2540_s28 + $0xf8] sm:$0xff] }
  0xfd   : > { %765 = vmax.xlane.f32.xlu1 %v764_v31 }
  0xfe   : > { %v570_v36 = vpop.f32.mrf.mxu2  ;;  %v659_v39 = vpop.f32.mrf.mxu3 }
  0xff   : > { %v2824_v62 = vadd.f32 %v570_v36, %v2609_v58  ;;  %v395_v1 = vpop.f32.mrf.mxu0  ;;  %v484_v2 = vpop.f32.mrf.mxu1  ;;  %v2828_v11 = vadd.f32 %v659_v39, %v2611_v59 }
 0x100   : > { %v2831_v19 = vadd.f32 %v395_v1, %v2595_v51  ;;  %v2834_v22 = vadd.f32 %v484_v2, %v2597_v52 }
 0x101   : > { %4156 = vst [vmem:[#allocation7_spill] sm:$0xff] %v2824_v62  ;;  %v768_v3 = vmax.f32 %v767_v44, %v2824_v62 }
 0x102   : > { %4157 = vst [vmem:[#allocation8_spill] sm:$0xff] %v2828_v11  ;;  %1888 = vmatmul.msk.bf16.gmra.mxu0 %vm307_vm0, %v247_v40  ;;  %1904 = vmatmul.msk.bf16.gmra.mxu1 %vm307_vm0, %v247_v40  ;;  %v772_v32 = vmax.f32 %v2831_v19, %v2834_v22 }
 0x103   : > { %4158 = vst [vmem:[#allocation9_spill] sm:$0xff] %v2831_v19  ;;  %1920 = vmatmul.msk.bf16.gmra.mxu2 %vm307_vm0, %v247_v40  ;;  %1936 = vmatmul.msk.bf16.gmra.mxu3 %vm307_vm0, %v247_v40  ;;  %v769_v31 = vmax.f32 %v768_v3, %v2828_v11  ;;  %v231_v11 = vld [vmem:[%s2540_s28 + $0xf0] sm:$0xff] }
 0x104   : > { %4159 = vst [vmem:[#allocation10_spill] sm:$0xff] %v2834_v22  ;;  %v248_v19 = vpack.c.bf16 %v232_v28, %v231_v11 }
 0x105   : > { %770 = vmax.xlane.f32.xlu2 %v769_v31 }
 0x106   : > { %v573_v35 = vpop.f32.mrf.mxu2  ;;  %v662_v36 = vpop.f32.mrf.mxu3 }
 0x107   : > { %v2844_v39 = vadd.f32 %v573_v35, %v2609_v58  ;;  %v2847_v44 = vadd.f32 %v662_v36, %v2611_v59  ;;  %v397_v1 = vpop.f32.mrf.mxu0  ;;  %v486_v2 = vpop.f32.mrf.mxu1 }
 0x108   : > { %v2851_v40 = vadd.f32 %v397_v1, %v2595_v51  ;;  %v2854_v3 = vadd.f32 %v486_v2, %v2597_v52 }
 0x109   : > { %4160 = vst [vmem:[#allocation11_spill] sm:$0xff] %v2844_v39  ;;  %v773_v62 = vmax.f32 %v772_v32, %v2844_v39 }
 0x10a   : > { %4161 = vst [vmem:[#allocation12_spill] sm:$0xff] %v2851_v40  ;;  %v777_v36 = vmax.f32 %v2851_v40, %v2854_v3 }
 0x10b   : > { %4162 = vst [vmem:[#allocation13_spill] sm:$0xff] %v2854_v3  ;;  %v774_v31 = vmax.f32 %v773_v62, %v2847_v44 }
 0x10d   : > { %775 = vmax.xlane.f32.xlu0 %v774_v31 }
 0x10e   : > { %v575_v35 = vpop.f32.mrf.mxu2  ;;  %v664_v22 = vpop.f32.mrf.mxu3 }
 0x10f   : > { %v2862_v23 = vadd.f32 %v575_v35, %v2609_v58  ;;  %v400_v32 = vpop.f32.mrf.mxu0  ;;  %v489_v1 = vpop.f32.mrf.mxu1  ;;  %v2866_v2 = vadd.f32 %v664_v22, %v2611_v59 }
 0x110   : > { %v2869_v62 = vadd.f32 %v400_v32, %v2595_v51  ;;  %v2872_v31 = vadd.f32 %v489_v1, %v2597_v52 }
 0x111   : > { %4163 = vst [vmem:[#allocation14_spill] sm:$0xff] %v2862_v23  ;;  %v778_v39 = vmax.f32 %v777_v36, %v2862_v23 }
 0x112   : > { %4164 = vst [vmem:[#allocation15_spill] sm:$0xff] %v2866_v2  ;;  %1889 = vmatmul.msk.bf16.gmra.mxu0 %vm307_vm0, %v248_v19  ;;  %1905 = vmatmul.msk.bf16.gmra.mxu1 %vm307_vm0, %v248_v19  ;;  %v782_v11 = vmax.f32 %v2869_v62, %v2872_v31 }
 0x113   : > { %4165 = vst [vmem:[#allocation16_spill] sm:$0xff] %v2869_v62  ;;  %1921 = vmatmul.msk.bf16.gmra.mxu2 %vm307_vm0, %v248_v19  ;;  %1937 = vmatmul.msk.bf16.gmra.mxu3 %vm307_vm0, %v248_v19  ;;  %v779_v28 = vmax.f32 %v778_v39, %v2866_v2 }
 0x114   : > { %4166 = vst [vmem:[#allocation17_spill] sm:$0xff] %v2872_v31 }
 0x115   : > { %780 = vmax.xlane.f32.xlu1 %v779_v28 }
 0x116   : > { %v578_v22 = vpop.f32.mrf.mxu2  ;;  %v667_v35 = vpop.f32.mrf.mxu3 }
 0x117   : > { %v2882_v36 = vadd.f32 %v578_v22, %v2609_v58  ;;  %v2885_v32 = vadd.f32 %v667_v35, %v2611_v59  ;;  %v402_v1 = vpop.f32.mrf.mxu0  ;;  %v491_v23 = vpop.f32.mrf.mxu1 }
 0x118   : > { %v2889_v19 = vadd.f32 %v402_v1, %v2595_v51  ;;  %v2892_v39 = vadd.f32 %v491_v23, %v2597_v52 }
 0x119   : > { %4167 = vst [vmem:[#allocation18_spill] sm:$0xff] %v2882_v36  ;;  %v783_v3 = vmax.f32 %v782_v11, %v2882_v36 }
 0x11a   : > { %4168 = vst [vmem:[#allocation19_spill] sm:$0xff] %v2885_v32  ;;  %v787_v22 = vmax.f32 %v2889_v19, %v2892_v39 }
 0x11b   : > { %4169 = vst [vmem:[#allocation20_spill] sm:$0xff] %v2892_v39  ;;  %v784_v28 = vmax.f32 %v783_v3, %v2885_v32 }
 0x11d   : > { %785 = vmax.xlane.f32.xlu2 %v784_v28 }
 0x11e   : > { %v580_v31 = vpop.f32.mrf.mxu2  ;;  %v669_v62 = vpop.f32.mrf.mxu3 }
 0x11f   : > { %v2898_v35 = vadd.f32 %v580_v31, %v2609_v58  ;;  %v405_v2 = vpop.f32.mrf.mxu0  ;;  %v494_v40 = vpop.f32.mrf.mxu1  ;;  %v2901_v11 = vadd.f32 %v669_v62, %v2611_v59 }
 0x120   : > { %v2904_v1 = vadd.f32 %v405_v2, %v2595_v51  ;;  %v2907_v23 = vadd.f32 %v494_v40, %v2597_v52  ;;  %v716_v3 = vpop.xlane.xlu0 %715 }
 0x121   : > { %4170 = vst [vmem:[#allocation21_spill] sm:$0xff] %v2898_v35  ;;  %v788_v28 = vmax.f32 %v787_v22, %v2898_v35  ;;  %v2911_v32 = vsub.f32 %v2600_v56, %v716_v3  ;;  %v2914_v31 = vsub.f32 %v2603_v57, %v716_v3  ;;  %v2917_v36 = vsub.f32 %v2616_v63, %v716_v3 }
 0x122   : > { %4171 = vst [vmem:[#allocation22_spill] sm:$0xff] %v2901_v11  ;;  %v2920_v62 = vsub.f32 %v2619_v0, %v716_v3  ;;  %v792_v56 = vmax.f32 %v2904_v1, %v2907_v23 }
 0x123   : > { %4172 = vst [vmem:[#allocation23_spill] sm:$0xff] %v2904_v1  ;;  %v1000_v2 = vmul.f32 1.442695, %v2911_v32  ;;  %v1002_v40 = vmul.f32 1.442695, %v2914_v31  ;;  %v789_v39 = vmax.f32 %v788_v28, %v2901_v11 }
 0x124   : > { %4173 = vst [vmem:[#allocation24_spill] sm:$0xff] %v2907_v23  ;;  %v1004_v22 = vmul.f32 1.442695, %v2917_v36  ;;  %v1006_v57 = vmul.f32 1.442695, %v2920_v62 }
 0x125   : > { %4174 = vst [vmem:[#allocation25_spill] sm:$0xff] %v2911_v32  ;;  %2010 = vpow2.f32 %v1000_v2  ;;  %790 = vmax.xlane.f32.xlu0 %v789_v39 }
 0x126   : > { %4175 = vst [vmem:[#allocation26_spill] sm:$0xff] %v2914_v31  ;;  %2012 = vpow2.f32 %v1002_v40  ;;  %v583_v63 = vpop.f32.mrf.mxu2  ;;  %v672_v35 = vpop.f32.mrf.mxu3 }
 0x127   : > { %4176 = vst [vmem:[#allocation27_spill] sm:$0xff] %v2917_v36  ;;  %v2930_v0 = vadd.f32 %v583_v63, %v2609_v58  ;;  %v2933_v3 = vadd.f32 %v672_v35, %v2611_v59  ;;  %v407_v31 = vpop.f32.mrf.mxu0  ;;  %v496_v28 = vpop.f32.mrf.mxu1  ;;  %2014 = vpow2.f32 %v1004_v22 }
 0x128   : > { %4177 = vst [vmem:[#allocation28_spill] sm:$0xff] %v2920_v62  ;;  %v721_v36 = vpop.xlane.xlu0 %720  ;;  %2016 = vpow2.f32 %v1006_v57 }
 0x129   : > { %4178 = vst [vmem:[#allocation29_spill] sm:$0xff] %v2930_v0  ;;  %v793_v32 = vmax.f32 %v792_v56, %v2930_v0  ;;  %v2937_v2 = vsub.f32 %v2623_v4, %v721_v36  ;;  %v2940_v39 = vsub.f32 %v2626_v5, %v721_v36  ;;  %v2943_v40 = vsub.f32 %v2634_v13, %v721_v36 }
 0x12a   : > { %v2946_v35 = vsub.f32 %v2637_v16, %v721_v36 }
 0x12b   : > { %4179 = vst [vmem:[#allocation30_spill] sm:$0xff] %v2937_v2  ;;  %v2011_v63 = vpop.eup %2010  ;;  %v1008_v62 = vmul.f32 1.442695, %v2937_v2  ;;  %v1010_v22 = vmul.f32 1.442695, %v2940_v39  ;;  %v794_v56 = vmax.f32 %v793_v32, %v2933_v3  ;;  %v2957_v32 = vadd.f32 %v496_v28, %v2597_v52 }
 0x12c   : > { %4180 = vst [vmem:[#allocation31_spill] sm:$0xff] %v2940_v39  ;;  %v2013_v0 = vpop.eup %2012  ;;  %v1012_v4 = vmul.f32 1.442695, %v2943_v40  ;;  %v1014_v1 = vmul.f32 1.442695, %v2946_v35  ;;  %v2954_v39 = vadd.f32 %v407_v31, %v2595_v51 }
 0x12d   : > { %4181 = vst [vmem:[#allocation32_spill] sm:$0xff] %v2943_v40  ;;  %2018 = vpow2.f32 %v1008_v62  ;;  %795 = vmax.xlane.f32.xlu1 %v794_v56  ;;  %v1256_v5 = vadd.f32 %v2013_v0, %v2011_v63  ;;  %v2015_v23 = vpop.eup %2014 }
 0x12e   : > { %4182 = vst [vmem:[#allocation33_spill] sm:$0xff] %v2946_v35  ;;  %2020 = vpow2.f32 %v1010_v22  ;;  %v585_v13 = vpop.f32.mrf.mxu2  ;;  %v674_v57 = vpop.f32.mrf.mxu3 }
 0x12f   : > { %v410_v16 = vpop.f32.mrf.mxu0  ;;  %v499_v36 = vpop.f32.mrf.mxu1  ;;  %v1257_v11 = vadd.f32 %v2015_v23, %v1256_v5  ;;  %2022 = vpow2.f32 %v1012_v4  ;;  %v2969_v23 = vadd.f32 %v585_v13, %v2609_v58 }
 0x130   : > { %v2017_v2 = vpop.eup %2016  ;;  %v726_v62 = vpop.xlane.xlu1 %725  ;;  %2024 = vpow2.f32 %v1014_v1  ;;  %v2981_v1 = vadd.f32 %v410_v16, %v2595_v51 }
 0x131   : > { %v2960_v0 = vsub.f32 %v2640_v17, %v726_v62  ;;  %v2963_v63 = vsub.f32 %v2643_v18, %v726_v62  ;;  %v2966_v22 = vsub.f32 %v2654_v24, %v726_v62  ;;  %v1258_v56 = vadd.f32 %v2017_v2, %v1257_v11 }
 0x132   : > { %v2972_v28 = vsub.f32 %v2657_v25, %v726_v62  ;;  %v797_v18 = vmax.f32 %v2954_v39, %v2957_v32  ;;  %v2984_v25 = vadd.f32 %v499_v36, %v2597_v52 }
 0x133   : > { %4183 = vst [vmem:[#allocation34_spill] sm:$0xff] %v2960_v0  ;;  %v2019_v31 = vpop.eup %2018  ;;  %v1016_v4 = vmul.f32 1.442695, %v2960_v0  ;;  %v1018_v17 = vmul.f32 1.442695, %v2963_v63  ;;  %1259 = vadd.xlane.f32.xlu2 %v1258_v56  ;;  %v2988_v56 = vadd.f32 %v674_v57, %v2611_v59 }
 0x134   : > { %4184 = vst [vmem:[#allocation35_spill] sm:$0xff] %v2963_v63  ;;  %v2021_v5 = vpop.eup %2020  ;;  %v1020_v24 = vmul.f32 1.442695, %v2966_v22  ;;  %v798_v11 = vmax.f32 %v797_v18, %v2969_v23  ;;  %v1022_v63 = vmul.f32 1.442695, %v2972_v28 }
 0x135   : > { %4185 = vst [vmem:[#allocation36_spill] sm:$0xff] %v2966_v22  ;;  %2026 = vpow2.f32 %v1016_v4  ;;  %v1261_v13 = vadd.f32 %v2021_v5, %v2019_v31  ;;  %v2023_v35 = vpop.eup %2022  ;;  %v802_v5 = vmax.f32 %v2981_v1, %v2984_v25 }
 0x136   : > { %4186 = vst [vmem:[#allocation37_spill] sm:$0xff] %v2972_v28  ;;  %2028 = vpow2.f32 %v1018_v17  ;;  %v588_v2 = vpop.f32.mrf.mxu2  ;;  %v677_v62 = vpop.f32.mrf.mxu3  ;;  %v799_v57 = vmax.f32 %v798_v11, %v2988_v56 }
 0x137   : > { %4187 = vst [vmem:[#allocation38_spill] sm:$0xff] %v2984_v25  ;;  %v412_v0 = vpop.f32.mrf.mxu0  ;;  %v501_v40 = vpop.f32.mrf.mxu1  ;;  %v1262_v22 = vadd.f32 %v2023_v35, %v1261_v13  ;;  %2030 = vpow2.f32 %v1020_v24  ;;  %v3002_v35 = vadd.f32 %v588_v2, %v2609_v58 }
 0x138   : > { %v731_v31 = vpop.xlane.xlu1 %730  ;;  %v2025_v4 = vpop.eup %2024  ;;  %2032 = vpow2.f32 %v1022_v63 }
 0x139   : > { %v2991_v16 = vsub.f32 %v2661_v29, %v731_v31  ;;  %v2994_v36 = vsub.f32 %v2664_v30, %v731_v31  ;;  %v2997_v17 = vsub.f32 %v2672_v38, %v731_v31  ;;  %v1263_v18 = vadd.f32 %v2025_v4, %v1262_v22 }
 0x13a   : > { %v3006_v29 = vsub.f32 %v2675_v41, %v731_v31  ;;  %v803_v11 = vmax.f32 %v802_v5, %v3002_v35  ;;  %v3013_v22 = vadd.f32 %v677_v62, %v2611_v59 }
 0x13b   : > { %4188 = vst [vmem:[#allocation39_spill] sm:$0xff] %v2991_v16  ;;  %v2027_v24 = vpop.eup %2026  ;;  %v1024_v30 = vmul.f32 1.442695, %v2991_v16  ;;  %v1026_v13 = vmul.f32 1.442695, %v2994_v36  ;;  %800 = vmax.xlane.f32.xlu2 %v799_v57  ;;  %1264 = vadd.xlane.f32.xlu0 %v1263_v18  ;;  %v3020_v57 = vadd.f32 %v501_v40, %v2597_v52 }
 0x13c   : > { %4189 = vst [vmem:[#allocation40_spill] sm:$0xff] %v2994_v36  ;;  %v2029_v38 = vpop.eup %2028  ;;  %v1028_v28 = vmul.f32 1.442695, %v2997_v17  ;;  %v1030_v31 = vmul.f32 1.442695, %v3006_v29 }
 0x13d   : > { %4190 = vst [vmem:[#allocation41_spill] sm:$0xff] %v2997_v17  ;;  %2034 = vpow2.f32 %v1024_v30  ;;  %v1266_v2 = vadd.f32 %v2029_v38, %v2027_v24  ;;  %v2031_v25 = vpop.eup %2030  ;;  %v3017_v17 = vadd.f32 %v412_v0, %v2595_v51 }
 0x13e   : > { %4191 = vst [vmem:[#allocation42_spill] sm:$0xff] %v3006_v29  ;;  %2036 = vpow2.f32 %v1026_v13  ;;  %v590_v41 = vpop.f32.mrf.mxu2  ;;  %v679_v63 = vpop.f32.mrf.mxu3  ;;  %v804_v13 = vmax.f32 %v803_v11, %v3013_v22 }
 0x13f   : > { %v415_v4 = vpop.f32.mrf.mxu0  ;;  %v504_v36 = vpop.f32.mrf.mxu1  ;;  %v1267_v16 = vadd.f32 %v2031_v25, %v1266_v2  ;;  %2038 = vpow2.f32 %v1028_v28  ;;  %v3032_v25 = vadd.f32 %v590_v41, %v2609_v58 }
 0x140   : > { %v736_v18 = vpop.xlane.xlu2 %735  ;;  %v2033_v5 = vpop.eup %2032  ;;  %2040 = vpow2.f32 %v1030_v31  ;;  %v3048_v31 = vadd.f32 %v504_v36, %v2597_v52 }
 0x141   : > { %v3023_v62 = vsub.f32 %v2678_v42, %v736_v18  ;;  %v3026_v24 = vsub.f32 %v2681_v43, %v736_v18  ;;  %v3029_v30 = vsub.f32 %v2692_v49, %v736_v18  ;;  %v1268_v0 = vadd.f32 %v2033_v5, %v1267_v16 }
 0x142   : > { %v3036_v28 = vsub.f32 %v2695_v50, %v736_v18  ;;  %v807_v49 = vmax.f32 %v3017_v17, %v3020_v57  ;;  %v3045_v50 = vadd.f32 %v415_v4, %v2595_v51 }
 0x143   : > { %4192 = vst [vmem:[#allocation43_spill] sm:$0xff] %v3023_v62  ;;  %v2035_v40 = vpop.eup %2034  ;;  %v1032_v42 = vmul.f32 1.442695, %v3023_v62  ;;  %v1034_v38 = vmul.f32 1.442695, %v3026_v24  ;;  %1269 = vadd.xlane.f32.xlu1 %v1268_v0  ;;  %805 = vmax.xlane.f32.xlu0 %v804_v13  ;;  %v3052_v13 = vadd.f32 %v679_v63, %v2611_v59 }
 0x144   : > { %4193 = vst [vmem:[#allocation44_spill] sm:$0xff] %v3026_v24  ;;  %v2037_v43 = vpop.eup %2036  ;;  %v1036_v2 = vmul.f32 1.442695, %v3029_v30  ;;  %v808_v41 = vmax.f32 %v807_v49, %v3032_v25  ;;  %v1038_v24 = vmul.f32 1.442695, %v3036_v28 }
 0x145   : > { %4194 = vst [vmem:[#allocation45_spill] sm:$0xff] %v3029_v30  ;;  %2042 = vpow2.f32 %v1032_v42  ;;  %v1271_v16 = vadd.f32 %v2037_v43, %v2035_v40  ;;  %v2039_v11 = vpop.eup %2038  ;;  %v812_v43 = vmax.f32 %v3045_v50, %v3048_v31 }
 0x146   : > { %4195 = vst [vmem:[#allocation46_spill] sm:$0xff] %v3036_v28  ;;  %2044 = vpow2.f32 %v1034_v38  ;;  %v593_v18 = vpop.f32.mrf.mxu2  ;;  %v682_v5 = vpop.f32.mrf.mxu3  ;;  %v809_v63 = vmax.f32 %v808_v41, %v3052_v13 }
 0x147   : > { %v417_v62 = vpop.f32.mrf.mxu0  ;;  %v506_v30 = vpop.f32.mrf.mxu1  ;;  %v1272_v0 = vadd.f32 %v2039_v11, %v1271_v16  ;;  %2046 = vpow2.f32 %v1036_v2  ;;  %v3066_v49 = vadd.f32 %v593_v18, %v2609_v58 }
 0x148   : > { %v741_v40 = vpop.xlane.xlu2 %740  ;;  %v2041_v42 = vpop.eup %2040  ;;  %2048 = vpow2.f32 %v1038_v24 }
 0x149   : > { %v3055_v4 = vsub.f32 %v2699_v60, %v741_v40  ;;  %v3058_v36 = vsub.f32 %v2702_v61, %v741_v40  ;;  %v3061_v38 = vsub.f32 %v2710_v9, %v741_v40  ;;  %v1273_v2 = vadd.f32 %v2041_v42, %v1272_v0 }
 0x14a   : > { %v3070_v60 = vsub.f32 %v2713_v12, %v741_v40  ;;  %v813_v41 = vmax.f32 %v812_v43, %v3066_v49  ;;  %v3077_v0 = vadd.f32 %v682_v5, %v2611_v59 }
 0x14b   : > { %4196 = vst [vmem:[#allocation47_spill] sm:$0xff] %v3055_v4  ;;  %v2043_v16 = vpop.eup %2042  ;;  %v1040_v61 = vmul.f32 1.442695, %v3055_v4  ;;  %v1042_v11 = vmul.f32 1.442695, %v3058_v36  ;;  %810 = vmax.xlane.f32.xlu1 %v809_v63  ;;  %1274 = vadd.xlane.f32.xlu2 %v1273_v2  ;;  %v3084_v63 = vadd.f32 %v506_v30, %v2597_v52 }
 0x14c   : > { %4197 = vst [vmem:[#allocation48_spill] sm:$0xff] %v3058_v36  ;;  %v2045_v9 = vpop.eup %2044  ;;  %v1044_v28 = vmul.f32 1.442695, %v3061_v38  ;;  %v1046_v40 = vmul.f32 1.442695, %v3070_v60 }
 0x14d   : > { %4198 = vst [vmem:[#allocation49_spill] sm:$0xff] %v3061_v38  ;;  %2050 = vpow2.f32 %v1040_v61  ;;  %v1276_v18 = vadd.f32 %v2045_v9, %v2043_v16  ;;  %v2047_v29 = vpop.eup %2046  ;;  %v3081_v38 = vadd.f32 %v417_v62, %v2595_v51  ;;  %v814_v62 = vmax.f32 %v813_v41, %v3077_v0 }
 0x14e   : > { %4199 = vst [vmem:[#allocation50_spill] sm:$0xff] %v3070_v60  ;;  %2052 = vpow2.f32 %v1042_v11  ;;  %v595_v12 = vpop.f32.mrf.mxu2  ;;  %v684_v24 = vpop.f32.mrf.mxu3 }
 0x14f   : > { %v420_v42 = vpop.f32.mrf.mxu0  ;;  %v509_v36 = vpop.f32.mrf.mxu1  ;;  %v1277_v4 = vadd.f32 %v2047_v29, %v1276_v18  ;;  %2054 = vpow2.f32 %v1044_v28  ;;  %v3096_v29 = vadd.f32 %v595_v12, %v2609_v58 }
 0x150   : > { %v746_v2 = vpop.xlane.xlu0 %745  ;;  %v2049_v43 = vpop.eup %2048  ;;  %2056 = vpow2.f32 %v1046_v40  ;;  %v3112_v40 = vadd.f32 %v509_v36, %v2597_v52 }
 0x151   : > { %v3087_v5 = vsub.f32 %v2716_v14, %v746_v2  ;;  %v3090_v16 = vsub.f32 %v2719_v15, %v746_v2  ;;  %v3093_v61 = vsub.f32 %v2730_v26, %v746_v2  ;;  %v1278_v11 = vadd.f32 %v2049_v43, %v1277_v4 }
 0x152   : > { %v3100_v28 = vsub.f32 %v2733_v27, %v746_v2  ;;  %v817_v26 = vmax.f32 %v3081_v38, %v3084_v63  ;;  %v3109_v27 = vadd.f32 %v420_v42, %v2595_v51 }
 0x153   : > { %4200 = vst [vmem:[#allocation51_spill] sm:$0xff] %v3087_v5  ;;  %v2051_v30 = vpop.eup %2050  ;;  %v1048_v14 = vmul.f32 1.442695, %v3087_v5  ;;  %v1050_v9 = vmul.f32 1.442695, %v3090_v16  ;;  %815 = vmax.xlane.f32.xlu2 %v814_v62  ;;  %1279 = vadd.xlane.f32.xlu0 %v1278_v11  ;;  %v3116_v11 = vadd.f32 %v684_v24, %v2611_v59 }
 0x154   : > { %4201 = vst [vmem:[#allocation52_spill] sm:$0xff] %v3090_v16  ;;  %v2053_v15 = vpop.eup %2052  ;;  %v1052_v18 = vmul.f32 1.442695, %v3093_v61  ;;  %v818_v12 = vmax.f32 %v817_v26, %v3096_v29  ;;  %v1054_v16 = vmul.f32 1.442695, %v3100_v28 }
 0x155   : > { %4202 = vst [vmem:[#allocation53_spill] sm:$0xff] %v3093_v61  ;;  %2058 = vpow2.f32 %v1048_v14  ;;  %v1281_v41 = vadd.f32 %v2053_v15, %v2051_v30  ;;  %v2055_v4 = vpop.eup %2054  ;;  %v822_v15 = vmax.f32 %v3109_v27, %v3112_v40 }
 0x156   : > { %4203 = vst [vmem:[#allocation54_spill] sm:$0xff] %v3100_v28  ;;  %2060 = vpow2.f32 %v1050_v9  ;;  %v598_v2 = vpop.f32.mrf.mxu2  ;;  %v687_v43 = vpop.f32.mrf.mxu3 }
 0x157   : > { %v422_v5 = vpop.f32.mrf.mxu0  ;;  %v511_v61 = vpop.f32.mrf.mxu1  ;;  %v1282_v62 = vadd.f32 %v2055_v4, %v1281_v41  ;;  %2062 = vpow2.f32 %v1052_v18  ;;  %v3130_v26 = vadd.f32 %v598_v2, %v2609_v58  ;;  %v819_v18 = vmax.f32 %v818_v12, %v3116_v11 }
 0x158   : > { %v751_v30 = vpop.xlane.xlu1 %750  ;;  %v2057_v14 = vpop.eup %2056  ;;  %2064 = vpow2.f32 %v1054_v16  ;;  %v3141_v12 = vadd.f32 %v687_v43, %v2611_v59 }
 0x159   : > { %v3119_v42 = vsub.f32 %v2737_v33, %v751_v30  ;;  %v3122_v36 = vsub.f32 %v2740_v34, %v751_v30  ;;  %v3125_v9 = vsub.f32 %v2748_v46, %v751_v30  ;;  %v1283_v24 = vadd.f32 %v2057_v14, %v1282_v62 }
 0x15a   : > { %v3134_v33 = vsub.f32 %v2751_v53, %v751_v30  ;;  %v823_v62 = vmax.f32 %v822_v15, %v3130_v26 }
 0x15b   : > { %4204 = vst [vmem:[#allocation55_spill] sm:$0xff] %v3119_v42  ;;  %v2059_v41 = vpop.eup %2058  ;;  %v1056_v34 = vmul.f32 1.442695, %v3119_v42  ;;  %v1058_v4 = vmul.f32 1.442695, %v3122_v36  ;;  %1284 = vadd.xlane.f32.xlu1 %v1283_v24  ;;  %820 = vmax.xlane.f32.xlu0 %v819_v18  ;;  %v3148_v24 = vadd.f32 %v511_v61, %v2597_v52 }
 0x15c   : > { %4205 = vst [vmem:[#allocation56_spill] sm:$0xff] %v3122_v36  ;;  %v2061_v46 = vpop.eup %2060  ;;  %v1060_v28 = vmul.f32 1.442695, %v3125_v9  ;;  %v1062_v30 = vmul.f32 1.442695, %v3134_v33  ;;  %v824_v43 = vmax.f32 %v823_v62, %v3141_v12 }
 0x15d   : > { %4206 = vst [vmem:[#allocation57_spill] sm:$0xff] %v3125_v9  ;;  %2066 = vpow2.f32 %v1056_v34  ;;  %v1286_v2 = vadd.f32 %v2061_v46, %v2059_v41  ;;  %v2063_v60 = vpop.eup %2062  ;;  %v3145_v9 = vadd.f32 %v422_v5, %v2595_v51 }
 0x15e   : > { %4207 = vst [vmem:[#allocation58_spill] sm:$0xff] %v3134_v33  ;;  %2068 = vpow2.f32 %v1058_v4  ;;  %v600_v53 = vpop.f32.mrf.mxu2  ;;  %v689_v16 = vpop.f32.mrf.mxu3 }
 0x15f   : > { %v425_v14 = vpop.f32.mrf.mxu0  ;;  %v514_v36 = vpop.f32.mrf.mxu1  ;;  %v1287_v42 = vadd.f32 %v2063_v60, %v1286_v2  ;;  %4208 = vst [vmem:[#allocation59_spill] sm:$0xff] %v3145_v9  ;;  %2070 = vpow2.f32 %v1060_v28  ;;  %v3151_v15 = vadd.f32 %v600_v53, %v2609_v58  ;;  %v827_v60 = vmax.f32 %v3145_v9, %v3148_v24 }
 0x160   : > { %4209 = vst [vmem:[#allocation60_spill] sm:$0xff] %v3148_v24  ;;  %v2065_v18 = vpop.eup %2064  ;;  %2072 = vpow2.f32 %v1062_v30  ;;  %v3158_v28 = vadd.f32 %v425_v14, %v2595_v51  ;;  %v3161_v2 = vadd.f32 %v514_v36, %v2597_v52  ;;  %v3164_v33 = vadd.f32 %v689_v16, %v2611_v59 }
 0x161   : > { %4210 = vst [vmem:[#allocation61_spill] sm:$0xff] %v3151_v15  ;;  %v1288_v41 = vadd.f32 %v2065_v18, %v1287_v42  ;;  %v828_v61 = vmax.f32 %v827_v60, %v3151_v15 }
 0x162   : > { %4211 = vst [vmem:[#allocation62_spill] sm:$0xff] %v3158_v28 }
 0x163   : > { %v2067_v34 = vpop.eup %2066  ;;  %825 = vmax.xlane.f32.xlu1 %v824_v43  ;;  %1289 = vadd.xlane.f32.xlu2 %v1288_v41  ;;  %4212 = vst [vmem:[#allocation63_spill] sm:$0xff] %v3161_v2  ;;  %v832_v41 = vmax.f32 %v3158_v28, %v3161_v2 }
 0x164   : > { %v2069_v4 = vpop.eup %2068  ;;  %4213 = vst [vmem:[#allocation64_spill] sm:$0xff] %v3164_v33 }
 0x165   : > { %v1291_v5 = vadd.f32 %v2069_v4, %v2067_v34  ;;  %v2071_v46 = vpop.eup %2070  ;;  %v829_v4 = vmax.f32 %v828_v61, %v3164_v33 }
 0x166   : > { %v603_v62 = vpop.f32.mrf.mxu2  ;;  %v692_v42 = vpop.f32.mrf.mxu3 }
 0x167   : > { %v427_v53 = vpop.f32.mrf.mxu0  ;;  %v516_v30 = vpop.f32.mrf.mxu1  ;;  %v1292_v18 = vadd.f32 %v2071_v46, %v1291_v5  ;;  %v3169_v34 = vadd.f32 %v603_v62, %v2609_v58  ;;  %v3180_v5 = vadd.f32 %v692_v42, %v2611_v59 }
 0x168   : > { %v2073_v43 = vpop.eup %2072  ;;  %v3173_v36 = vadd.f32 %v427_v53, %v2595_v51  ;;  %v3176_v60 = vadd.f32 %v516_v30, %v2597_v52 }
 0x169   : > { %4214 = vst [vmem:[#allocation65_spill] sm:$0xff] %v3169_v34  ;;  %v1293_v14 = vadd.f32 %v2073_v43, %v1292_v18  ;;  %v833_v16 = vmax.f32 %v832_v41, %v3169_v34  ;;  %v761_v34 = vpop.xlane.xlu0 %760 }
 0x16a   : > { %4215 = vst [vmem:[#allocation66_spill] sm:$0xff] %v3173_v36  ;;  %v837_v62 = vmax.f32 %v3173_v36, %v3176_v60 }
 0x16b   : > { %4216 = vst [vmem:[#allocation67_spill] sm:$0xff] %v3176_v60  ;;  %1294 = vadd.xlane.f32.xlu0 %v1293_v14  ;;  %830 = vmax.xlane.f32.xlu2 %v829_v4  ;;  %v834_v14 = vmax.f32 %v833_v16, %v3180_v5 }
 0x16c   : > { %4217 = vst [vmem:[#allocation68_spill] sm:$0xff] %v3180_v5 }
 0x16e   : > { %v605_v46 = vpop.f32.mrf.mxu2  ;;  %v694_v2 = vpop.f32.mrf.mxu3 }
 0x16f   : > { %v3185_v61 = vadd.f32 %v605_v46, %v2609_v58  ;;  %v430_v53 = vpop.f32.mrf.mxu0  ;;  %v519_v18 = vpop.f32.mrf.mxu1  ;;  %v3189_v43 = vadd.f32 %v694_v2, %v2611_v59 }
 0x170   : > { %v3192_v41 = vadd.f32 %v430_v53, %v2595_v51  ;;  %v3195_v42 = vadd.f32 %v519_v18, %v2597_v52  ;;  %v756_v46 = vpop.xlane.xlu2 %755 }
 0x171   : > { %4218 = vst [vmem:[#allocation69_spill] sm:$0xff] %v3185_v61  ;;  %v838_v30 = vmax.f32 %v837_v62, %v3185_v61 }
 0x172   : > { %4219 = vst [vmem:[#allocation70_spill] sm:$0xff] %v3189_v43  ;;  %v842_v60 = vmax.f32 %v3192_v41, %v3195_v42 }
 0x173   : > { %4220 = vst [vmem:[#allocation71_spill] sm:$0xff] %v3192_v41  ;;  %v839_v4 = vmax.f32 %v838_v30, %v3189_v43  ;;  %835 = vmax.xlane.f32.xlu0 %v834_v14  ;;  %v3209_v30 = vsub.f32 %v2754_v54, %v756_v46  ;;  %v3212_v14 = vsub.f32 %v2757_v55, %v756_v46 }
 0x174   : > { %4221 = vst [vmem:[#allocation72_spill] sm:$0xff] %v3195_v42  ;;  %v3222_v42 = vsub.f32 %v2775_v20, %v761_v34  ;;  %v3225_v41 = vsub.f32 %v2778_v21, %v761_v34  ;;  %v3228_v54 = vsub.f32 %v2768_v7, %v756_v46  ;;  %v3241_v7 = vsub.f32 %v2786_v37, %v761_v34 }
 0x175   : > { %840 = vmax.xlane.f32.xlu1 %v839_v4  ;;  %4224 = vst [vmem:[#allocation75_spill] sm:$0xff] %v3209_v30  ;;  %v1064_v55 = vmul.f32 1.442695, %v3209_v30  ;;  %v3244_v30 = vsub.f32 %v2790_v45, %v761_v34 }
 0x176   : > { %v608_v62 = vpop.f32.mrf.mxu2  ;;  %v697_v61 = vpop.f32.mrf.mxu3  ;;  %4225 = vst [vmem:[#allocation76_spill] sm:$0xff] %v3212_v14  ;;  %v1072_v43 = vmul.f32 1.442695, %v3222_v42  ;;  %v1068_v37 = vmul.f32 1.442695, %v3228_v54 }
 0x177   : > { %v3202_v2 = vadd.f32 %v608_v62, %v2609_v58  ;;  %v3205_v53 = vadd.f32 %v697_v61, %v2611_v59  ;;  %v432_v18 = vpop.f32.mrf.mxu0  ;;  %v521_v36 = vpop.f32.mrf.mxu1  ;;  %4228 = vst [vmem:[#allocation79_spill] sm:$0xff] %v3222_v42  ;;  %2074 = vpow2.f32 %v1064_v55  ;;  %v4246_v42 = vld [vmem:[#allocation9_spill] sm:$0xff] }
 0x178   : > { %v3215_v4 = vadd.f32 %v432_v18, %v2595_v51  ;;  %v3218_v62 = vadd.f32 %v521_v36, %v2597_v52  ;;  %4229 = vst [vmem:[#allocation80_spill] sm:$0xff] %v3225_v41  ;;  %v3232_v36 = vsub.f32 %v2771_v8, %v756_v46  ;;  %v1074_v8 = vmul.f32 1.442695, %v3225_v41 }
 0x179   : > { %4222 = vst [vmem:[#allocation73_spill] sm:$0xff] %v3202_v2  ;;  %v843_v16 = vmax.f32 %v842_v60, %v3202_v2  ;;  %v766_v60 = vpop.xlane.xlu1 %765 }
 0x17a   : > { %4223 = vst [vmem:[#allocation74_spill] sm:$0xff] %v3205_v53  ;;  %v847_v20 = vmax.f32 %v3215_v4, %v3218_v62  ;;  %v3260_v45 = vsub.f32 %v2793_v47, %v766_v60  ;;  %v1070_v34 = vmul.f32 1.442695, %v3232_v36  ;;  %v3270_v55 = vsub.f32 %v2806_v6, %v766_v60 }
 0x17b   : > { %4226 = vst [vmem:[#allocation77_spill] sm:$0xff] %v3215_v4  ;;  %v844_v61 = vmax.f32 %v843_v16, %v3205_v53  ;;  %v1066_v16 = vmul.f32 1.442695, %v3212_v14 }
 0x17c   : > { %4227 = vst [vmem:[#allocation78_spill] sm:$0xff] %v3218_v62 }
 0x17d   : > { %845 = vmax.xlane.f32.xlu2 %v844_v61  ;;  %4230 = vst [vmem:[#allocation81_spill] sm:$0xff] %v3228_v54  ;;  %2076 = vpow2.f32 %v1066_v16  ;;  %v3272_v54 = vpop.xlane.xlu2 %770  ;;  %v3286_v41 = vpop.eup %2074 }
 0x17e   : > { %v610_v18 = vpop.f32.mrf.mxu2  ;;  %v699_v2 = vpop.f32.mrf.mxu3  ;;  %4231 = vst [vmem:[#allocation82_spill] sm:$0xff] %v3232_v36  ;;  %2078 = vpow2.f32 %v1072_v43  ;;  %v3277_v43 = vsub.f32 %v2809_v10, %v766_v60  ;;  %v4244_v10 = vld [vmem:[#allocation5_spill] sm:$0xff] }
 0x17f   : > { %v3238_v21 = vadd.f32 %v610_v18, %v2609_v58  ;;  %v435_v53 = vpop.f32.mrf.mxu0  ;;  %v524_v61 = vpop.f32.mrf.mxu1  ;;  %4233 = vst [vmem:[#allocation84_spill] sm:$0xff] %v3241_v7  ;;  %v3250_v14 = vadd.f32 %v699_v2, %v2611_v59  ;;  %v1076_v2 = vmul.f32 1.442695, %v3241_v7  ;;  %2080 = vpow2.f32 %v1074_v8 }
 0x180   : > { %4234 = vst [vmem:[#allocation85_spill] sm:$0xff] %v3244_v30  ;;  %v3253_v18 = vadd.f32 %v435_v53, %v2595_v51  ;;  %v3256_v62 = vadd.f32 %v524_v61, %v2597_v52  ;;  %v3266_v53 = vsub.f32 %v2796_v48, %v766_v60  ;;  %v1078_v61 = vmul.f32 1.442695, %v3244_v30  ;;  %v776_v16 = vpop.xlane.xlu0 %775 }
 0x181   : > { %4232 = vst [vmem:[#allocation83_spill] sm:$0xff] %v3238_v21  ;;  %v848_v46 = vmax.f32 %v847_v20, %v3238_v21  ;;  %2082 = vpow2.f32 %v1068_v37  ;;  %v1080_v48 = vmul.f32 1.442695, %v3260_v45  ;;  %v3291_v60 = vsub.f32 %v4244_v10, %v3272_v54 }
 0x182   : > { %4235 = vst [vmem:[#allocation86_spill] sm:$0xff] %v3250_v14  ;;  %v852_v47 = vmax.f32 %v3253_v18, %v3256_v62  ;;  %2084 = vpow2.f32 %v1070_v34  ;;  %v1082_v37 = vmul.f32 1.442695, %v3266_v53  ;;  %v1084_v34 = vmul.f32 1.442695, %v3270_v55 }
 0x183   : > { %4236 = vst [vmem:[#allocation87_spill] sm:$0xff] %v3253_v18  ;;  %v849_v20 = vmax.f32 %v848_v46, %v3250_v14  ;;  %2086 = vpow2.f32 %v1076_v2 }
 0x184   : > { %4237 = vst [vmem:[#allocation88_spill] sm:$0xff] %v3256_v62  ;;  %2088 = vpow2.f32 %v1078_v61  ;;  %v3299_v62 = vsub.f32 %v4246_v42, %v776_v16  ;;  %v4254_v42 = vld [vmem:[#allocation7_spill] sm:$0xff] }
 0x185   : > { %4238 = vst [vmem:[#allocation89_spill] sm:$0xff] %v3260_v45  ;;  %850 = vmax.xlane.f32.xlu0 %v849_v20  ;;  %v3293_v20 = vpop.eup %2076  ;;  %2090 = vpow2.f32 %v1080_v48  ;;  %v1086_v45 = vmul.f32 1.442695, %v3277_v43  ;;  %v4252_v48 = vld [vmem:[#allocation6_spill] sm:$0xff] }
 0x186   : > { %4239 = vst [vmem:[#allocation90_spill] sm:$0xff] %v3266_v53  ;;  %v613_v46 = vpop.f32.mrf.mxu2  ;;  %v702_v8 = vpop.f32.mrf.mxu3  ;;  %v4248_v53 = vld [vmem:[#allocation10_spill] sm:$0xff]  ;;  %2092 = vpow2.f32 %v1082_v37  ;;  %v1096_v37 = vmul.f32 1.442695, %v3299_v62 }
 0x187   : > { %4240 = vst [vmem:[#allocation91_spill] sm:$0xff] %v3270_v55  ;;  %v3281_v36 = vadd.f32 %v613_v46, %v2609_v58  ;;  %v3284_v6 = vadd.f32 %v702_v8, %v2611_v59  ;;  %v437_v30 = vpop.f32.mrf.mxu0  ;;  %v526_v7 = vpop.f32.mrf.mxu1  ;;  %v3302_v18 = vsub.f32 %v4248_v53, %v776_v16  ;;  %v1088_v53 = vmul.f32 1.442695, %v3291_v60 }
 0x188   : > { %4241 = vst [vmem:[#allocation92_spill] sm:$0xff] %v3277_v43  ;;  %v2079_v8 = vpop.eup %2078  ;;  %v3305_v10 = vadd.f32 %v437_v30, %v2595_v51  ;;  %v3308_v61 = vadd.f32 %v526_v7, %v2597_v52  ;;  %v3315_v43 = vsub.f32 %v4252_v48, %v3272_v54  ;;  %2094 = vpow2.f32 %v1084_v34  ;;  %v781_v7 = vpop.xlane.xlu1 %780 }
 0x189   : > { %4242 = vst [vmem:[#allocation93_spill] sm:$0xff] %v3281_v36  ;;  %v853_v46 = vmax.f32 %v852_v47, %v3281_v36  ;;  %v2081_v2 = vpop.eup %2080  ;;  %v3319_v36 = vsub.f32 %v4254_v42, %v3272_v54  ;;  %2096 = vpow2.f32 %v1086_v45  ;;  %v3329_v42 = vsub.f32 %v2847_v44, %v776_v16 }
 0x18a   : > { %4243 = vst [vmem:[#allocation94_spill] sm:$0xff] %v3284_v6  ;;  %v3311_v47 = vpop.eup %2082  ;;  %v1301_v4 = vadd.f32 %v2081_v2, %v2079_v8  ;;  %v857_v34 = vmax.f32 %v3305_v10, %v3308_v61  ;;  %2098 = vpow2.f32 %v1088_v53  ;;  %v4260_v2 = vld [vmem:[#allocation12_spill] sm:$0xff] }
 0x18b   : > { %4245 = vst [vmem:[#allocation5_spill] sm:$0xff] %v3291_v60  ;;  %v854_v55 = vmax.f32 %v853_v46, %v3284_v6  ;;  %v3322_v30 = vpop.eup %2084  ;;  %v4256_v46 = vld [vmem:[#allocation11_spill] sm:$0xff]  ;;  %v1098_v60 = vmul.f32 1.442695, %v3302_v18  ;;  %v1092_v8 = vmul.f32 1.442695, %v3319_v36  ;;  %v3340_v33 = vsub.f32 %v4260_v2, %v781_v7 }
 0x18c   : > { %4247 = vst [vmem:[#allocation9_spill] sm:$0xff] %v3299_v62  ;;  %v2087_v14 = vpop.eup %2086  ;;  %v3325_v6 = vsub.f32 %v4256_v46, %v776_v16  ;;  %v1090_v62 = vmul.f32 1.442695, %v3315_v43  ;;  %2100 = vpow2.f32 %v1096_v37 }
 0x18d   : > { %4249 = vst [vmem:[#allocation10_spill] sm:$0xff] %v3302_v18  ;;  %855 = vmax.xlane.f32.xlu1 %v854_v55  ;;  %v2089_v5 = vpop.eup %2088  ;;  %2102 = vpow2.f32 %v1098_v60  ;;  %v1302_v37 = vadd.f32 %v2087_v14, %v1301_v4  ;;  %v4269_v60 = vld [vmem:[#allocation15_spill] sm:$0xff] }
 0x18e   : > { %4250 = vst [vmem:[#allocation95_spill] sm:$0xff] %v3305_v10  ;;  %v615_v48 = vpop.f32.mrf.mxu2  ;;  %v704_v21 = vpop.f32.mrf.mxu3  ;;  %v1100_v53 = vmul.f32 1.442695, %v3325_v6  ;;  %2104 = vpow2.f32 %v1090_v62 }
 0x18f   : > { %4251 = vst [vmem:[#allocation96_spill] sm:$0xff] %v3308_v61  ;;  %v3335_v55 = vadd.f32 %v615_v48, %v2609_v58  ;;  %v440_v45 = vpop.f32.mrf.mxu0  ;;  %v529_v46 = vpop.f32.mrf.mxu1  ;;  %v3344_v16 = vadd.f32 %v704_v21, %v2611_v59  ;;  %2106 = vpow2.f32 %v1092_v8 }
 0x190   : > { %4253 = vst [vmem:[#allocation6_spill] sm:$0xff] %v3315_v43  ;;  %v2091_v28 = vpop.eup %2090  ;;  %v3347_v18 = vadd.f32 %v440_v45, %v2595_v51  ;;  %v3350_v48 = vadd.f32 %v529_v46, %v2597_v52  ;;  %v4265_v43 = vld [vmem:[#allocation13_spill] sm:$0xff]  ;;  %v4267_v45 = vld [vmem:[#allocation14_spill] sm:$0xff]  ;;  %v1104_v46 = vmul.f32 1.442695, %v3340_v33  ;;  %2108 = vpow2.f32 %v1100_v53 }
 0x191   : > { %4255 = vst [vmem:[#allocation7_spill] sm:$0xff] %v3319_v36  ;;  %v858_v44 = vmax.f32 %v857_v34, %v3335_v55  ;;  %v2093_v61 = vpop.eup %2092  ;;  %v3354_v36 = vsub.f32 %v4265_v43, %v781_v7  ;;  %v1102_v34 = vmul.f32 1.442695, %v3329_v42  ;;  %v3361_v10 = vsub.f32 %v4267_v45, %v781_v7  ;;  %v3372_v45 = vpop.xlane.xlu2 %785 }
 0x192   : > { %4257 = vst [vmem:[#allocation11_spill] sm:$0xff] %v3325_v6  ;;  %v2095_v2 = vpop.eup %2094  ;;  %v862_v43 = vmax.f32 %v3347_v18, %v3350_v48 }
 0x193   : > { %4258 = vst [vmem:[#allocation97_spill] sm:$0xff] %v3329_v42  ;;  %v859_v21 = vmax.f32 %v858_v44, %v3344_v16  ;;  %v3369_v42 = vsub.f32 %v4269_v60, %v781_v7  ;;  %v1106_v44 = vmul.f32 1.442695, %v3354_v36  ;;  %2110 = vpow2.f32 %v1102_v34 }
 0x194   : > { %4259 = vst [vmem:[#allocation98_spill] sm:$0xff] %v3335_v55  ;;  %v3358_v55 = vpop.eup %2096  ;;  %2112 = vpow2.f32 %v1104_v46  ;;  %v1108_v53 = vmul.f32 1.442695, %v3361_v10 }
 0x195   : > { %4261 = vst [vmem:[#allocation12_spill] sm:$0xff] %v3340_v33  ;;  %860 = vmax.xlane.f32.xlu2 %v859_v21  ;;  %v3366_v6 = vpop.eup %2098  ;;  %v1303_v33 = vadd.f32 %v2089_v5, %v1302_v37  ;;  %2114 = vpow2.f32 %v1106_v44  ;;  %v1110_v46 = vmul.f32 1.442695, %v3369_v42  ;;  %v4276_v5 = vld [vmem:[#allocation16_spill] sm:$0xff] }
 0x196   : > { %4262 = vst [vmem:[#allocation99_spill] sm:$0xff] %v3344_v16  ;;  %v618_v62 = vpop.f32.mrf.mxu2  ;;  %v707_v16 = vpop.f32.mrf.mxu3  ;;  %2116 = vpow2.f32 %v1108_v53 }
 0x197   : > { %4263 = vst [vmem:[#allocation100_spill] sm:$0xff] %v3347_v18  ;;  %v3375_v14 = vadd.f32 %v618_v62, %v2609_v58  ;;  %v3378_v4 = vadd.f32 %v707_v16, %v2611_v59  ;;  %v442_v8 = vpop.f32.mrf.mxu0  ;;  %v2101_v21 = vpop.eup %2100  ;;  %v4273_v62 = vld [vmem:[#allocation20_spill] sm:$0xff]  ;;  %v4275_v16 = vld [vmem:[#allocation21_spill] sm:$0xff] }
 0x198   : > { %4264 = vst [vmem:[#allocation101_spill] sm:$0xff] %v3350_v48  ;;  %v531_v7 = vpop.f32.mrf.mxu1  ;;  %v791_v60 = vpop.xlane.xlu0 %790 }
 0x199   : > { %4266 = vst [vmem:[#allocation13_spill] sm:$0xff] %v3354_v36  ;;  %v1306_v36 = vadd.f32 %v2093_v61, %v2091_v28  ;;  %v2103_v48 = vpop.eup %2102  ;;  %v863_v34 = vmax.f32 %v862_v43, %v3375_v14  ;;  %v3383_v18 = vsub.f32 %v2889_v19, %v791_v60  ;;  %v3386_v15 = vsub.f32 %v4273_v62, %v791_v60 }
 0x19a   : > { %4268 = vst [vmem:[#allocation14_spill] sm:$0xff] %v3361_v10  ;;  %v3389_v24 = vsub.f32 %v4275_v16, %v791_v60  ;;  %v3391_v9 = vpop.eup %2104  ;;  %v3396_v28 = vsub.f32 %v4276_v5, %v3372_v45  ;;  %v3399_v61 = vadd.f32 %v442_v8, %v2595_v51  ;;  %v3404_v37 = vadd.f32 %v531_v7, %v2597_v52  ;;  %v4280_v7 = vld [vmem:[#allocation17_spill] sm:$0xff] }
 0x19b   : > { %4270 = vst [vmem:[#allocation15_spill] sm:$0xff] %v3369_v42  ;;  %v3401_v19 = vpop.eup %2106  ;;  %v1120_v43 = vmul.f32 1.442695, %v3383_v18  ;;  %v1122_v62 = vmul.f32 1.442695, %v3386_v15  ;;  %v864_v44 = vmax.f32 %v863_v34, %v3378_v4  ;;  %v4278_v42 = vld [vmem:[#allocation22_spill] sm:$0xff]  ;;  %v1316_v51 = vadd.f32 %v2103_v48, %v2101_v21 }
 0x19c   : > { %4271 = vst [vmem:[#allocation102_spill] sm:$0xff] %v3378_v4  ;;  %v2109_v16 = vpop.eup %2108  ;;  %v3410_v10 = vsub.f32 %v4278_v42, %v791_v60  ;;  %v1124_v5 = vmul.f32 1.442695, %v3389_v24  ;;  %v1307_v4 = vadd.f32 %v2095_v2, %v1306_v36  ;;  %v867_v42 = vmax.f32 %v3399_v61, %v3404_v37  ;;  %v4282_v2 = vld [vmem:[#allocation23_spill] sm:$0xff] }
 0x19d   : > { %4272 = vst [vmem:[#allocation103_spill] sm:$0xff] %v3383_v18  ;;  %v2111_v8 = vpop.eup %2110  ;;  %2118 = vpow2.f32 %v1120_v43  ;;  %865 = vmax.xlane.f32.xlu0 %v864_v44  ;;  %1304 = vadd.xlane.f32.xlu2 %v1303_v33  ;;  %v3415_v18 = vsub.f32 %v4280_v7, %v3372_v45  ;;  %v1296_v33 = vadd.f32 %v3293_v20, %v3286_v41  ;;  %v4283_v7 = vld [vmem:[#allocation24_spill] sm:$0xff] }
 0x19e   : > { %4274 = vst [vmem:[#allocation20_spill] sm:$0xff] %v3386_v15  ;;  %v2113_v52 = vpop.eup %2112  ;;  %v1112_v15 = vmul.f32 1.442695, %v3396_v28  ;;  %2120 = vpow2.f32 %v1122_v62  ;;  %v620_v34 = vpop.f32.mrf.mxu2  ;;  %v1126_v60 = vmul.f32 1.442695, %v3410_v10  ;;  %v1317_v44 = vadd.f32 %v2109_v16, %v1316_v51  ;;  %v4286_v20 = vld [vmem:[#allocation8_spill] sm:$0xff] }
 0x19f   : > { %4277 = vst [vmem:[#allocation21_spill] sm:$0xff] %v3396_v28  ;;  %v709_v53 = vpop.f32.mrf.mxu3  ;;  %2122 = vpow2.f32 %v1110_v46  ;;  %v3421_v48 = vadd.f32 %v620_v34, %v2609_v58  ;;  %v2115_v21 = vpop.eup %2114  ;;  %v4285_v34 = vld [vmem:[#allocation29_spill] sm:$0xff]  ;;  %v1308_v16 = vadd.f32 %v3358_v55, %v1307_v4 }
 0x1a0   : > { %4279 = vst [vmem:[#allocation16_spill] sm:$0xff] %v3410_v10  ;;  %2124 = vpow2.f32 %v1124_v5  ;;  %v3427_v43 = vadd.f32 %v709_v53, %v2611_v59  ;;  %v796_v62 = vpop.xlane.xlu1 %795  ;;  %v2117_v41 = vpop.eup %2116  ;;  %v3441_v5 = vsub.f32 %v4286_v20, %v3272_v54  ;;  %v1114_v59 = vmul.f32 1.442695, %v3415_v18 }
 0x1a1   : > { %4281 = vst [vmem:[#allocation22_spill] sm:$0xff] %v3415_v18  ;;  %v868_v36 = vmax.f32 %v867_v42, %v3421_v48  ;;  %v3431_v46 = vsub.f32 %v4282_v2, %v796_v62  ;;  %v3434_v58 = vsub.f32 %v4283_v7, %v796_v62  ;;  %v3437_v28 = vsub.f32 %v4285_v34, %v796_v62 }
 0x1a2   : > { %2126 = vpow2.f32 %v1112_v15  ;;  %v1321_v7 = vadd.f32 %v2115_v21, %v2113_v52  ;;  %v3449_v10 = vsub.f32 %v2933_v3, %v796_v62  ;;  %v1318_v15 = vadd.f32 %v2111_v8, %v1317_v44  ;;  %v4288_v3 = vld [vmem:[#allocation19_spill] sm:$0xff] }
 0x1a3   : > { %4284 = vst [vmem:[#allocation17_spill] sm:$0xff] %v3434_v58  ;;  %v2119_v51 = vpop.eup %2118  ;;  %v1128_v53 = vmul.f32 1.442695, %v3431_v46  ;;  %v1130_v42 = vmul.f32 1.442695, %v3434_v58  ;;  %v869_v2 = vmax.f32 %v868_v36, %v3427_v43  ;;  %2128 = vpow2.f32 %v1126_v60  ;;  %v4287_v58 = vld [vmem:[#allocation18_spill] sm:$0xff] }
 0x1a4   : > { %v2121_v34 = vpop.eup %2120  ;;  %v1132_v54 = vmul.f32 1.442695, %v3437_v28  ;;  %v1094_v18 = vmul.f32 1.442695, %v3441_v5  ;;  %v3455_v36 = vsub.f32 %v4287_v58, %v3372_v45  ;;  %v3459_v52 = vsub.f32 %v4288_v3, %v3372_v45 }
 0x1a5   : > { %v2123_v20 = vpop.eup %2122  ;;  %2130 = vpow2.f32 %v1128_v53  ;;  %870 = vmax.xlane.f32.xlu1 %v869_v2  ;;  %1309 = vadd.xlane.f32.xlu0 %v1308_v16  ;;  %v1331_v55 = vadd.f32 %v2121_v34, %v2119_v51  ;;  %v1297_v21 = vadd.f32 %v3311_v47, %v1296_v33  ;;  %v1322_v60 = vadd.f32 %v2117_v41, %v1321_v7 }
 0x1a6   : > { %v2125_v4 = vpop.eup %2124  ;;  %2132 = vpow2.f32 %v1130_v42  ;;  %1319 = vadd.xlane.f32.xlu2 %v1318_v15  ;;  %v1260_v8 = vpop.xlane.xlu2 %1259  ;;  %v1134_v44 = vmul.f32 1.442695, %v3449_v10  ;;  %v1311_v58 = vadd.f32 %v3391_v9, %v3366_v6  ;;  %v1116_v45 = vmul.f32 1.442695, %v3455_v36 }
 0x1a7   : > { %2134 = vpow2.f32 %v1114_v59  ;;  %v1332_v16 = vadd.f32 %v2125_v4, %v1331_v55  ;;  %v1118_v59 = vmul.f32 1.442695, %v3459_v52  ;;  %v1298_v47 = vadd.f32 %v3322_v30, %v1297_v21 }
 0x1a8   : > { %v2127_v62 = vpop.eup %2126  ;;  %2136 = vpow2.f32 %v1132_v54  ;;  %v1323_v33 = vadd.f32 %v2123_v20, %v1322_v60  ;;  %v1312_v9 = vadd.f32 %v3401_v19, %v1311_v58  ;;  %v4289_v60 = vld [vmem:[#allocation25_spill] sm:$0xff] }
 0x1a9   : > { %2138 = vlog2.f32 %v1260_v8  ;;  %v2129_v51 = vpop.eup %2128 }
 0x1aa   : > { %2140 = vpow2.f32 %v1094_v18  ;;  %v1333_v42 = vadd.f32 %v2129_v51, %v1332_v16  ;;  %v4290_v16 = vld [vmem:[#allocation26_spill] sm:$0xff]  ;;  %v4291_v51 = vld [vmem:[#allocation27_spill] sm:$0xff] }
 0x1ab   : > { %v2131_v53 = vpop.eup %2130  ;;  %2142 = vpow2.f32 %v1134_v44 }
 0x1ac   : > { %v2133_v41 = vpop.eup %2132  ;;  %2144 = vpow2.f32 %v1116_v45 }
 0x1ad   : > { %v2135_v2 = vpop.eup %2134  ;;  %1299 = vadd.xlane.f32.xlu1 %v1298_v47  ;;  %1324 = vadd.xlane.f32.xlu0 %v1323_v33  ;;  %v1336_v6 = vadd.f32 %v2133_v41, %v2131_v53  ;;  %2146 = vpow2.f32 %v1118_v59 }
 0x1ae   : > { %v2137_v18 = vpop.eup %2136  ;;  %1334 = vadd.xlane.f32.xlu2 %v1333_v42  ;;  %v801_v34 = vpop.xlane.xlu2 %800  ;;  %v1326_v8 = vadd.f32 %v2135_v2, %v2127_v62 }
 0x1af   : > { %v2139_v7 = vpop.eup %2138  ;;  %v1265_v54 = vpop.xlane.xlu0 %1264  ;;  %v1337_v30 = vadd.f32 %v2137_v18, %v1336_v6  ;;  %v3473_v55 = vsub.f32 %v2954_v39, %v801_v34  ;;  %v3476_v4 = vsub.f32 %v2957_v32, %v801_v34  ;;  %v3479_v19 = vsub.f32 %v2969_v23, %v801_v34  ;;  %v4292_v39 = vld [vmem:[#allocation28_spill] sm:$0xff] }
 0x1b0   : > { %v2141_v15 = vpop.eup %2140  ;;  %v1417_v20 = vmul.f32 0.6931472, %v2139_v7  ;;  %2148 = vlog2.f32 %v1265_v54  ;;  %v3485_v53 = vsub.f32 %v2988_v56, %v801_v34  ;;  %v4293_v34 = vld [vmem:[#allocation38_spill] sm:$0xff] }
 0x1b1   : > { %v1313_v3 = vadd.f32 %v2141_v15, %v1312_v9  ;;  %v2143_v21 = vpop.eup %2142  ;;  %v1136_v32 = vmul.f32 1.442695, %v3473_v55  ;;  %v1138_v23 = vmul.f32 1.442695, %v3476_v4  ;;  %v1140_v62 = vmul.f32 1.442695, %v3479_v19 }
 0x1b2   : > { %v1480_v44 = vsub.f32 %v4289_v60, %v1417_v20  ;;  %v1481_v58 = vsub.f32 %v4290_v16, %v1417_v20  ;;  %v1482_v45 = vsub.f32 %v4291_v51, %v1417_v20  ;;  %v1483_v59 = vsub.f32 %v4292_v39, %v1417_v20  ;;  %v2145_v33 = vpop.eup %2144  ;;  %v4296_v60 = vld [vmem:[#allocation32_spill] sm:$0xff] }
 0x1b3   : > { %v1338_v47 = vadd.f32 %v2143_v21, %v1337_v30  ;;  %v2147_v41 = vpop.eup %2146  ;;  %2150 = vpow2.f32 %v1136_v32  ;;  %v1327_v56 = vadd.f32 %v2145_v33, %v1326_v8  ;;  %v1142_v42 = vmul.f32 1.442695, %v3485_v53  ;;  %v4295_v21 = vld [vmem:[#allocation31_spill] sm:$0xff] }
 0x1b4   : > { %1608 = vst [vmem:[%s3490_s6] sm:$0xff] %v1480_v44  ;;  %2152 = vpow2.f32 %v1138_v23 }
 0x1b5   : > { %1609 = vst [vmem:[%s3490_s6 + $0x8] sm:$0xff] %v1481_v58  ;;  %1314 = vadd.xlane.f32.xlu1 %v1313_v3  ;;  %1339 = vadd.xlane.f32.xlu0 %v1338_v47  ;;  %2154 = vpow2.f32 %v1140_v62  ;;  %v1328_v20 = vadd.f32 %v2147_v41, %v1327_v56  ;;  %v4294_v3 = vld [vmem:[#allocation30_spill] sm:$0xff]  ;;  %v4297_v58 = vld [vmem:[#allocation33_spill] sm:$0xff] }
 0x1b6   : > { %1610 = vst [vmem:[%s3490_s6 + $0x10] sm:$0xff] %v1482_v45  ;;  %v2149_v2 = vpop.eup %2148  ;;  %v1270_v9 = vpop.xlane.xlu1 %1269 }
 0x1b7   : > { %1611 = vst [vmem:[%s3490_s6 + $0x18] sm:$0xff] %v1483_v59  ;;  %v806_v6 = vpop.xlane.xlu0 %805  ;;  %v1419_v18 = vmul.f32 0.6931472, %v2149_v2  ;;  %2156 = vlog2.f32 %v1270_v9 }
 0x1b8   : > { %v3499_v7 = vsub.f32 %v2981_v1, %v806_v6  ;;  %v3502_v54 = vsub.f32 %v4293_v34, %v806_v6  ;;  %v3505_v30 = vsub.f32 %v3002_v35, %v806_v6  ;;  %v3508_v15 = vsub.f32 %v3013_v22, %v806_v6  ;;  %v4298_v34 = vld [vmem:[#allocation34_spill] sm:$0xff] }
 0x1b9   : > { %2158 = vpow2.f32 %v1142_v42  ;;  %v1484_v8 = vsub.f32 %v4294_v3, %v1419_v18  ;;  %v1485_v1 = vsub.f32 %v4295_v21, %v1419_v18  ;;  %v1486_v44 = vsub.f32 %v4296_v60, %v1419_v18  ;;  %v2151_v16 = vpop.eup %2150  ;;  %v4299_v3 = vld [vmem:[#allocation35_spill] sm:$0xff]  ;;  %v4300_v21 = vld [vmem:[#allocation36_spill] sm:$0xff] }
 0x1ba   : > { %v1487_v51 = vsub.f32 %v4297_v58, %v1419_v18  ;;  %v1144_v45 = vmul.f32 1.442695, %v3499_v7  ;;  %v1146_v35 = vmul.f32 1.442695, %v3502_v54  ;;  %v1148_v22 = vmul.f32 1.442695, %v3505_v30  ;;  %v2153_v39 = vpop.eup %2152 }
 0x1bb   : > { %1612 = vst [vmem:[%s3490_s6 + $0x20] sm:$0xff] %v1484_v8  ;;  %v1150_v59 = vmul.f32 1.442695, %v3508_v15  ;;  %v1341_v32 = vadd.f32 %v2153_v39, %v2151_v16  ;;  %v2155_v23 = vpop.eup %2154 }
 0x1bc   : > { %1613 = vst [vmem:[%s3490_s6 + $0x28] sm:$0xff] %v1485_v1  ;;  %2160 = vpow2.f32 %v1144_v45 }
 0x1bd   : > { %1329 = vadd.xlane.f32.xlu1 %v1328_v20  ;;  %1614 = vst [vmem:[%s3490_s6 + $0x30] sm:$0xff] %v1486_v44  ;;  %2162 = vpow2.f32 %v1146_v35  ;;  %v2157_v47 = vpop.eup %2156  ;;  %v1342_v41 = vadd.f32 %v2155_v23, %v1341_v32  ;;  %v4301_v44 = vld [vmem:[#allocation37_spill] sm:$0xff] }
 0x1be   : > { %1615 = vst [vmem:[%s3490_s6 + $0x38] sm:$0xff] %v1487_v51  ;;  %2164 = vpow2.f32 %v1148_v22  ;;  %v811_v33 = vpop.xlane.xlu1 %810  ;;  %v1275_v62 = vpop.xlane.xlu2 %1274  ;;  %v1421_v42 = vmul.f32 0.6931472, %v2157_v47 }
 0x1bf   : > { %v2159_v56 = vpop.eup %2158  ;;  %2166 = vpow2.f32 %v1150_v59  ;;  %v3523_v2 = vsub.f32 %v3017_v17, %v811_v33  ;;  %v3526_v9 = vsub.f32 %v3020_v57, %v811_v33  ;;  %v3529_v6 = vsub.f32 %v3032_v25, %v811_v33 }
 0x1c0   : > { %v3532_v18 = vsub.f32 %v3052_v13, %v811_v33  ;;  %2168 = vlog2.f32 %v1275_v62  ;;  %v1488_v20 = vsub.f32 %v4298_v34, %v1421_v42  ;;  %v1489_v8 = vsub.f32 %v4299_v3, %v1421_v42 }
 0x1c1   : > { %v1490_v1 = vsub.f32 %v4300_v21, %v1421_v42  ;;  %v1343_v17 = vadd.f32 %v2159_v56, %v1342_v41  ;;  %v1491_v57 = vsub.f32 %v4301_v44, %v1421_v42  ;;  %v1152_v25 = vmul.f32 1.442695, %v3523_v2  ;;  %v4302_v42 = vld [vmem:[#allocation39_spill] sm:$0xff] }
 0x1c2   : > { %v2161_v60 = vpop.eup %2160  ;;  %v1154_v16 = vmul.f32 1.442695, %v3526_v9  ;;  %v1156_v13 = vmul.f32 1.442695, %v3529_v6  ;;  %1616 = vst [vmem:[%s3490_s6 + $0x40] sm:$0xff] %v1488_v20  ;;  %v4303_v20 = vld [vmem:[#allocation40_spill] sm:$0xff] }
 0x1c3   : > { %v2163_v58 = vpop.eup %2162  ;;  %v1158_v51 = vmul.f32 1.442695, %v3532_v18  ;;  %1617 = vst [vmem:[%s3490_s6 + $0x48] sm:$0xff] %v1489_v8  ;;  %2170 = vpow2.f32 %v1152_v25  ;;  %v4304_v8 = vld [vmem:[#allocation41_spill] sm:$0xff] }
 0x1c4   : > { %v2165_v45 = vpop.eup %2164  ;;  %v1346_v35 = vadd.f32 %v2163_v58, %v2161_v60  ;;  %1618 = vst [vmem:[%s3490_s6 + $0x50] sm:$0xff] %v1490_v1  ;;  %2172 = vpow2.f32 %v1154_v16 }
 0x1c5   : > { %1344 = vadd.xlane.f32.xlu1 %v1343_v17  ;;  %v2167_v22 = vpop.eup %2166  ;;  %1619 = vst [vmem:[%s3490_s6 + $0x58] sm:$0xff] %v1491_v57  ;;  %2174 = vpow2.f32 %v1156_v13  ;;  %v4305_v17 = vld [vmem:[#allocation42_spill] sm:$0xff] }
 0x1c6   : > { %v2169_v39 = vpop.eup %2168  ;;  %v816_v59 = vpop.xlane.xlu2 %815  ;;  %v1347_v23 = vadd.f32 %v2165_v45, %v1346_v35  ;;  %2176 = vpow2.f32 %v1158_v51 }
 0x1c7   : > { %v1280_v32 = vpop.xlane.xlu0 %1279  ;;  %v1423_v47 = vmul.f32 0.6931472, %v2169_v39  ;;  %v3547_v33 = vsub.f32 %v3045_v50, %v816_v59  ;;  %v3550_v62 = vsub.f32 %v3048_v31, %v816_v59  ;;  %v3553_v41 = vsub.f32 %v3066_v49, %v816_v59 }
 0x1c8   : > { %2178 = vlog2.f32 %v1280_v32  ;;  %v1348_v56 = vadd.f32 %v2167_v22, %v1347_v23  ;;  %v3559_v1 = vsub.f32 %v3077_v0, %v816_v59 }
 0x1c9   : > { %v1492_v34 = vsub.f32 %v4302_v42, %v1423_v47  ;;  %v1493_v3 = vsub.f32 %v4303_v20, %v1423_v47  ;;  %v1494_v21 = vsub.f32 %v4304_v8, %v1423_v47  ;;  %v2171_v50 = vpop.eup %2170  ;;  %v1495_v31 = vsub.f32 %v4305_v17, %v1423_v47  ;;  %v4308_v20 = vld [vmem:[#allocation45_spill] sm:$0xff]  ;;  %v4309_v8 = vld [vmem:[#allocation46_spill] sm:$0xff] }
 0x1ca   : > { %v1160_v49 = vmul.f32 1.442695, %v3547_v33  ;;  %v1162_v60 = vmul.f32 1.442695, %v3550_v62  ;;  %1349 = vadd.xlane.f32.xlu2 %v1348_v56  ;;  %v2173_v44 = vpop.eup %2172  ;;  %v1164_v57 = vmul.f32 1.442695, %v3553_v41 }
 0x1cb   : > { %1620 = vst [vmem:[%s3490_s6 + $0x60] sm:$0xff] %v1492_v34  ;;  %v2175_v25 = vpop.eup %2174  ;;  %v1351_v16 = vadd.f32 %v2173_v44, %v2171_v50  ;;  %v1166_v0 = vmul.f32 1.442695, %v3559_v1  ;;  %v4306_v56 = vld [vmem:[#allocation43_spill] sm:$0xff]  ;;  %v4307_v34 = vld [vmem:[#allocation44_spill] sm:$0xff] }
 0x1cc   : > { %1621 = vst [vmem:[%s3490_s6 + $0x68] sm:$0xff] %v1493_v3  ;;  %2180 = vpow2.f32 %v1160_v49  ;;  %v2177_v13 = vpop.eup %2176 }
 0x1cd   : > { %1622 = vst [vmem:[%s3490_s6 + $0x70] sm:$0xff] %v1494_v21  ;;  %2182 = vpow2.f32 %v1162_v60  ;;  %v1352_v35 = vadd.f32 %v2175_v25, %v1351_v16 }
 0x1ce   : > { %v2179_v58 = vpop.eup %2178  ;;  %1623 = vst [vmem:[%s3490_s6 + $0x78] sm:$0xff] %v1495_v31  ;;  %v1285_v51 = vpop.xlane.xlu1 %1284  ;;  %2184 = vpow2.f32 %v1164_v57 }
 0x1cf   : > { %v821_v45 = vpop.xlane.xlu0 %820  ;;  %v1425_v22 = vmul.f32 0.6931472, %v2179_v58  ;;  %2186 = vlog2.f32 %v1285_v51  ;;  %v1353_v47 = vadd.f32 %v2177_v13, %v1352_v35 }
 0x1d0   : > { %v3571_v39 = vsub.f32 %v3081_v38, %v821_v45  ;;  %v3574_v59 = vsub.f32 %v3084_v63, %v821_v45  ;;  %v3577_v32 = vsub.f32 %v3096_v29, %v821_v45  ;;  %v3580_v23 = vsub.f32 %v3116_v11, %v821_v45 }
 0x1d1   : > { %2188 = vpow2.f32 %v1166_v0  ;;  %v1496_v42 = vsub.f32 %v4306_v56, %v1425_v22  ;;  %v1497_v38 = vsub.f32 %v4307_v34, %v1425_v22  ;;  %v1498_v3 = vsub.f32 %v4308_v20, %v1425_v22  ;;  %1354 = vadd.xlane.f32.xlu0 %v1353_v47  ;;  %v4311_v56 = vld [vmem:[#allocation48_spill] sm:$0xff]  ;;  %v4312_v34 = vld [vmem:[#allocation49_spill] sm:$0xff] }
 0x1d2   : > { %v2181_v63 = vpop.eup %2180  ;;  %v1499_v21 = vsub.f32 %v4309_v8, %v1425_v22  ;;  %v1168_v29 = vmul.f32 1.442695, %v3571_v39  ;;  %v1170_v50 = vmul.f32 1.442695, %v3574_v59  ;;  %v1172_v11 = vmul.f32 1.442695, %v3577_v32 }
 0x1d3   : > { %v2183_v17 = vpop.eup %2182  ;;  %1624 = vst [vmem:[%s3490_s6 + $0x80] sm:$0xff] %v1496_v42  ;;  %v1174_v31 = vmul.f32 1.442695, %v3580_v23  ;;  %v4310_v22 = vld [vmem:[#allocation47_spill] sm:$0xff] }
 0x1d4   : > { %1625 = vst [vmem:[%s3490_s6 + $0x88] sm:$0xff] %v1497_v38  ;;  %2190 = vpow2.f32 %v1168_v29  ;;  %v1356_v49 = vadd.f32 %v2183_v17, %v2181_v63  ;;  %v2185_v60 = vpop.eup %2184 }
 0x1d5   : > { %1626 = vst [vmem:[%s3490_s6 + $0x90] sm:$0xff] %v1498_v3  ;;  %2192 = vpow2.f32 %v1170_v50  ;;  %v2187_v44 = vpop.eup %2186  ;;  %v4313_v3 = vld [vmem:[#allocation50_spill] sm:$0xff] }
 0x1d6   : > { %1627 = vst [vmem:[%s3490_s6 + $0x98] sm:$0xff] %v1499_v21  ;;  %2194 = vpow2.f32 %v1172_v11  ;;  %v826_v57 = vpop.xlane.xlu1 %825  ;;  %v1290_v25 = vpop.xlane.xlu2 %1289  ;;  %v1357_v16 = vadd.f32 %v2185_v60, %v1356_v49  ;;  %v1427_v0 = vmul.f32 0.6931472, %v2187_v44 }
 0x1d7   : > { %v2189_v13 = vpop.eup %2188  ;;  %2196 = vpow2.f32 %v1174_v31  ;;  %v3595_v58 = vsub.f32 %v3109_v27, %v826_v57  ;;  %v3598_v51 = vsub.f32 %v3112_v40, %v826_v57  ;;  %v3601_v45 = vsub.f32 %v3130_v26, %v826_v57 }
 0x1d8   : > { %2198 = vlog2.f32 %v1290_v25  ;;  %v1358_v35 = vadd.f32 %v2189_v13, %v1357_v16  ;;  %v1500_v47 = vsub.f32 %v4310_v22, %v1427_v0  ;;  %v1501_v42 = vsub.f32 %v4311_v56, %v1427_v0  ;;  %v4315_v16 = vld [vmem:[#allocation60_spill] sm:$0xff] }
 0x1d9   : > { %v1502_v38 = vsub.f32 %v4312_v34, %v1427_v0  ;;  %v3607_v20 = vsub.f32 %v3141_v12, %v826_v57  ;;  %v1503_v40 = vsub.f32 %v4313_v3, %v1427_v0  ;;  %v1176_v26 = vmul.f32 1.442695, %v3595_v58  ;;  %v4314_v57 = vld [vmem:[#allocation59_spill] sm:$0xff]  ;;  %v4316_v0 = vld [vmem:[#allocation61_spill] sm:$0xff]  ;;  %v4317_v22 = vld [vmem:[#allocation64_spill] sm:$0xff] }
 0x1da   : > { %v2191_v27 = vpop.eup %2190  ;;  %v1178_v63 = vmul.f32 1.442695, %v3598_v51  ;;  %1359 = vadd.xlane.f32.xlu1 %v1358_v35  ;;  %1628 = vst [vmem:[%s3490_s6 + $0xa0] sm:$0xff] %v1500_v47  ;;  %v1180_v21 = vmul.f32 1.442695, %v3601_v45  ;;  %v4320_v3 = vld [vmem:[#allocation53_spill] sm:$0xff] }
 0x1db   : > { %v2193_v8 = vpop.eup %2192  ;;  %1629 = vst [vmem:[%s3490_s6 + $0xa8] sm:$0xff] %v1501_v42  ;;  %2200 = vpow2.f32 %v1176_v26  ;;  %v1182_v12 = vmul.f32 1.442695, %v3607_v20  ;;  %v4318_v42 = vld [vmem:[#allocation51_spill] sm:$0xff] }
 0x1dc   : > { %v2195_v29 = vpop.eup %2194  ;;  %v1361_v50 = vadd.f32 %v2193_v8, %v2191_v27  ;;  %1630 = vst [vmem:[%s3490_s6 + $0xb0] sm:$0xff] %v1502_v38  ;;  %2202 = vpow2.f32 %v1178_v63  ;;  %v4319_v38 = vld [vmem:[#allocation52_spill] sm:$0xff]  ;;  %v4321_v63 = vld [vmem:[#allocation54_spill] sm:$0xff] }
 0x1dd   : > { %v2197_v11 = vpop.eup %2196  ;;  %1631 = vst [vmem:[%s3490_s6 + $0xb8] sm:$0xff] %v1503_v40  ;;  %2204 = vpow2.f32 %v1180_v21 }
 0x1de   : > { %v2199_v17 = vpop.eup %2198  ;;  %v831_v31 = vpop.xlane.xlu2 %830  ;;  %v1362_v60 = vadd.f32 %v2195_v29, %v1361_v50 }
 0x1df   : > { %v1295_v49 = vpop.xlane.xlu0 %1294  ;;  %v1429_v44 = vmul.f32 0.6931472, %v2199_v17  ;;  %v3619_v25 = vsub.f32 %v4314_v57, %v831_v31  ;;  %v3622_v13 = vsub.f32 %v4315_v16, %v831_v31  ;;  %v3625_v35 = vsub.f32 %v4316_v0, %v831_v31  ;;  %v4322_v0 = vld [vmem:[#allocation62_spill] sm:$0xff] }
 0x1e0   : > { %v3628_v47 = vsub.f32 %v4317_v22, %v831_v31  ;;  %2206 = vlog2.f32 %v1295_v49  ;;  %v1363_v56 = vadd.f32 %v2197_v11, %v1362_v60 }
 0x1e1   : > { %2208 = vpow2.f32 %v1182_v12  ;;  %v1504_v34 = vsub.f32 %v4318_v42, %v1429_v44  ;;  %v1505_v27 = vsub.f32 %v4319_v38, %v1429_v44  ;;  %v1506_v40 = vsub.f32 %v4320_v3, %v1429_v44  ;;  %v2201_v26 = vpop.eup %2200  ;;  %v4325_v38 = vld [vmem:[#allocation65_spill] sm:$0xff]  ;;  %v4327_v3 = vld [vmem:[#allocation68_spill] sm:$0xff] }
 0x1e2   : > { %v1507_v8 = vsub.f32 %v4321_v63, %v1429_v44  ;;  %v1184_v21 = vmul.f32 1.442695, %v3619_v25  ;;  %v1186_v29 = vmul.f32 1.442695, %v3622_v13  ;;  %v1188_v50 = vmul.f32 1.442695, %v3625_v35  ;;  %1364 = vadd.xlane.f32.xlu2 %v1363_v56  ;;  %v2203_v11 = vpop.eup %2202 }
 0x1e3   : > { %1632 = vst [vmem:[%s3490_s6 + $0xc0] sm:$0xff] %v1504_v34  ;;  %v1190_v12 = vmul.f32 1.442695, %v3628_v47  ;;  %v1366_v17 = vadd.f32 %v2203_v11, %v2201_v26  ;;  %v2205_v31 = vpop.eup %2204  ;;  %v4323_v56 = vld [vmem:[#allocation63_spill] sm:$0xff]  ;;  %v4329_v63 = vld [vmem:[#allocation66_spill] sm:$0xff] }
 0x1e4   : > { %1633 = vst [vmem:[%s3490_s6 + $0xc8] sm:$0xff] %v1505_v27  ;;  %2210 = vpow2.f32 %v1184_v21  ;;  %v4331_v21 = vld [vmem:[#allocation55_spill] sm:$0xff] }
 0x1e5   : > { %1634 = vst [vmem:[%s3490_s6 + $0xd0] sm:$0xff] %v1506_v40  ;;  %2212 = vpow2.f32 %v1186_v29  ;;  %v1367_v44 = vadd.f32 %v2205_v31, %v1366_v17  ;;  %v4334_v31 = vld [vmem:[#allocation58_spill] sm:$0xff] }
 0x1e6   : > { %v2207_v49 = vpop.eup %2206  ;;  %1635 = vst [vmem:[%s3490_s6 + $0xd8] sm:$0xff] %v1507_v8  ;;  %2214 = vpow2.f32 %v1188_v50  ;;  %v4332_v50 = vld [vmem:[#allocation56_spill] sm:$0xff] }
 0x1e7   : > { %v836_v60 = vpop.xlane.xlu0 %835  ;;  %v2209_v57 = vpop.eup %2208  ;;  %2216 = vpow2.f32 %v1190_v12  ;;  %v1431_v16 = vmul.f32 0.6931472, %v2207_v49  ;;  %v4333_v12 = vld [vmem:[#allocation57_spill] sm:$0xff] }
 0x1e8   : > { %v3643_v22 = vsub.f32 %v4322_v0, %v836_v60  ;;  %v3646_v42 = vsub.f32 %v4323_v56, %v836_v60  ;;  %v841_v34 = vpop.xlane.xlu1 %840  ;;  %v3649_v27 = vsub.f32 %v4325_v38, %v836_v60  ;;  %v3652_v40 = vsub.f32 %v4327_v3, %v836_v60 }
 0x1e9   : > { %v1368_v26 = vadd.f32 %v2209_v57, %v1367_v44  ;;  %v3655_v8 = vsub.f32 %v4329_v63, %v841_v34  ;;  %v1508_v29 = vsub.f32 %v4331_v21, %v1431_v16  ;;  %v1509_v11 = vsub.f32 %v4332_v50, %v1431_v16  ;;  %v4335_v57 = vld [vmem:[#allocation67_spill] sm:$0xff]  ;;  %v4336_v21 = vld [vmem:[#allocation69_spill] sm:$0xff] }
 0x1ea   : > { %4324 = vst [vmem:[#allocation23_spill] sm:$0xff] %v3646_v42  ;;  %v1510_v17 = vsub.f32 %v4333_v12, %v1431_v16  ;;  %v1511_v49 = vsub.f32 %v4334_v31, %v1431_v16  ;;  %v2211_v0 = vpop.eup %2210  ;;  %v1192_v56 = vmul.f32 1.442695, %v3643_v22  ;;  %v1194_v60 = vmul.f32 1.442695, %v3646_v42 }
 0x1eb   : > { %4326 = vst [vmem:[#allocation24_spill] sm:$0xff] %v3649_v27  ;;  %v1196_v44 = vmul.f32 1.442695, %v3649_v27  ;;  %1369 = vadd.xlane.f32.xlu0 %v1368_v26  ;;  %v3665_v38 = vsub.f32 %v4335_v57, %v841_v34  ;;  %v2213_v3 = vpop.eup %2212  ;;  %v1198_v63 = vmul.f32 1.442695, %v3652_v40  ;;  %v3670_v50 = vsub.f32 %v4336_v21, %v841_v34  ;;  %v4338_v57 = vld [vmem:[#allocation70_spill] sm:$0xff] }
 0x1ec   : > { %4328 = vst [vmem:[#allocation29_spill] sm:$0xff] %v3652_v40  ;;  %v2215_v16 = vpop.eup %2214  ;;  %2218 = vpow2.f32 %v1192_v56  ;;  %v1200_v12 = vmul.f32 1.442695, %v3655_v8  ;;  %v1371_v31 = vadd.f32 %v2213_v3, %v2211_v0  ;;  %v4340_v56 = vld [vmem:[#allocation71_spill] sm:$0xff]  ;;  %v4342_v0 = vld [vmem:[#allocation72_spill] sm:$0xff]  ;;  %v4346_v3 = vld [vmem:[#allocation74_spill] sm:$0xff] }
 0x1ed   : > { %4330 = vst [vmem:[#allocation8_spill] sm:$0xff] %v3655_v8  ;;  %v2217_v42 = vpop.eup %2216  ;;  %2220 = vpow2.f32 %v1194_v60  ;;  %v1202_v26 = vmul.f32 1.442695, %v3665_v38  ;;  %v1204_v21 = vmul.f32 1.442695, %v3670_v50  ;;  %v4344_v60 = vld [vmem:[#allocation73_spill] sm:$0xff] }
 0x1ee   : > { %1636 = vst [vmem:[%s3490_s6 + $0xe0] sm:$0xff] %v1508_v29  ;;  %2222 = vpow2.f32 %v1196_v44  ;;  %v3678_v29 = vsub.f32 %v4338_v57, %v841_v34  ;;  %v1372_v40 = vadd.f32 %v2215_v16, %v1371_v31 }
 0x1ef   : > { %4337 = vst [vmem:[#allocation18_spill] sm:$0xff] %v3670_v50  ;;  %2224 = vpow2.f32 %v1198_v63 }
 0x1f0   : > { %1637 = vst [vmem:[%s3490_s6 + $0xe8] sm:$0xff] %v1509_v11  ;;  %v846_v27 = vpop.xlane.xlu2 %845  ;;  %2226 = vpow2.f32 %v1200_v12  ;;  %v1373_v11 = vadd.f32 %v2217_v42, %v1372_v40  ;;  %v1206_v34 = vmul.f32 1.442695, %v3678_v29 }
 0x1f1   : > { %1638 = vst [vmem:[%s3490_s6 + $0xf0] sm:$0xff] %v1510_v17  ;;  %v3682_v8 = vsub.f32 %v4340_v56, %v846_v27  ;;  %v3685_v17 = vsub.f32 %v4342_v0, %v846_v27  ;;  %2228 = vpow2.f32 %v1202_v26  ;;  %v3692_v63 = vsub.f32 %v4346_v3, %v846_v27 }
 0x1f2   : > { %1639 = vst [vmem:[%s3490_s6 + $0xf8] sm:$0xff] %v1511_v49  ;;  %v3688_v49 = vsub.f32 %v4344_v60, %v846_v27  ;;  %v2219_v44 = vpop.eup %2218  ;;  %1374 = vadd.xlane.f32.xlu1 %v1373_v11  ;;  %2230 = vpow2.f32 %v1204_v21  ;;  %v4350_v21 = vld [vmem:[#allocation78_spill] sm:$0xff] }
 0x1f3   : > { %4339 = vst [vmem:[#allocation19_spill] sm:$0xff] %v3678_v29  ;;  %v1208_v16 = vmul.f32 1.442695, %v3682_v8  ;;  %v1210_v42 = vmul.f32 1.442695, %v3685_v17  ;;  %v2221_v40 = vpop.eup %2220 }
 0x1f4   : > { %4341 = vst [vmem:[#allocation25_spill] sm:$0xff] %v3682_v8  ;;  %v1212_v12 = vmul.f32 1.442695, %v3688_v49  ;;  %v2223_v31 = vpop.eup %2222  ;;  %v1376_v26 = vadd.f32 %v2221_v40, %v2219_v44  ;;  %v1214_v11 = vmul.f32 1.442695, %v3692_v63  ;;  %v4348_v8 = vld [vmem:[#allocation77_spill] sm:$0xff] }
 0x1f5   : > { %4343 = vst [vmem:[#allocation26_spill] sm:$0xff] %v3685_v17  ;;  %2232 = vpow2.f32 %v1208_v16  ;;  %v2225_v57 = vpop.eup %2224 }
 0x1f6   : > { %4345 = vst [vmem:[#allocation27_spill] sm:$0xff] %v3688_v49  ;;  %2234 = vpow2.f32 %v1210_v42  ;;  %v2227_v56 = vpop.eup %2226  ;;  %v1377_v0 = vadd.f32 %v2223_v31, %v1376_v26  ;;  %v4352_v49 = vld [vmem:[#allocation83_spill] sm:$0xff] }
 0x1f7   : > { %4347 = vst [vmem:[#allocation28_spill] sm:$0xff] %v3692_v63  ;;  %2236 = vpow2.f32 %v1206_v34  ;;  %v2229_v27 = vpop.eup %2228  ;;  %v4353_v34 = vld [vmem:[#allocation86_spill] sm:$0xff] }
 0x1f8   : > { %2238 = vpow2.f32 %v1212_v12  ;;  %v851_v60 = vpop.xlane.xlu0 %850  ;;  %v1378_v3 = vadd.f32 %v2225_v57, %v1377_v0  ;;  %v2231_v44 = vpop.eup %2230  ;;  %v1381_v42 = vadd.f32 %v2229_v27, %v2227_v56 }
 0x1f9   : > { %v3699_v17 = vsub.f32 %v4348_v8, %v851_v60  ;;  %v3702_v29 = vsub.f32 %v4350_v21, %v851_v60  ;;  %v3705_v16 = vsub.f32 %v4352_v49, %v851_v60  ;;  %2240 = vpow2.f32 %v1214_v11 }
 0x1fa   : > { %1379 = vadd.xlane.f32.xlu2 %v1378_v3  ;;  %v3708_v31 = vsub.f32 %v4353_v34, %v851_v60  ;;  %v1382_v0 = vadd.f32 %v2231_v44, %v1381_v42  ;;  %v4354_v34 = vld [vmem:[#allocation87_spill] sm:$0xff]  ;;  %v4358_v44 = vld [vmem:[#allocation93_spill] sm:$0xff] }
 0x1fb   : > { %4349 = vst [vmem:[#allocation38_spill] sm:$0xff] %v3699_v17  ;;  %v2233_v40 = vpop.eup %2232  ;;  %v1216_v12 = vmul.f32 1.442695, %v3699_v17  ;;  %v1218_v26 = vmul.f32 1.442695, %v3702_v29 }
 0x1fc   : > { %4351 = vst [vmem:[#allocation30_spill] sm:$0xff] %v3702_v29  ;;  %v2235_v8 = vpop.eup %2234  ;;  %v1220_v57 = vmul.f32 1.442695, %v3705_v16  ;;  %v1222_v11 = vmul.f32 1.442695, %v3708_v31  ;;  %v4356_v29 = vld [vmem:[#allocation88_spill] sm:$0xff] }
 0x1fd   : > { %v2237_v21 = vpop.eup %2236  ;;  %2242 = vpow2.f32 %v1216_v12  ;;  %v1386_v49 = vadd.f32 %v2235_v8, %v2233_v40 }
 0x1fe   : > { %v2239_v63 = vpop.eup %2238  ;;  %2244 = vpow2.f32 %v1218_v26  ;;  %v1383_v56 = vadd.f32 %v2237_v21, %v1382_v0  ;;  %v4359_v26 = vld [vmem:[#allocation94_spill] sm:$0xff] }
 0x1ff   : > { %v1387_v27 = vadd.f32 %v2239_v63, %v1386_v49  ;;  %2246 = vpow2.f32 %v1220_v57  ;;  %v2241_v3 = vpop.eup %2240 }
 0x200   : > { %1384 = vadd.xlane.f32.xlu0 %v1383_v56  ;;  %v856_v60 = vpop.xlane.xlu1 %855  ;;  %2248 = vpow2.f32 %v1222_v11 }
 0x201   : > { %v3715_v17 = vsub.f32 %v4354_v34, %v856_v60  ;;  %v3718_v50 = vsub.f32 %v4356_v29, %v856_v60  ;;  %v3721_v42 = vsub.f32 %v4358_v44, %v856_v60  ;;  %v1388_v40 = vadd.f32 %v2241_v3, %v1387_v27  ;;  %v4363_v44 = vld [vmem:[#allocation96_spill] sm:$0xff] }
 0x202   : > { %v3724_v8 = vsub.f32 %v4359_v26, %v856_v60  ;;  %v4361_v60 = vld [vmem:[#allocation95_spill] sm:$0xff] }
 0x203   : > { %4355 = vst [vmem:[#allocation31_spill] sm:$0xff] %v3715_v17  ;;  %v2243_v12 = vpop.eup %2242  ;;  %v1224_v63 = vmul.f32 1.442695, %v3715_v17  ;;  %v1226_v57 = vmul.f32 1.442695, %v3718_v50  ;;  %1389 = vadd.xlane.f32.xlu1 %v1388_v40 }
 0x204   : > { %4357 = vst [vmem:[#allocation32_spill] sm:$0xff] %v3718_v50  ;;  %v2245_v0 = vpop.eup %2244  ;;  %v1228_v21 = vmul.f32 1.442695, %v3721_v42  ;;  %v1230_v56 = vmul.f32 1.442695, %v3724_v8  ;;  %v4365_v50 = vld [vmem:[#allocation98_spill] sm:$0xff] }
 0x205   : > { %4360 = vst [vmem:[#allocation33_spill] sm:$0xff] %v3724_v8  ;;  %2250 = vpow2.f32 %v1224_v63  ;;  %v1391_v29 = vadd.f32 %v2245_v0, %v2243_v12  ;;  %v2247_v49 = vpop.eup %2246 }
 0x206   : > { %2252 = vpow2.f32 %v1226_v57  ;;  %v2249_v3 = vpop.eup %2248 }
 0x207   : > { %v1392_v27 = vadd.f32 %v2247_v49, %v1391_v29  ;;  %2254 = vpow2.f32 %v1228_v21  ;;  %v4367_v21 = vld [vmem:[#allocation99_spill] sm:$0xff] }
 0x208   : > { %v861_v11 = vpop.xlane.xlu2 %860  ;;  %2256 = vpow2.f32 %v1230_v56 }
 0x209   : > { %v3731_v34 = vsub.f32 %v4361_v60, %v861_v11  ;;  %v3734_v26 = vsub.f32 %v4363_v44, %v861_v11  ;;  %v3737_v17 = vsub.f32 %v4365_v50, %v861_v11  ;;  %v1393_v40 = vadd.f32 %v2249_v3, %v1392_v27 }
 0x20a   : > { %v3742_v29 = vsub.f32 %v4367_v21, %v861_v11  ;;  %v4371_v11 = vld [vmem:[#allocation101_spill] sm:$0xff] }
 0x20b   : > { %4362 = vst [vmem:[#allocation34_spill] sm:$0xff] %v3731_v34  ;;  %v2251_v63 = vpop.eup %2250  ;;  %v1232_v12 = vmul.f32 1.442695, %v3731_v34  ;;  %v1234_v57 = vmul.f32 1.442695, %v3734_v26  ;;  %1394 = vadd.xlane.f32.xlu2 %v1393_v40 }
 0x20c   : > { %4364 = vst [vmem:[#allocation35_spill] sm:$0xff] %v3734_v26  ;;  %v2253_v0 = vpop.eup %2252  ;;  %v1236_v49 = vmul.f32 1.442695, %v3737_v17  ;;  %v1238_v27 = vmul.f32 1.442695, %v3742_v29  ;;  %v4369_v26 = vld [vmem:[#allocation100_spill] sm:$0xff] }
 0x20d   : > { %4366 = vst [vmem:[#allocation36_spill] sm:$0xff] %v3737_v17  ;;  %2258 = vpow2.f32 %v1232_v12  ;;  %v1396_v60 = vadd.f32 %v2253_v0, %v2251_v63  ;;  %v2255_v44 = vpop.eup %2254  ;;  %v4374_v63 = vld [vmem:[#allocation102_spill] sm:$0xff] }
 0x20e   : > { %4368 = vst [vmem:[#allocation37_spill] sm:$0xff] %v3742_v29  ;;  %2260 = vpow2.f32 %v1234_v57  ;;  %v2257_v34 = vpop.eup %2256 }
 0x20f   : > { %v1397_v50 = vadd.f32 %v2255_v44, %v1396_v60  ;;  %2262 = vpow2.f32 %v1236_v49 }
 0x210   : > { %v1305_v56 = vpop.xlane.xlu2 %1304  ;;  %v866_v3 = vpop.xlane.xlu0 %865 }
 0x211   : > { %2264 = vlog2.f32 %v1305_v56  ;;  %v3747_v8 = vsub.f32 %v4369_v26, %v866_v3  ;;  %v3750_v21 = vsub.f32 %v4371_v11, %v866_v3  ;;  %v3753_v40 = vsub.f32 %v3375_v14, %v866_v3 }
 0x212   : > { %v3756_v12 = vsub.f32 %v4374_v63, %v866_v3  ;;  %v1398_v57 = vadd.f32 %v2257_v34, %v1397_v50  ;;  %2266 = vpow2.f32 %v1238_v27 }
 0x213   : > { %4370 = vst [vmem:[#allocation39_spill] sm:$0xff] %v3747_v8  ;;  %v2259_v0 = vpop.eup %2258  ;;  %v1240_v49 = vmul.f32 1.442695, %v3747_v8  ;;  %v1242_v60 = vmul.f32 1.442695, %v3750_v21 }
 0x214   : > { %4372 = vst [vmem:[#allocation40_spill] sm:$0xff] %v3750_v21  ;;  %v2261_v44 = vpop.eup %2260  ;;  %v1244_v26 = vmul.f32 1.442695, %v3753_v40  ;;  %1399 = vadd.xlane.f32.xlu0 %v1398_v57  ;;  %v1246_v14 = vmul.f32 1.442695, %v3756_v12 }
 0x215   : > { %4373 = vst [vmem:[#allocation41_spill] sm:$0xff] %v3753_v40  ;;  %2268 = vpow2.f32 %v1240_v49  ;;  %v1401_v56 = vadd.f32 %v2261_v44, %v2259_v0  ;;  %v2263_v11 = vpop.eup %2262 }
 0x216   : > { %4375 = vst [vmem:[#allocation42_spill] sm:$0xff] %v3756_v12  ;;  %2270 = vpow2.f32 %v1242_v60  ;;  %v4377_v60 = vld [vmem:[#allocation79_spill] sm:$0xff]  ;;  %v4379_v12 = vld [vmem:[#allocation84_spill] sm:$0xff] }
 0x217   : > { %v2265_v29 = vpop.eup %2264  ;;  %2272 = vpow2.f32 %v1244_v26  ;;  %v1402_v63 = vadd.f32 %v2263_v11, %v1401_v56 }
 0x218   : > { %v1435_v3 = vmul.f32 0.6931472, %v2265_v29  ;;  %v871_v34 = vpop.xlane.xlu1 %870  ;;  %v1310_v50 = vpop.xlane.xlu0 %1309  ;;  %v4378_v29 = vld [vmem:[#allocation80_spill] sm:$0xff]  ;;  %2274 = vpow2.f32 %v1246_v14 }
 0x219   : > { %v3763_v21 = vsub.f32 %v3399_v61, %v871_v34  ;;  %v3766_v27 = vsub.f32 %v3404_v37, %v871_v34  ;;  %v3769_v57 = vsub.f32 %v3421_v48, %v871_v34  ;;  %v1320_v0 = vpop.xlane.xlu2 %1319  ;;  %v2267_v49 = vpop.eup %2266  ;;  %v4380_v61 = vld [vmem:[#allocation85_spill] sm:$0xff]  ;;  %v3779_v17 = vsub.f32 %v3427_v43, %v871_v34 }
 0x21a   : > { %v1516_v44 = vsub.f32 %v4377_v60, %v1435_v3  ;;  %v1517_v26 = vsub.f32 %v4378_v29, %v1435_v3  ;;  %v1518_v40 = vsub.f32 %v4379_v12, %v1435_v3  ;;  %v1519_v11 = vsub.f32 %v4380_v61, %v1435_v3 }
 0x21b   : > { %4376 = vst [vmem:[#allocation43_spill] sm:$0xff] %v3769_v57  ;;  %v2269_v56 = vpop.eup %2268  ;;  %v1248_v37 = vmul.f32 1.442695, %v3763_v21  ;;  %v1250_v48 = vmul.f32 1.442695, %v3766_v27  ;;  %2276 = vlog2.f32 %v1320_v0  ;;  %v1403_v12 = vadd.f32 %v2267_v49, %v1402_v63 }
 0x21c   : > { %v2271_v8 = vpop.eup %2270  ;;  %1644 = vst [vmem:[%s3490_s6 + $0x120] sm:$0xff] %v1516_v44  ;;  %v1252_v60 = vmul.f32 1.442695, %v3769_v57  ;;  %2278 = vlog2.f32 %v1310_v50  ;;  %v1254_v0 = vmul.f32 1.442695, %v3779_v17 }
 0x21d   : > { %4381 = vst [vmem:[#allocation44_spill] sm:$0xff] %v3779_v17  ;;  %2280 = vpow2.f32 %v1248_v37  ;;  %v1406_v14 = vadd.f32 %v2271_v8, %v2269_v56  ;;  %v2273_v29 = vpop.eup %2272  ;;  %1404 = vadd.xlane.f32.xlu1 %v1403_v12  ;;  %v4382_v56 = vld [vmem:[#allocation9_spill] sm:$0xff]  ;;  %v4383_v37 = vld [vmem:[#allocation10_spill] sm:$0xff] }
 0x21e   : > { %1645 = vst [vmem:[%s3490_s6 + $0x128] sm:$0xff] %v1517_v26  ;;  %2282 = vpow2.f32 %v1250_v48  ;;  %v2275_v61 = vpop.eup %2274 }
 0x21f   : > { %1646 = vst [vmem:[%s3490_s6 + $0x130] sm:$0xff] %v1518_v40  ;;  %v1407_v3 = vadd.f32 %v2273_v29, %v1406_v14  ;;  %2284 = vpow2.f32 %v1252_v60  ;;  %v4384_v60 = vld [vmem:[#allocation11_spill] sm:$0xff]  ;;  %v4385_v14 = vld [vmem:[#allocation97_spill] sm:$0xff] }
 0x220   : > { %1647 = vst [vmem:[%s3490_s6 + $0x138] sm:$0xff] %v1519_v11  ;;  %v1300_v44 = vpop.xlane.xlu1 %1299  ;;  %v1325_v43 = vpop.xlane.xlu0 %1324 }
 0x221   : > { %v2277_v34 = vpop.eup %2276  ;;  %2286 = vlog2.f32 %v1300_v44  ;;  %v1335_v57 = vpop.xlane.xlu2 %1334  ;;  %v1408_v50 = vadd.f32 %v2275_v61, %v1407_v3 }
 0x222   : > { %v2279_v63 = vpop.eup %2278  ;;  %v1441_v49 = vmul.f32 0.6931472, %v2277_v34  ;;  %2288 = vlog2.f32 %v1335_v57  ;;  %v4386_v57 = vld [vmem:[#allocation89_spill] sm:$0xff] }
 0x223   : > { %v2281_v8 = vpop.eup %2280  ;;  %v1437_v40 = vmul.f32 0.6931472, %v2279_v63  ;;  %1409 = vadd.xlane.f32.xlu2 %v1408_v50  ;;  %2290 = vpow2.f32 %v1254_v0  ;;  %v4387_v50 = vld [vmem:[#allocation90_spill] sm:$0xff] }
 0x224   : > { %v2283_v26 = vpop.eup %2282  ;;  %v1528_v11 = vsub.f32 %v4382_v56, %v1441_v49  ;;  %v1529_v48 = vsub.f32 %v4383_v37, %v1441_v49  ;;  %v1530_v12 = vsub.f32 %v4384_v60, %v1441_v49  ;;  %v1531_v29 = vsub.f32 %v4385_v14, %v1441_v49  ;;  %v4388_v56 = vld [vmem:[#allocation91_spill] sm:$0xff]  ;;  %v4389_v49 = vld [vmem:[#allocation92_spill] sm:$0xff] }
 0x225   : > { %2292 = vlog2.f32 %v1325_v43  ;;  %v2285_v3 = vpop.eup %2284  ;;  %v1520_v61 = vsub.f32 %v4386_v57, %v1437_v40  ;;  %v1411_v44 = vadd.f32 %v2283_v26, %v2281_v8  ;;  %v1521_v0 = vsub.f32 %v4387_v50, %v1437_v40  ;;  %v4390_v26 = vld [vmem:[#allocation75_spill] sm:$0xff]  ;;  %v4391_v50 = vld [vmem:[#allocation76_spill] sm:$0xff] }
 0x226   : > { %1656 = vst [vmem:[%s3490_s6 + $0x180] sm:$0xff] %v1528_v11  ;;  %v1522_v37 = vsub.f32 %v4388_v56, %v1437_v40  ;;  %v1523_v11 = vsub.f32 %v4389_v49, %v1437_v40  ;;  %v4392_v56 = vld [vmem:[#allocation81_spill] sm:$0xff]  ;;  %v4393_v40 = vld [vmem:[#allocation82_spill] sm:$0xff] }
 0x227   : > { %v2287_v34 = vpop.eup %2286  ;;  %1657 = vst [vmem:[%s3490_s6 + $0x188] sm:$0xff] %v1529_v48  ;;  %v1412_v43 = vadd.f32 %v2285_v3, %v1411_v44 }
 0x228   : > { %v2289_v63 = vpop.eup %2288  ;;  %1658 = vst [vmem:[%s3490_s6 + $0x190] sm:$0xff] %v1530_v12  ;;  %v1433_v60 = vmul.f32 0.6931472, %v2287_v34  ;;  %v1315_v17 = vpop.xlane.xlu1 %1314 }
 0x229   : > { %1659 = vst [vmem:[%s3490_s6 + $0x198] sm:$0xff] %v1531_v29  ;;  %2294 = vlog2.f32 %v1315_v17  ;;  %v2291_v8 = vpop.eup %2290  ;;  %v1447_v14 = vmul.f32 0.6931472, %v2289_v63  ;;  %v1340_v57 = vpop.xlane.xlu0 %1339 }
 0x22a   : > { %1648 = vst [vmem:[%s3490_s6 + $0x140] sm:$0xff] %v1520_v61  ;;  %v1512_v48 = vsub.f32 %v4390_v26, %v1433_v60  ;;  %v1513_v34 = vsub.f32 %v4391_v50, %v1433_v60  ;;  %v1514_v29 = vsub.f32 %v4392_v56, %v1433_v60  ;;  %v1413_v3 = vadd.f32 %v2291_v8, %v1412_v43  ;;  %v4394_v61 = vld [vmem:[#allocation103_spill] sm:$0xff]  ;;  %v4397_v8 = vld [vmem:[#allocation12_spill] sm:$0xff]  ;;  %v4398_v50 = vld [vmem:[#allocation13_spill] sm:$0xff] }
 0x22b   : > { %v2293_v12 = vpop.eup %2292  ;;  %1649 = vst [vmem:[%s3490_s6 + $0x148] sm:$0xff] %v1521_v0  ;;  %v1515_v17 = vsub.f32 %v4393_v40, %v1433_v60  ;;  %2296 = vlog2.f32 %v1340_v57  ;;  %v1540_v44 = vsub.f32 %v4394_v61, %v1447_v14  ;;  %v4395_v0 = vld [vmem:[#allocation20_spill] sm:$0xff]  ;;  %v4399_v56 = vld [vmem:[#allocation14_spill] sm:$0xff] }
 0x22c   : > { %1650 = vst [vmem:[%s3490_s6 + $0x150] sm:$0xff] %v1522_v37  ;;  %v1443_v63 = vmul.f32 0.6931472, %v2293_v12  ;;  %v1541_v26 = vsub.f32 %v4395_v0, %v1447_v14  ;;  %1414 = vadd.xlane.f32.xlu0 %v1413_v3  ;;  %v1542_v37 = vsub.f32 %v3389_v24, %v1447_v14  ;;  %v4396_v60 = vld [vmem:[#allocation16_spill] sm:$0xff]  ;;  %v4403_v0 = vld [vmem:[#allocation7_spill] sm:$0xff] }
 0x22d   : > { %1651 = vst [vmem:[%s3490_s6 + $0x158] sm:$0xff] %v1523_v11  ;;  %v1543_v11 = vsub.f32 %v4396_v60, %v1447_v14  ;;  %v4401_v14 = vld [vmem:[#allocation5_spill] sm:$0xff] }
 0x22e   : > { %1640 = vst [vmem:[%s3490_s6 + $0x100] sm:$0xff] %v1512_v48  ;;  %v1532_v48 = vsub.f32 %v4397_v8, %v1443_v63  ;;  %v1534_v24 = vsub.f32 %v4399_v56, %v1443_v63 }
 0x22f   : > { %v2295_v49 = vpop.eup %2294  ;;  %1641 = vst [vmem:[%s3490_s6 + $0x108] sm:$0xff] %v1513_v34  ;;  %v1533_v34 = vsub.f32 %v4398_v50, %v1443_v63 }
 0x230   : > { %1642 = vst [vmem:[%s3490_s6 + $0x110] sm:$0xff] %v1514_v29  ;;  %v1330_v43 = vpop.xlane.xlu1 %1329  ;;  %v1439_v57 = vmul.f32 0.6931472, %v2295_v49  ;;  %v4400_v29 = vld [vmem:[#allocation15_spill] sm:$0xff] }
 0x231   : > { %1643 = vst [vmem:[%s3490_s6 + $0x118] sm:$0xff] %v1515_v17  ;;  %2298 = vlog2.f32 %v1330_v43  ;;  %v2297_v12 = vpop.eup %2296  ;;  %v1535_v3 = vsub.f32 %v4400_v29, %v1443_v63 }
 0x232   : > { %1668 = vst [vmem:[%s3490_s6 + $0x1e0] sm:$0xff] %v1540_v44  ;;  %v1524_v40 = vsub.f32 %v4401_v14, %v1439_v57  ;;  %v1449_v17 = vmul.f32 0.6931472, %v2297_v12  ;;  %v4402_v44 = vld [vmem:[#allocation6_spill] sm:$0xff]  ;;  %v1527_v63 = vsub.f32 %v3441_v5, %v1439_v57  ;;  %v4405_v5 = vld [vmem:[#allocation21_spill] sm:$0xff] }
 0x233   : > { %1669 = vst [vmem:[%s3490_s6 + $0x1e8] sm:$0xff] %v1541_v26  ;;  %v1525_v49 = vsub.f32 %v4402_v44, %v1439_v57  ;;  %v1526_v26 = vsub.f32 %v4403_v0, %v1439_v57 }
 0x234   : > { %1670 = vst [vmem:[%s3490_s6 + $0x1f0] sm:$0xff] %v1542_v37  ;;  %v1544_v43 = vsub.f32 %v3431_v46, %v1449_v17  ;;  %v1547_v12 = vsub.f32 %v3449_v10, %v1449_v17  ;;  %v4406_v46 = vld [vmem:[#allocation22_spill] sm:$0xff] }
 0x235   : > { %1671 = vst [vmem:[%s3490_s6 + $0x1f8] sm:$0xff] %v1543_v11  ;;  %v4404_v11 = vld [vmem:[#allocation17_spill] sm:$0xff] }
 0x236   : > { %1660 = vst [vmem:[%s3490_s6 + $0x1a0] sm:$0xff] %v1532_v48  ;;  %v1545_v8 = vsub.f32 %v4404_v11, %v1449_v17  ;;  %v1546_v48 = vsub.f32 %v3437_v28, %v1449_v17 }
 0x237   : > { %v2299_v61 = vpop.eup %2298  ;;  %1661 = vst [vmem:[%s3490_s6 + $0x1a8] sm:$0xff] %v1533_v34 }
 0x238   : > { %1662 = vst [vmem:[%s3490_s6 + $0x1b0] sm:$0xff] %v1534_v24  ;;  %v1345_v37 = vpop.xlane.xlu1 %1344  ;;  %v1445_v60 = vmul.f32 0.6931472, %v2299_v61 }
 0x239   : > { %1663 = vst [vmem:[%s3490_s6 + $0x1b8] sm:$0xff] %v1535_v3  ;;  %2300 = vlog2.f32 %v1345_v37 }
 0x23a   : > { %1652 = vst [vmem:[%s3490_s6 + $0x160] sm:$0xff] %v1524_v40  ;;  %v1536_v57 = vsub.f32 %v4405_v5, %v1445_v60  ;;  %v1537_v56 = vsub.f32 %v4406_v46, %v1445_v60  ;;  %v1538_v24 = vsub.f32 %v3455_v36, %v1445_v60  ;;  %v1539_v10 = vsub.f32 %v3459_v52, %v1445_v60 }
 0x23b   : > { %1653 = vst [vmem:[%s3490_s6 + $0x168] sm:$0xff] %v1525_v49 }
 0x23c   : > { %1654 = vst [vmem:[%s3490_s6 + $0x170] sm:$0xff] %v1526_v26 }
 0x23d   : > { %1655 = vst [vmem:[%s3490_s6 + $0x178] sm:$0xff] %v1527_v63  ;;  %v1350_v50 = vpop.xlane.xlu2 %1349 }
 0x23e   : > { %1672 = vst [vmem:[%s3490_s6 + $0x200] sm:$0xff] %v1544_v43  ;;  %2302 = vlog2.f32 %v1350_v50 }
 0x23f   : > { %v2301_v34 = vpop.eup %2300  ;;  %1673 = vst [vmem:[%s3490_s6 + $0x208] sm:$0xff] %v1545_v8 }
 0x240   : > { %1674 = vst [vmem:[%s3490_s6 + $0x210] sm:$0xff] %v1546_v48  ;;  %v1451_v28 = vmul.f32 0.6931472, %v2301_v34 }
 0x241   : > { %1675 = vst [vmem:[%s3490_s6 + $0x218] sm:$0xff] %v1547_v12 }
 0x242   : > { %1664 = vst [vmem:[%s3490_s6 + $0x1c0] sm:$0xff] %v1536_v57  ;;  %v1548_v29 = vsub.f32 %v3473_v55, %v1451_v28  ;;  %v1549_v3 = vsub.f32 %v3476_v4, %v1451_v28  ;;  %v1550_v14 = vsub.f32 %v3479_v19, %v1451_v28  ;;  %v1551_v36 = vsub.f32 %v3485_v53, %v1451_v28  ;;  %v4409_v28 = vld [vmem:[#allocation29_spill] sm:$0xff] }
 0x243   : > { %1665 = vst [vmem:[%s3490_s6 + $0x1c8] sm:$0xff] %v1537_v56 }
 0x244   : > { %1666 = vst [vmem:[%s3490_s6 + $0x1d0] sm:$0xff] %v1538_v24  ;;  %v2303_v40 = vpop.eup %2302  ;;  %v1355_v17 = vpop.xlane.xlu0 %1354  ;;  %v4408_v24 = vld [vmem:[#allocation24_spill] sm:$0xff] }
 0x245   : > { %1667 = vst [vmem:[%s3490_s6 + $0x1d8] sm:$0xff] %v1539_v10  ;;  %v1453_v52 = vmul.f32 0.6931472, %v2303_v40  ;;  %2304 = vlog2.f32 %v1355_v17  ;;  %v4412_v17 = vld [vmem:[#allocation19_spill] sm:$0xff] }
 0x246   : > { %1676 = vst [vmem:[%s3490_s6 + $0x220] sm:$0xff] %v1548_v29 }
 0x247   : > { %1677 = vst [vmem:[%s3490_s6 + $0x228] sm:$0xff] %v1549_v3  ;;  %v1552_v55 = vsub.f32 %v3499_v7, %v1453_v52  ;;  %v1553_v4 = vsub.f32 %v3502_v54, %v1453_v52  ;;  %v1554_v19 = vsub.f32 %v3505_v30, %v1453_v52  ;;  %v1555_v61 = vsub.f32 %v3508_v15, %v1453_v52 }
 0x248   : > { %1678 = vst [vmem:[%s3490_s6 + $0x230] sm:$0xff] %v1550_v14  ;;  %v4410_v14 = vld [vmem:[#allocation8_spill] sm:$0xff] }
 0x249   : > { %1679 = vst [vmem:[%s3490_s6 + $0x238] sm:$0xff] %v1551_v36  ;;  %v4411_v36 = vld [vmem:[#allocation18_spill] sm:$0xff] }
 0x24a   : > { %1680 = vst [vmem:[%s3490_s6 + $0x240] sm:$0xff] %v1552_v55 }
 0x24b   : > { %1681 = vst [vmem:[%s3490_s6 + $0x248] sm:$0xff] %v1553_v4  ;;  %v2305_v53 = vpop.eup %2304 }
 0x24c   : > { %1682 = vst [vmem:[%s3490_s6 + $0x250] sm:$0xff] %v1554_v19  ;;  %v1455_v44 = vmul.f32 0.6931472, %v2305_v53  ;;  %v4413_v53 = vld [vmem:[#allocation25_spill] sm:$0xff] }
 0x24d   : > { %1683 = vst [vmem:[%s3490_s6 + $0x258] sm:$0xff] %v1555_v61  ;;  %v1360_v49 = vpop.xlane.xlu1 %1359 }
 0x24e   : > { %2306 = vlog2.f32 %v1360_v49  ;;  %v1556_v7 = vsub.f32 %v3523_v2, %v1455_v44  ;;  %v1557_v54 = vsub.f32 %v3526_v9, %v1455_v44  ;;  %v1558_v30 = vsub.f32 %v3529_v6, %v1455_v44  ;;  %v4414_v49 = vld [vmem:[#allocation26_spill] sm:$0xff] }
 0x24f   : > { %v1559_v15 = vsub.f32 %v3532_v18, %v1455_v44 }
 0x250   : > { %1684 = vst [vmem:[%s3490_s6 + $0x260] sm:$0xff] %v1556_v7  ;;  %v4415_v7 = vld [vmem:[#allocation27_spill] sm:$0xff] }
 0x251   : > { %1685 = vst [vmem:[%s3490_s6 + $0x268] sm:$0xff] %v1557_v54 }
 0x252   : > { %1686 = vst [vmem:[%s3490_s6 + $0x270] sm:$0xff] %v1558_v30  ;;  %v4416_v30 = vld [vmem:[#allocation28_spill] sm:$0xff] }
 0x253   : > { %1687 = vst [vmem:[%s3490_s6 + $0x278] sm:$0xff] %v1559_v15 }
 0x254   : > { %v2307_v0 = vpop.eup %2306 }
 0x255   : > { %v1457_v26 = vmul.f32 0.6931472, %v2307_v0  ;;  %v1365_v37 = vpop.xlane.xlu2 %1364 }
 0x256   : > { %2308 = vlog2.f32 %v1365_v37 }
 0x257   : > { %v1560_v2 = vsub.f32 %v3547_v33, %v1457_v26  ;;  %v1561_v9 = vsub.f32 %v3550_v62, %v1457_v26  ;;  %v1562_v6 = vsub.f32 %v3553_v41, %v1457_v26  ;;  %v1563_v18 = vsub.f32 %v3559_v1, %v1457_v26 }
 0x259   : > { %1688 = vst [vmem:[%s3490_s6 + $0x280] sm:$0xff] %v1560_v2  ;;  %v4417_v2 = vld [vmem:[#allocation38_spill] sm:$0xff] }
 0x25a   : > { %1689 = vst [vmem:[%s3490_s6 + $0x288] sm:$0xff] %v1561_v9 }
 0x25b   : > { %1690 = vst [vmem:[%s3490_s6 + $0x290] sm:$0xff] %v1562_v6  ;;  %v4418_v6 = vld [vmem:[#allocation30_spill] sm:$0xff] }
 0x25c   : > { %v2309_v63 = vpop.eup %2308  ;;  %1691 = vst [vmem:[%s3490_s6 + $0x298] sm:$0xff] %v1563_v18 }
 0x25d   : > { %v1459_v43 = vmul.f32 0.6931472, %v2309_v63 }
 0x25e   : > { %v1370_v60 = vpop.xlane.xlu0 %1369 }
 0x25f   : > { %2310 = vlog2.f32 %v1370_v60  ;;  %v1564_v33 = vsub.f32 %v3571_v39, %v1459_v43  ;;  %v1565_v62 = vsub.f32 %v3574_v59, %v1459_v43  ;;  %v1566_v41 = vsub.f32 %v3577_v32, %v1459_v43 }
 0x260   : > { %v1567_v1 = vsub.f32 %v3580_v23, %v1459_v43 }
 0x261   : > { %1692 = vst [vmem:[%s3490_s6 + $0x2a0] sm:$0xff] %v1564_v33 }
 0x262   : > { %1693 = vst [vmem:[%s3490_s6 + $0x2a8] sm:$0xff] %v1565_v62  ;;  %v4419_v62 = vld [vmem:[#allocation31_spill] sm:$0xff] }
 0x263   : > { %1694 = vst [vmem:[%s3490_s6 + $0x2b0] sm:$0xff] %v1566_v41 }
 0x264   : > { %1695 = vst [vmem:[%s3490_s6 + $0x2b8] sm:$0xff] %v1567_v1  ;;  %v4420_v1 = vld [vmem:[#allocation32_spill] sm:$0xff] }
 0x265   : > { %v2311_v11 = vpop.eup %2310  ;;  %v1375_v48 = vpop.xlane.xlu1 %1374 }
 0x266   : > { %v1461_v8 = vmul.f32 0.6931472, %v2311_v11  ;;  %2312 = vlog2.f32 %v1375_v48 }
 0x268   : > { %v1568_v39 = vsub.f32 %v3595_v58, %v1461_v8  ;;  %v1569_v59 = vsub.f32 %v3598_v51, %v1461_v8  ;;  %v1570_v32 = vsub.f32 %v3601_v45, %v1461_v8  ;;  %v1571_v12 = vsub.f32 %v3607_v20, %v1461_v8 }
 0x26a   : > { %1696 = vst [vmem:[%s3490_s6 + $0x2c0] sm:$0xff] %v1568_v39  ;;  %v4421_v39 = vld [vmem:[#allocation33_spill] sm:$0xff] }
 0x26b   : > { %1697 = vst [vmem:[%s3490_s6 + $0x2c8] sm:$0xff] %v1569_v59 }
 0x26c   : > { %1698 = vst [vmem:[%s3490_s6 + $0x2d0] sm:$0xff] %v1570_v32  ;;  %v2313_v23 = vpop.eup %2312 }
 0x26d   : > { %1699 = vst [vmem:[%s3490_s6 + $0x2d8] sm:$0xff] %v1571_v12  ;;  %v1463_v5 = vmul.f32 0.6931472, %v2313_v23  ;;  %v1380_v57 = vpop.xlane.xlu2 %1379  ;;  %v4422_v12 = vld [vmem:[#allocation34_spill] sm:$0xff] }
 0x26e   : > { %2314 = vlog2.f32 %v1380_v57  ;;  %v4424_v57 = vld [vmem:[#allocation36_spill] sm:$0xff] }
 0x26f   : > { %v1572_v58 = vsub.f32 %v3619_v25, %v1463_v5  ;;  %v1573_v50 = vsub.f32 %v3622_v13, %v1463_v5  ;;  %v1574_v51 = vsub.f32 %v3625_v35, %v1463_v5  ;;  %v1575_v45 = vsub.f32 %v3628_v47, %v1463_v5  ;;  %v4407_v13 = vld [vmem:[#allocation23_spill] sm:$0xff] }
 0x271   : > { %1700 = vst [vmem:[%s3490_s6 + $0x2e0] sm:$0xff] %v1572_v58 }
 0x272   : > { %1701 = vst [vmem:[%s3490_s6 + $0x2e8] sm:$0xff] %v1573_v50  ;;  %v4425_v50 = vld [vmem:[#allocation37_spill] sm:$0xff] }
 0x273   : > { %v1385_v20 = vpop.xlane.xlu0 %1384  ;;  %1702 = vst [vmem:[%s3490_s6 + $0x2f0] sm:$0xff] %v1574_v51 }
 0x274   : > { %2316 = vlog2.f32 %v1385_v20  ;;  %v2315_v34 = vpop.eup %2314  ;;  %1703 = vst [vmem:[%s3490_s6 + $0x2f8] sm:$0xff] %v1575_v45 }
 0x275   : > { %v1465_v46 = vmul.f32 0.6931472, %v2315_v34  ;;  %v4426_v34 = vld [vmem:[#allocation39_spill] sm:$0xff] }
 0x276   : > { %v1390_v56 = vpop.xlane.xlu1 %1389 }
 0x277   : > { %v1576_v25 = vsub.f32 %v3643_v22, %v1465_v46  ;;  %v1577_v35 = vsub.f32 %v4407_v13, %v1465_v46  ;;  %v1578_v47 = vsub.f32 %v4408_v24, %v1465_v46  ;;  %v1579_v10 = vsub.f32 %v4409_v28, %v1465_v46  ;;  %v4428_v13 = vld [vmem:[#allocation41_spill] sm:$0xff]  ;;  %v4429_v24 = vld [vmem:[#allocation42_spill] sm:$0xff] }
 0x278   : > { %2318 = vlog2.f32 %v1390_v56  ;;  %v4427_v56 = vld [vmem:[#allocation40_spill] sm:$0xff] }
 0x279   : > { %1704 = vst [vmem:[%s3490_s6 + $0x300] sm:$0xff] %v1576_v25 }
 0x27a   : > { %v2317_v29 = vpop.eup %2316  ;;  %1705 = vst [vmem:[%s3490_s6 + $0x308] sm:$0xff] %v1577_v35 }
 0x27b   : > { %v1467_v3 = vmul.f32 0.6931472, %v2317_v29  ;;  %1706 = vst [vmem:[%s3490_s6 + $0x310] sm:$0xff] %v1578_v47 }
 0x27c   : > { %1707 = vst [vmem:[%s3490_s6 + $0x318] sm:$0xff] %v1579_v10 }
 0x27d   : > { %v1580_v40 = vsub.f32 %v4410_v14, %v1467_v3  ;;  %v1581_v22 = vsub.f32 %v3665_v38, %v1467_v3  ;;  %v1582_v52 = vsub.f32 %v4411_v36, %v1467_v3  ;;  %v1583_v55 = vsub.f32 %v4412_v17, %v1467_v3  ;;  %v4431_v36 = vld [vmem:[#allocation44_spill] sm:$0xff] }
 0x27e   : > { %v2319_v4 = vpop.eup %2318  ;;  %v1395_v19 = vpop.xlane.xlu2 %1394 }
 0x27f   : > { %1708 = vst [vmem:[%s3490_s6 + $0x320] sm:$0xff] %v1580_v40  ;;  %v1469_v61 = vmul.f32 0.6931472, %v2319_v4  ;;  %2320 = vlog2.f32 %v1395_v19  ;;  %v4430_v40 = vld [vmem:[#allocation43_spill] sm:$0xff] }
 0x280   : > { %1709 = vst [vmem:[%s3490_s6 + $0x328] sm:$0xff] %v1581_v22 }
 0x281   : > { %1710 = vst [vmem:[%s3490_s6 + $0x330] sm:$0xff] %v1582_v52  ;;  %v1584_v44 = vsub.f32 %v4413_v53, %v1469_v61  ;;  %v1585_v38 = vsub.f32 %v4414_v49, %v1469_v61  ;;  %v1586_v54 = vsub.f32 %v4415_v7, %v1469_v61  ;;  %v1587_v15 = vsub.f32 %v4416_v30, %v1469_v61 }
 0x282   : > { %1711 = vst [vmem:[%s3490_s6 + $0x338] sm:$0xff] %v1583_v55 }
 0x283   : > { %1712 = vst [vmem:[%s3490_s6 + $0x340] sm:$0xff] %v1584_v44 }
 0x284   : > { %1713 = vst [vmem:[%s3490_s6 + $0x348] sm:$0xff] %v1585_v38 }
 0x285   : > { %v2321_v0 = vpop.eup %2320  ;;  %1714 = vst [vmem:[%s3490_s6 + $0x350] sm:$0xff] %v1586_v54 }
 0x286   : > { %1715 = vst [vmem:[%s3490_s6 + $0x358] sm:$0xff] %v1587_v15  ;;  %v1471_v26 = vmul.f32 0.6931472, %v2321_v0 }
 0x287   : > { %v1400_v37 = vpop.xlane.xlu0 %1399 }
 0x288   : > { %2322 = vlog2.f32 %v1400_v37  ;;  %v1588_v9 = vsub.f32 %v4417_v2, %v1471_v26  ;;  %v1589_v18 = vsub.f32 %v4418_v6, %v1471_v26  ;;  %v1590_v63 = vsub.f32 %v3705_v16, %v1471_v26 }
 0x289   : > { %v1591_v43 = vsub.f32 %v3708_v31, %v1471_v26 }
 0x28a   : > { %1716 = vst [vmem:[%s3490_s6 + $0x360] sm:$0xff] %v1588_v9 }
 0x28b   : > { %1717 = vst [vmem:[%s3490_s6 + $0x368] sm:$0xff] %v1589_v18 }
 0x28c   : > { %1718 = vst [vmem:[%s3490_s6 + $0x370] sm:$0xff] %v1590_v63 }
 0x28d   : > { %1719 = vst [vmem:[%s3490_s6 + $0x378] sm:$0xff] %v1591_v43 }
 0x28e   : > { %v2323_v60 = vpop.eup %2322 }
 0x28f   : > { %v1473_v33 = vmul.f32 0.6931472, %v2323_v60 }
 0x290   : > { %v1405_v48 = vpop.xlane.xlu1 %1404 }
 0x291   : > { %v1592_v41 = vsub.f32 %v4419_v62, %v1473_v33  ;;  %v1593_v11 = vsub.f32 %v4420_v1, %v1473_v33  ;;  %v1594_v8 = vsub.f32 %v3721_v42, %v1473_v33  ;;  %v1595_v16 = vsub.f32 %v4421_v39, %v1473_v33  ;;  %v4423_v42 = vld [vmem:[#allocation35_spill] sm:$0xff] }
 0x292   : > { %2324 = vlog2.f32 %v1405_v48 }
 0x293   : > { %1720 = vst [vmem:[%s3490_s6 + $0x380] sm:$0xff] %v1592_v41 }
 0x294   : > { %1721 = vst [vmem:[%s3490_s6 + $0x388] sm:$0xff] %v1593_v11 }
 0x295   : > { %1722 = vst [vmem:[%s3490_s6 + $0x390] sm:$0xff] %v1594_v8 }
 0x296   : > { %1723 = vst [vmem:[%s3490_s6 + $0x398] sm:$0xff] %v1595_v16  ;;  %v1410_v31 = vpop.xlane.xlu2 %1409 }
 0x297   : > { %2326 = vlog2.f32 %v1410_v31 }
 0x298   : > { %v2325_v59 = vpop.eup %2324 }
 0x299   : > { %v1475_v32 = vmul.f32 0.6931472, %v2325_v59 }
 0x29b   : > { %v1596_v23 = vsub.f32 %v4422_v12, %v1475_v32  ;;  %v1597_v5 = vsub.f32 %v4423_v42, %v1475_v32  ;;  %v1598_v58 = vsub.f32 %v4424_v57, %v1475_v32  ;;  %v1599_v51 = vsub.f32 %v4425_v50, %v1475_v32 }
 0x29d   : > { %v2327_v45 = vpop.eup %2326  ;;  %1724 = vst [vmem:[%s3490_s6 + $0x3a0] sm:$0xff] %v1596_v23 }
 0x29e   : > { %1725 = vst [vmem:[%s3490_s6 + $0x3a8] sm:$0xff] %v1597_v5  ;;  %v1477_v20 = vmul.f32 0.6931472, %v2327_v45 }
 0x29f   : > { %1726 = vst [vmem:[%s3490_s6 + $0x3b0] sm:$0xff] %v1598_v58  ;;  %v1415_v28 = vpop.xlane.xlu0 %1414 }
 0x2a0   : > { %1727 = vst [vmem:[%s3490_s6 + $0x3b8] sm:$0xff] %v1599_v51  ;;  %v1600_v46 = vsub.f32 %v4426_v34, %v1477_v20  ;;  %v1601_v25 = vsub.f32 %v4427_v56, %v1477_v20  ;;  %v1602_v35 = vsub.f32 %v4428_v13, %v1477_v20  ;;  %v1603_v47 = vsub.f32 %v4429_v24, %v1477_v20 }
 0x2a1   : > { %2328 = vlog2.f32 %v1415_v28 }
 0x2a2   : > { %1728 = vst [vmem:[%s3490_s6 + $0x3c0] sm:$0xff] %v1600_v46 }
 0x2a3   : > { %1729 = vst [vmem:[%s3490_s6 + $0x3c8] sm:$0xff] %v1601_v25 }
 0x2a4   : > { %1730 = vst [vmem:[%s3490_s6 + $0x3d0] sm:$0xff] %v1602_v35 }
 0x2a5   : > { %1731 = vst [vmem:[%s3490_s6 + $0x3d8] sm:$0xff] %v1603_v47 }
 0x2a7   : > { %v2329_v10 = vpop.eup %2328 }
 0x2a8   : > { %v1479_v29 = vmul.f32 0.6931472, %v2329_v10 }
 0x2aa   : > { %v1604_v3 = vsub.f32 %v3763_v21, %v1479_v29  ;;  %v1605_v14 = vsub.f32 %v3766_v27, %v1479_v29  ;;  %v1606_v22 = vsub.f32 %v4430_v40, %v1479_v29  ;;  %v1607_v52 = vsub.f32 %v4431_v36, %v1479_v29 }
 0x2ac   : > { %1732 = vst [vmem:[%s3490_s6 + $0x3e0] sm:$0xff] %v1604_v3 }
 0x2ad   : > { %1733 = vst [vmem:[%s3490_s6 + $0x3e8] sm:$0xff] %v1605_v14 }
 0x2ae   : > { %1734 = vst [vmem:[%s3490_s6 + $0x3f0] sm:$0xff] %v1606_v22 }
 0x2af   : > { %1735 = vst [vmem:[%s3490_s6 + $0x3f8] sm:$0xff] %v1607_v52 }
 0x2b0   : > { %2357 = shalt.err (!%p2354_p5)
}
 0x2b1   : > { %s2410_s30 = smov 512   ;;  %s2411_s4 = smov 32  }
 0x2b2   : > { %1953 = dma.vmem_to_hbm [thread:$0]  (%p2472_p4), %s1753_s11, 16384, %s1755_s18, %s1737_s15, %s2410_s30, %s2410_s30, %s2411_s4  }
 0x2b3 PF: > { %p1959_p6 = scmp.ge.s32.totalorder %s2408_s17, 2  ;;  %s1769_s5 = sand.u32 1, %s2388_s12  }
 0x2b4   : > { %s1770_s6 = scalar_lea.sflag [#allocation3], %s1769_s5 }
 0x2b5   : > { %p1956_p7 = pnand %p1959_p6, %p2479_p8 }
 0x2b7   : > { %p1957_p9 = pneg %p1956_p7 }
 0x2b9   : > { %2383 = dma.done.wait (%p1957_p9), %s1770_s6, 16384  }
 0x2ba   : > { %2385 = vsyncadd (%p1957_p9), %s1770_s6, 4294950912  ;;  %s16_s17 = sadd.s32 1, %s2408_s17   ;;  %s4432_s12 = smov %s2392_s13 }
 0x2bb   : > { %p13_p10 = scmp.ge.s32.totalorder %s16_s17, 4   ;;  %s4433_s13 = smov %s2396_s14 }
 0x2bc   : > { %s4434_s14 = smov %s2485_s25  ;;  %s4435_s15 = smov %s2404_s16 }
 0x2bd   : > { %s4436_s16 = smov %s4438_s20  ;;  %15 = sbr.rel (!%p13_p10) target bundleno = 4 (0x4), region = 67 }
 0x2c2   :  { %1776 = vsyncpa [#allocation3], 1 }
 0x2c3   :  { %1778 = vsyncpa [#allocation3 + $0x1], 1 }

</bundles_post_ra>
